<compile_context>
chip_gen: v6e
topology: v6e:2x2x1
jax: 0.10.0
libtpu: 0.0.40
codegen_flags: <defaults>
</compile_context>

<pallas_src>
import functools

import jax
import jax.numpy as jnp
from jax.experimental import pallas as pl
from jax.experimental.pallas import tpu as pltpu

# Safe on v5e/v6e (128 MiB physical) and v7x (64 MiB physical); per-step
# working sets below are kept well under this.
_VMEM_LIMIT_BYTES = 32 * 1024 * 1024

_CONV_CFG = ((8, 4, 32), (4, 2, 64), (3, 1, 64))  # (kernel, stride, out_channels)


def _conv_out_dim(size, k, s):
    return (size - k) // s + 1


# --------------------------------------------------------------------------
# Static per-layer plan (shapes only; closed over by the forward fn).
# --------------------------------------------------------------------------
def _make_plan(input_shape):
    c, h, w = input_shape
    plan = []
    cin = c
    for (k, s, cout) in _CONV_CFG:
        oh, ow = _conv_out_dim(h, k, s), _conv_out_dim(w, k, s)
        kp = -(-k // s)                      # ceil(k / s) taps after stride folding
        hs, ws = oh + kp - 1, ow + kp - 1    # stride-folded spatial dims
        assert s * hs <= h and s * ws <= w, "stride folding needs s*(o+kp-1) <= dim"
        plan.append(dict(k=k, s=s, kp=kp, cin=cin, cout=cout, oh=oh, ow=ow,
                         hs=hs, ws=ws, kc=s * s * cin, l=(oh - 1) * ws + ow))
        h, w, cin = oh, ow, cout
    return plan, (h, w, cin)


# --------------------------------------------------------------------------
# Kernel 1: fused stride-folded convolution + bias + ReLU.
#   grid = (batch,): one image per grid step -> pipelined HBM DMA across images.
#   Inside the kernel, kp*kp contiguous tap slices of the (flattened) folded
#   input feed kp*kp MXU matmuls accumulated into an f32 VMEM scratch.  No
#   im2col matrix ever touches HBM.
# --------------------------------------------------------------------------
def _conv_tap_kernel(x_ref, w_ref, b_ref, o_ref, acc_ref, *, kp, ws):
    # x_ref : (1, hs*ws, kc)     bf16   stride-folded image, spatially flattened
    # w_ref : (kp, kp, kc, cout) bf16   resident folded weights
    # b_ref : (1, cout)          f32    resident bias
    # o_ref : (1, l, cout)       bf16   l = (oh-1)*ws + ow "raw" output rows
    # acc_ref: (l, cout)         f32    scratch accumulator
    l = acc_ref.shape[0]
    acc_ref[...] = jnp.zeros_like(acc_ref)
    for p in range(kp):              # static, unrolled: kp*kp <= 9 MXU matmuls
        for q in range(kp):
            start = p * ws + q       # contiguous slice; max end == hs*ws exactly
            acc_ref[...] += jnp.dot(x_ref[0, start:start + l, :], w_ref[p, q],
                                    preferred_element_type=jnp.float32)
    y = jnp.maximum(acc_ref[...] + b_ref[...], 0.0)   # bias + ReLU in f32 (v5e-safe)
    o_ref[0] = y.astype(o_ref.dtype)                  # cast to bf16 on store


def _conv2d_relu(x_nhwc, w2, b, cfg):
    # x_nhwc: (n, h, w, cin) bf16 ; w2: (kp, kp, kc, cout) bf16 ; b: (1, cout) f32
    n = x_nhwc.shape[0]
    s, kp = cfg["s"], cfg["kp"]
    oh, ow, hs, ws = cfg["oh"], cfg["ow"], cfg["hs"], cfg["ws"]
    kc, cout, l = cfg["kc"], cfg["cout"], cfg["l"]

    # Space-to-depth (pure layout, ~1x activation bytes -- replaces 4-9x im2col):
    # stride-s conv becomes a stride-1 conv with kp*kp taps over s*s*cin channels.
    xs = x_nhwc[:, :s * hs, :s * ws, :]
    xs = xs.reshape(n, hs, s, ws, s, cfg["cin"]).transpose(0, 1, 3, 2, 4, 5)
    xs = xs.reshape(n, hs * ws, kc)

    kernel = functools.partial(_conv_tap_kernel, kp=kp, ws=ws)
    flops = 2 * n * l * kc * cout * kp * kp
    bytes_accessed = (xs.size * xs.dtype.itemsize + w2.size * 2 + b.size * 4
                      + n * l * cout * 2)
    y = pl.pallas_call(
        kernel,
        out_shape=jax.ShapeDtypeStruct((n, l, cout), jnp.bfloat16),
        grid_spec=pltpu.PrefetchScalarGridSpec(
            num_scalar_prefetch=0,
            grid=(n,),
            in_specs=[
                pl.BlockSpec((1, hs * ws, kc), lambda i: (i, 0, 0)),
                pl.BlockSpec((kp, kp, kc, cout), lambda i: (0, 0, 0, 0)),  # resident
                pl.BlockSpec((1, cout), lambda i: (0, 0)),                 # resident
            ],
            out_specs=pl.BlockSpec((1, l, cout), lambda i: (i, 0, 0)),
            scratch_shapes=[pltpu.VMEM((l, cout), jnp.float32)],
        ),
        compiler_params=pltpu.CompilerParams(
            dimension_semantics=("parallel",),     # shard batch across v7x's 2 TCs
            vmem_limit_bytes=_VMEM_LIMIT_BYTES),
        cost_estimate=pl.CostEstimate(flops=flops, transcendentals=0,
                                      bytes_accessed=bytes_accessed),
    )(xs, w2, b)

    # Rows of y are r = a*ws + b; drop the (kp-1) overrun columns (b >= ow).
    y = jnp.pad(y, ((0, 0), (0, oh * ws - l), (0, 0)))
    return y.reshape(n, oh, ws, cout)[:, :, :ow, :]        # (n, oh, ow, cout) bf16


# --------------------------------------------------------------------------
# Kernel 2: fused MLP head  q = (relu(x @ W1 + b1)) @ W2 + b2
#   Gridded over M tiles with resident weights; W2/b2 are padded to a 128-lane
#   multiple so the final store is lane-dense (padding sliced off outside).
# --------------------------------------------------------------------------
def _head_kernel(x_ref, w1_ref, b1_ref, w2_ref, b2_ref, o_ref):
    h = jnp.dot(x_ref[...], w1_ref[...], preferred_element_type=jnp.float32)
    h = jnp.maximum(h + b1_ref[...], 0.0)
    q = jnp.dot(h.astype(w2_ref.dtype), w2_ref[...],
                preferred_element_type=jnp.float32)
    o_ref[...] = (q + b2_ref[...]).astype(o_ref.dtype)


def _mlp_head(x, w1, b1, w2, b2):
    # x: (m, k) bf16 ; w1: (k, nh) bf16 ; w2: (nh, n_pad) bf16 ; biases f32.
    m, k = x.shape
    nh = w1.shape[1]
    n_out = w2.shape[1]
    if m <= 512:
        tm = m                                    # single block (full dim is legal)
    else:
        tm = 512                                  # multiple of 8 -> legal partial tiles
        while tm > 8 and tm * k * 2 > (4 << 20):  # keep (tm, k) bf16 block <= ~4 MiB
            tm //= 2
    # TODO(synk): for very large conv_out (full 210x160 frames) W1 should be
    # K-tiled with an accumulator grid axis instead of being fully resident.
    flops = 2 * m * (k * nh + nh * n_out)
    bytes_accessed = (x.size * 2 + w1.size * 2 + w2.size * 2
                      + b1.size * 4 + b2.size * 4 + m * n_out * 4)
    return pl.pallas_call(
        _head_kernel,
        out_shape=jax.ShapeDtypeStruct((m, n_out), jnp.float32),
        grid_spec=pltpu.PrefetchScalarGridSpec(
            num_scalar_prefetch=0,
            grid=(pl.cdiv(m, tm),),
            in_specs=[
                pl.BlockSpec((tm, k), lambda i: (i, 0)),
                pl.BlockSpec((k, nh), lambda i: (0, 0)),      # resident
                pl.BlockSpec((1, nh), lambda i: (0, 0)),      # resident
                pl.BlockSpec((nh, n_out), lambda i: (0, 0)),  # resident
                pl.BlockSpec((1, n_out), lambda i: (0, 0)),   # resident
            ],
            out_specs=pl.BlockSpec((tm, n_out), lambda i: (i, 0)),
        ),
        compiler_params=pltpu.CompilerParams(
            dimension_semantics=("parallel",),
            vmem_limit_bytes=_VMEM_LIMIT_BYTES),
        cost_estimate=pl.CostEstimate(flops=flops, transcendentals=0,
                                      bytes_accessed=bytes_accessed),
    )(x, w1, b1, w2, b2)


# --------------------------------------------------------------------------
# Parameters: synthetic init in a PyTorch-equivalent layout, then a one-time
# "prepare" pass into the kernel-friendly layout (stride-folded bf16 conv
# weights, NHWC-permuted fc1 rows, 128-lane-padded fc2).
# --------------------------------------------------------------------------
def init_dqn_params(key, input_shape, num_actions):
    plan, (h3, w3, c3) = _make_plan(input_shape)
    conv_out = h3 * w3 * c3
    ks = jax.random.split(key, 10)

    def winit(k_, shape, fan_in):
        return jax.random.normal(k_, shape, jnp.float32) / jnp.sqrt(float(fan_in))

    p = {}
    cin = input_shape[0]
    for idx, (k, s, cout) in enumerate(_CONV_CFG, start=1):
        p[f"w_conv{idx}"] = winit(ks[2 * idx - 2], (k, k, cin, cout), k * k * cin)
        p[f"b_conv{idx}"] = 0.01 * jax.random.normal(ks[2 * idx - 1], (cout,), jnp.float32)
        cin = cout
    # fc1 rows in NCHW-flatten order (matches PyTorch x.reshape(N, -1)).
    p["w_fc1"] = winit(ks[6], (conv_out, 512), conv_out)
    p["b_fc1"] = 0.01 * jax.random.normal(ks[7], (512,), jnp.float32)
    p["w_fc2"] = winit(ks[8], (512, num_actions), 512)
    p["b_fc2"] = 0.01 * jax.random.normal(ks[9], (num_actions,), jnp.float32)
    return p


def prepare_params(params, input_shape, num_actions):
    plan, (h3, w3, c3) = _make_plan(input_shape)
    prep = {}
    for idx, cfg in enumerate(plan, start=1):
        w = params[f"w_conv{idx}"]                       # (k, k, cin, cout) HWIO
        k, s, kp = cfg["k"], cfg["s"], cfg["kp"]
        cin, cout = cfg["cin"], cfg["cout"]
        kpad = kp * s
        w = jnp.pad(w, ((0, kpad - k), (0, kpad - k), (0, 0), (0, 0)))
        w = w.reshape(kp, s, kp, s, cin, cout).transpose(0, 2, 1, 3, 4, 5)
        prep[f"w_conv{idx}"] = w.reshape(kp, kp, s * s * cin, cout).astype(jnp.bfloat16)
        prep[f"b_conv{idx}"] = params[f"b_conv{idx}"].reshape(1, cout).astype(jnp.float32)

    # Fold the per-forward NHWC->NCHW transpose into fc1's rows (done once here).
    w1 = params["w_fc1"].reshape(c3, h3, w3, -1).transpose(1, 2, 0, 3)
    prep["w_fc1"] = w1.reshape(h3 * w3 * c3, -1).astype(jnp.bfloat16)
    prep["b_fc1"] = params["b_fc1"].reshape(1, -1).astype(jnp.float32)

    # Pad fc2 output to a multiple of 128 lanes for unmasked stores.
    n_pad = -(-num_actions // 128) * 128
    w2 = jnp.zeros((512, n_pad), jnp.float32).at[:, :num_actions].set(params["w_fc2"])
    b2 = jnp.zeros((1, n_pad), jnp.float32).at[0, :num_actions].set(params["b_fc2"])
    prep["w_fc2"] = w2.astype(jnp.bfloat16)
    prep["b_fc2"] = b2
    return prep


def make_dqn_forward(input_shape, num_actions):
    plan, _ = _make_plan(input_shape)

    def forward(prep, x_nchw):
        # x: (N, C, H, W) f32 (PyTorch layout) -> NHWC bf16 once.
        x = jnp.transpose(x_nchw, (0, 2, 3, 1)).astype(jnp.bfloat16)
        for idx, cfg in enumerate(plan, start=1):
            x = _conv2d_relu(x, prep[f"w_conv{idx}"], prep[f"b_conv{idx}"], cfg)
        feat = x.reshape(x.shape[0], -1)          # NHWC flatten (fc1 rows pre-permuted)
        q = _mlp_head(feat, prep["w_fc1"], prep["b_fc1"],
                      prep["w_fc2"], prep["b_fc2"])
        return q[:, :num_actions]

    return forward


if __name__ == "__main__":
    # Small synthetic shapes consistent with the module's forward:
    # batch=2, C=3, spatial 52x52 (deep enough for k8/s4 -> k4/s2 -> k3/s1),
    # num_actions=6 (stand-in for env.action_space.n).
    batch = 2
    input_shape = (3, 52, 52)
    num_actions = 6

    key = jax.random.PRNGKey(0)
    key_params, key_x = jax.random.split(key)

    params = init_dqn_params(key_params, input_shape, num_actions)
    prep = prepare_params(params, input_shape, num_actions)
    x = jax.random.uniform(key_x, (batch,) + input_shape, jnp.float32)

    fwd = jax.jit(make_dqn_forward(input_shape, num_actions))
    q_values = jax.block_until_ready(fwd(prep, x))

    assert q_values.shape == (batch, num_actions), q_values.shape
    assert q_values.dtype == jnp.float32
    assert bool(jnp.all(jnp.isfinite(q_values)))
    print("KERNEL_OK")
</pallas_src>

<mosaic_0001>
module attributes {stable_mosaic.version = 11 : i64} {
  func.func @_conv_tap_kernel(%arg0: i32, %arg1: memref<1x169x48xbf16, #tpu.memory_space<vmem>>, %arg2: memref<2x2x48x32xbf16, #tpu.memory_space<vmem>>, %arg3: memref<1x32xf32, #tpu.memory_space<vmem>>, %arg4: memref<1x155x32xbf16, #tpu.memory_space<vmem>>, %arg5: memref<155x32xf32, #tpu.memory_space<vmem>>) attributes {dimension_semantics = [#tpu.dimension_semantics<parallel>], iteration_bounds = array<i64: 2>, scalar_prefetch = 0 : i64, scratch_operands = 1 : i64, tpu.core_type = #tpu.core_type<tc>, window_params = [{transform_indices = @transform_0, window_bounds = array<i64: 1, 169, 48>}, {pipeline_mode = #tpu.pipeline_mode<synchronous>, transform_indices = @transform_1, window_bounds = array<i64: 2, 2, 48, 32>}, {pipeline_mode = #tpu.pipeline_mode<synchronous>, transform_indices = @transform_2, window_bounds = array<i64: 1, 32>}, {transform_indices = @transform_3, window_bounds = array<i64: 1, 155, 32>}]} {
    %cst = arith.constant 0.000000e+00 : f32
    %0 = vector.broadcast %cst : f32 to vector<155x32xf32>
    %c0 = arith.constant 0 : index
    %c0_0 = arith.constant 0 : index
    %1 = vector.load %arg5[%c0, %c0_0] : memref<155x32xf32, #tpu.memory_space<vmem>>, vector<155x32xf32>
    tpu.vector_store %arg5[%c0, %c0_0], %0 {strides = array<i32>} : memref<155x32xf32, #tpu.memory_space<vmem>>, vector<155x32xf32>,
    %c0_1 = arith.constant 0 : index
    %c0_2 = arith.constant 0 : index
    %2 = vector.load %arg5[%c0_1, %c0_2] : memref<155x32xf32, #tpu.memory_space<vmem>>, vector<155x32xf32>
    %c0_3 = arith.constant 0 : index
    %c0_4 = arith.constant 0 : index
    %c0_5 = arith.constant 0 : index
    %3 = vector.load %arg1[%c0_3, %c0_4, %c0_5] : memref<1x169x48xbf16, #tpu.memory_space<vmem>>, vector<1x155x48xbf16>
    %4 = vector.shape_cast %3 : vector<1x155x48xbf16> to vector<155x48xbf16>
    %c0_6 = arith.constant 0 : index
    %c0_7 = arith.constant 0 : index
    %c0_8 = arith.constant 0 : index
    %c0_9 = arith.constant 0 : index
    %5 = vector.load %arg2[%c0_6, %c0_7, %c0_8, %c0_9] : memref<2x2x48x32xbf16, #tpu.memory_space<vmem>>, vector<1x1x48x32xbf16>
    %6 = vector.shape_cast %5 : vector<1x1x48x32xbf16> to vector<48x32xbf16>
    %cst_10 = arith.constant dense<0.000000e+00> : vector<155x32xf32>
    %7 = tpu.matmul %4, %6, %cst_10 {dimension_numbers = #tpu.dot_dimension_numbers<[1], [0], [0], [1], [0, 0, 1, 1], [], []>} : vector<155x48xbf16>, vector<48x32xbf16>, vector<155x32xf32> -> vector<155x32xf32>
    %8 = arith.addf %2, %7 : vector<155x32xf32>
    %c0_11 = arith.constant 0 : index
    %c0_12 = arith.constant 0 : index
    %9 = vector.load %arg5[%c0_11, %c0_12] : memref<155x32xf32, #tpu.memory_space<vmem>>, vector<155x32xf32>
    tpu.vector_store %arg5[%c0_11, %c0_12], %8 {strides = array<i32>} : memref<155x32xf32, #tpu.memory_space<vmem>>, vector<155x32xf32>,
    %c0_13 = arith.constant 0 : index
    %c0_14 = arith.constant 0 : index
    %10 = vector.load %arg5[%c0_13, %c0_14] : memref<155x32xf32, #tpu.memory_space<vmem>>, vector<155x32xf32>
    %c0_15 = arith.constant 0 : index
    %c1 = arith.constant 1 : index
    %c0_16 = arith.constant 0 : index
    %11 = vector.load %arg1[%c0_15, %c1, %c0_16] : memref<1x169x48xbf16, #tpu.memory_space<vmem>>, vector<1x155x48xbf16>
    %12 = vector.shape_cast %11 : vector<1x155x48xbf16> to vector<155x48xbf16>
    %c0_17 = arith.constant 0 : index
    %c1_18 = arith.constant 1 : index
    %c0_19 = arith.constant 0 : index
    %c0_20 = arith.constant 0 : index
    %13 = vector.load %arg2[%c0_17, %c1_18, %c0_19, %c0_20] : memref<2x2x48x32xbf16, #tpu.memory_space<vmem>>, vector<1x1x48x32xbf16>
    %14 = vector.shape_cast %13 : vector<1x1x48x32xbf16> to vector<48x32xbf16>
    %cst_21 = arith.constant dense<0.000000e+00> : vector<155x32xf32>
    %15 = tpu.matmul %12, %14, %cst_21 {dimension_numbers = #tpu.dot_dimension_numbers<[1], [0], [0], [1], [0, 0, 1, 1], [], []>} : vector<155x48xbf16>, vector<48x32xbf16>, vector<155x32xf32> -> vector<155x32xf32>
    %16 = arith.addf %10, %15 : vector<155x32xf32>
    %c0_22 = arith.constant 0 : index
    %c0_23 = arith.constant 0 : index
    %17 = vector.load %arg5[%c0_22, %c0_23] : memref<155x32xf32, #tpu.memory_space<vmem>>, vector<155x32xf32>
    tpu.vector_store %arg5[%c0_22, %c0_23], %16 {strides = array<i32>} : memref<155x32xf32, #tpu.memory_space<vmem>>, vector<155x32xf32>,
    %c0_24 = arith.constant 0 : index
    %c0_25 = arith.constant 0 : index
    %18 = vector.load %arg5[%c0_24, %c0_25] : memref<155x32xf32, #tpu.memory_space<vmem>>, vector<155x32xf32>
    %c0_26 = arith.constant 0 : index
    %c13 = arith.constant 13 : index
    %c0_27 = arith.constant 0 : index
    %19 = vector.load %arg1[%c0_26, %c13, %c0_27] : memref<1x169x48xbf16, #tpu.memory_space<vmem>>, vector<1x155x48xbf16>
    %20 = vector.shape_cast %19 : vector<1x155x48xbf16> to vector<155x48xbf16>
    %c1_28 = arith.constant 1 : index
    %c0_29 = arith.constant 0 : index
    %c0_30 = arith.constant 0 : index
    %c0_31 = arith.constant 0 : index
    %21 = vector.load %arg2[%c1_28, %c0_29, %c0_30, %c0_31] : memref<2x2x48x32xbf16, #tpu.memory_space<vmem>>, vector<1x1x48x32xbf16>
    %22 = vector.shape_cast %21 : vector<1x1x48x32xbf16> to vector<48x32xbf16>
    %cst_32 = arith.constant dense<0.000000e+00> : vector<155x32xf32>
    %23 = tpu.matmul %20, %22, %cst_32 {dimension_numbers = #tpu.dot_dimension_numbers<[1], [0], [0], [1], [0, 0, 1, 1], [], []>} : vector<155x48xbf16>, vector<48x32xbf16>, vector<155x32xf32> -> vector<155x32xf32>
    %24 = arith.addf %18, %23 : vector<155x32xf32>
    %c0_33 = arith.constant 0 : index
    %c0_34 = arith.constant 0 : index
    %25 = vector.load %arg5[%c0_33, %c0_34] : memref<155x32xf32, #tpu.memory_space<vmem>>, vector<155x32xf32>
    tpu.vector_store %arg5[%c0_33, %c0_34], %24 {strides = array<i32>} : memref<155x32xf32, #tpu.memory_space<vmem>>, vector<155x32xf32>,
    %c0_35 = arith.constant 0 : index
    %c0_36 = arith.constant 0 : index
    %26 = vector.load %arg5[%c0_35, %c0_36] : memref<155x32xf32, #tpu.memory_space<vmem>>, vector<155x32xf32>
    %c0_37 = arith.constant 0 : index
    %c14 = arith.constant 14 : index
    %c0_38 = arith.constant 0 : index
    %27 = vector.load %arg1[%c0_37, %c14, %c0_38] : memref<1x169x48xbf16, #tpu.memory_space<vmem>>, vector<1x155x48xbf16>
    %28 = vector.shape_cast %27 : vector<1x155x48xbf16> to vector<155x48xbf16>
    %c1_39 = arith.constant 1 : index
    %c1_40 = arith.constant 1 : index
    %c0_41 = arith.constant 0 : index
    %c0_42 = arith.constant 0 : index
    %29 = vector.load %arg2[%c1_39, %c1_40, %c0_41, %c0_42] : memref<2x2x48x32xbf16, #tpu.memory_space<vmem>>, vector<1x1x48x32xbf16>
    %30 = vector.shape_cast %29 : vector<1x1x48x32xbf16> to vector<48x32xbf16>
    %cst_43 = arith.constant dense<0.000000e+00> : vector<155x32xf32>
    %31 = tpu.matmul %28, %30, %cst_43 {dimension_numbers = #tpu.dot_dimension_numbers<[1], [0], [0], [1], [0, 0, 1, 1], [], []>} : vector<155x48xbf16>, vector<48x32xbf16>, vector<155x32xf32> -> vector<155x32xf32>
    %32 = arith.addf %26, %31 : vector<155x32xf32>
    %c0_44 = arith.constant 0 : index
    %c0_45 = arith.constant 0 : index
    %33 = vector.load %arg5[%c0_44, %c0_45] : memref<155x32xf32, #tpu.memory_space<vmem>>, vector<155x32xf32>
    tpu.vector_store %arg5[%c0_44, %c0_45], %32 {strides = array<i32>} : memref<155x32xf32, #tpu.memory_space<vmem>>, vector<155x32xf32>,
    %c0_46 = arith.constant 0 : index
    %c0_47 = arith.constant 0 : index
    %34 = vector.load %arg5[%c0_46, %c0_47] : memref<155x32xf32, #tpu.memory_space<vmem>>, vector<155x32xf32>
    %c0_48 = arith.constant 0 : index
    %c0_49 = arith.constant 0 : index
    %35 = vector.load %arg3[%c0_48, %c0_49] : memref<1x32xf32, #tpu.memory_space<vmem>>, vector<1x32xf32>
    %36 = vector.broadcast %35 : vector<1x32xf32> to vector<155x32xf32>
    %37 = arith.addf %34, %36 : vector<155x32xf32>
    %cst_50 = arith.constant 0.000000e+00 : f32
    %38 = vector.broadcast %cst_50 : f32 to vector<155x32xf32>
    %39 = arith.maximumf %37, %38 : vector<155x32xf32>
    %40 = arith.truncf %39 : vector<155x32xf32> to vector<155x32xbf16>
    %c0_51 = arith.constant 0 : index
    %c0_52 = arith.constant 0 : index
    %c0_53 = arith.constant 0 : index
    %41 = vector.load %arg4[%c0_51, %c0_52, %c0_53] : memref<1x155x32xbf16, #tpu.memory_space<vmem>>, vector<1x155x32xbf16>
    %42 = vector.shape_cast %41 : vector<1x155x32xbf16> to vector<155x32xbf16>
    %43 = vector.shape_cast %40 : vector<155x32xbf16> to vector<1x155x32xbf16>
    tpu.vector_store %arg4[%c0_51, %c0_52, %c0_53], %43 {strides = array<i32>} : memref<1x155x32xbf16, #tpu.memory_space<vmem>>, vector<1x155x32xbf16>,
    return
  }
  func.func @transform_0(%arg0: i32) -> (i32, i32, i32) {
    %c0_i32 = arith.constant 0 : i32
    %c0_i32_0 = arith.constant 0 : i32
    %c0_i32_1 = arith.constant 0 : i32
    return %arg0, %c0_i32, %c0_i32_0 : i32, i32, i32
  }
  func.func @transform_1(%arg0: i32) -> (i32, i32, i32, i32) {
    %c0_i32 = arith.constant 0 : i32
    %c0_i32_0 = arith.constant 0 : i32
    %c0_i32_1 = arith.constant 0 : i32
    %c0_i32_2 = arith.constant 0 : i32
    %c0_i32_3 = arith.constant 0 : i32
    return %c0_i32, %c0_i32_0, %c0_i32_1, %c0_i32_2 : i32, i32, i32, i32
  }
  func.func @transform_2(%arg0: i32) -> (i32, i32) {
    %c0_i32 = arith.constant 0 : i32
    %c0_i32_0 = arith.constant 0 : i32
    %c0_i32_1 = arith.constant 0 : i32
    return %c0_i32, %c0_i32_0 : i32, i32
  }
  func.func @transform_3(%arg0: i32) -> (i32, i32, i32) {
    %c0_i32 = arith.constant 0 : i32
    %c0_i32_0 = arith.constant 0 : i32
    %c0_i32_1 = arith.constant 0 : i32
    return %arg0, %c0_i32, %c0_i32_0 : i32, i32, i32
  }
}

module attributes {stable_mosaic.version = 11 : i64} {
  func.func @_conv_tap_kernel(%arg0: i32, %arg1: memref<1x36x128xbf16, #tpu.memory_space<vmem>>, %arg2: memref<2x2x128x64xbf16, #tpu.memory_space<vmem>>, %arg3: memref<1x64xf32, #tpu.memory_space<vmem>>, %arg4: memref<1x29x64xbf16, #tpu.memory_space<vmem>>, %arg5: memref<29x64xf32, #tpu.memory_space<vmem>>) attributes {dimension_semantics = [#tpu.dimension_semantics<parallel>], iteration_bounds = array<i64: 2>, scalar_prefetch = 0 : i64, scratch_operands = 1 : i64, tpu.core_type = #tpu.core_type<tc>, window_params = [{transform_indices = @transform_0, window_bounds = array<i64: 1, 36, 128>}, {pipeline_mode = #tpu.pipeline_mode<synchronous>, transform_indices = @transform_1, window_bounds = array<i64: 2, 2, 128, 64>}, {pipeline_mode = #tpu.pipeline_mode<synchronous>, transform_indices = @transform_2, window_bounds = array<i64: 1, 64>}, {transform_indices = @transform_3, window_bounds = array<i64: 1, 29, 64>}]} {
    %cst = arith.constant 0.000000e+00 : f32
    %0 = vector.broadcast %cst : f32 to vector<29x64xf32>
    %c0 = arith.constant 0 : index
    %c0_0 = arith.constant 0 : index
    %1 = vector.load %arg5[%c0, %c0_0] : memref<29x64xf32, #tpu.memory_space<vmem>>, vector<29x64xf32>
    tpu.vector_store %arg5[%c0, %c0_0], %0 {strides = array<i32>} : memref<29x64xf32, #tpu.memory_space<vmem>>, vector<29x64xf32>,
    %c0_1 = arith.constant 0 : index
    %c0_2 = arith.constant 0 : index
    %2 = vector.load %arg5[%c0_1, %c0_2] : memref<29x64xf32, #tpu.memory_space<vmem>>, vector<29x64xf32>
    %c0_3 = arith.constant 0 : index
    %c0_4 = arith.constant 0 : index
    %c0_5 = arith.constant 0 : index
    %3 = vector.load %arg1[%c0_3, %c0_4, %c0_5] : memref<1x36x128xbf16, #tpu.memory_space<vmem>>, vector<1x29x128xbf16>
    %4 = vector.shape_cast %3 : vector<1x29x128xbf16> to vector<29x128xbf16>
    %c0_6 = arith.constant 0 : index
    %c0_7 = arith.constant 0 : index
    %c0_8 = arith.constant 0 : index
    %c0_9 = arith.constant 0 : index
    %5 = vector.load %arg2[%c0_6, %c0_7, %c0_8, %c0_9] : memref<2x2x128x64xbf16, #tpu.memory_space<vmem>>, vector<1x1x128x64xbf16>
    %6 = vector.shape_cast %5 : vector<1x1x128x64xbf16> to vector<128x64xbf16>
    %cst_10 = arith.constant dense<0.000000e+00> : vector<29x64xf32>
    %7 = tpu.matmul %4, %6, %cst_10 {dimension_numbers = #tpu.dot_dimension_numbers<[1], [0], [0], [1], [0, 0, 1, 1], [], []>} : vector<29x128xbf16>, vector<128x64xbf16>, vector<29x64xf32> -> vector<29x64xf32>
    %8 = arith.addf %2, %7 : vector<29x64xf32>
    %c0_11 = arith.constant 0 : index
    %c0_12 = arith.constant 0 : index
    %9 = vector.load %arg5[%c0_11, %c0_12] : memref<29x64xf32, #tpu.memory_space<vmem>>, vector<29x64xf32>
    tpu.vector_store %arg5[%c0_11, %c0_12], %8 {strides = array<i32>} : memref<29x64xf32, #tpu.memory_space<vmem>>, vector<29x64xf32>,
    %c0_13 = arith.constant 0 : index
    %c0_14 = arith.constant 0 : index
    %10 = vector.load %arg5[%c0_13, %c0_14] : memref<29x64xf32, #tpu.memory_space<vmem>>, vector<29x64xf32>
    %c0_15 = arith.constant 0 : index
    %c1 = arith.constant 1 : index
    %c0_16 = arith.constant 0 : index
    %11 = vector.load %arg1[%c0_15, %c1, %c0_16] : memref<1x36x128xbf16, #tpu.memory_space<vmem>>, vector<1x29x128xbf16>
    %12 = vector.shape_cast %11 : vector<1x29x128xbf16> to vector<29x128xbf16>
    %c0_17 = arith.constant 0 : index
    %c1_18 = arith.constant 1 : index
    %c0_19 = arith.constant 0 : index
    %c0_20 = arith.constant 0 : index
    %13 = vector.load %arg2[%c0_17, %c1_18, %c0_19, %c0_20] : memref<2x2x128x64xbf16, #tpu.memory_space<vmem>>, vector<1x1x128x64xbf16>
    %14 = vector.shape_cast %13 : vector<1x1x128x64xbf16> to vector<128x64xbf16>
    %cst_21 = arith.constant dense<0.000000e+00> : vector<29x64xf32>
    %15 = tpu.matmul %12, %14, %cst_21 {dimension_numbers = #tpu.dot_dimension_numbers<[1], [0], [0], [1], [0, 0, 1, 1], [], []>} : vector<29x128xbf16>, vector<128x64xbf16>, vector<29x64xf32> -> vector<29x64xf32>
    %16 = arith.addf %10, %15 : vector<29x64xf32>
    %c0_22 = arith.constant 0 : index
    %c0_23 = arith.constant 0 : index
    %17 = vector.load %arg5[%c0_22, %c0_23] : memref<29x64xf32, #tpu.memory_space<vmem>>, vector<29x64xf32>
    tpu.vector_store %arg5[%c0_22, %c0_23], %16 {strides = array<i32>} : memref<29x64xf32, #tpu.memory_space<vmem>>, vector<29x64xf32>,
    %c0_24 = arith.constant 0 : index
    %c0_25 = arith.constant 0 : index
    %18 = vector.load %arg5[%c0_24, %c0_25] : memref<29x64xf32, #tpu.memory_space<vmem>>, vector<29x64xf32>
    %c0_26 = arith.constant 0 : index
    %c6 = arith.constant 6 : index
    %c0_27 = arith.constant 0 : index
    %19 = vector.load %arg1[%c0_26, %c6, %c0_27] : memref<1x36x128xbf16, #tpu.memory_space<vmem>>, vector<1x29x128xbf16>
    %20 = vector.shape_cast %19 : vector<1x29x128xbf16> to vector<29x128xbf16>
    %c1_28 = arith.constant 1 : index
    %c0_29 = arith.constant 0 : index
    %c0_30 = arith.constant 0 : index
    %c0_31 = arith.constant 0 : index
    %21 = vector.load %arg2[%c1_28, %c0_29, %c0_30, %c0_31] : memref<2x2x128x64xbf16, #tpu.memory_space<vmem>>, vector<1x1x128x64xbf16>
    %22 = vector.shape_cast %21 : vector<1x1x128x64xbf16> to vector<128x64xbf16>
    %cst_32 = arith.constant dense<0.000000e+00> : vector<29x64xf32>
    %23 = tpu.matmul %20, %22, %cst_32 {dimension_numbers = #tpu.dot_dimension_numbers<[1], [0], [0], [1], [0, 0, 1, 1], [], []>} : vector<29x128xbf16>, vector<128x64xbf16>, vector<29x64xf32> -> vector<29x64xf32>
    %24 = arith.addf %18, %23 : vector<29x64xf32>
    %c0_33 = arith.constant 0 : index
    %c0_34 = arith.constant 0 : index
    %25 = vector.load %arg5[%c0_33, %c0_34] : memref<29x64xf32, #tpu.memory_space<vmem>>, vector<29x64xf32>
    tpu.vector_store %arg5[%c0_33, %c0_34], %24 {strides = array<i32>} : memref<29x64xf32, #tpu.memory_space<vmem>>, vector<29x64xf32>,
    %c0_35 = arith.constant 0 : index
    %c0_36 = arith.constant 0 : index
    %26 = vector.load %arg5[%c0_35, %c0_36] : memref<29x64xf32, #tpu.memory_space<vmem>>, vector<29x64xf32>
    %c0_37 = arith.constant 0 : index
    %c7 = arith.constant 7 : index
    %c0_38 = arith.constant 0 : index
    %27 = vector.load %arg1[%c0_37, %c7, %c0_38] : memref<1x36x128xbf16, #tpu.memory_space<vmem>>, vector<1x29x128xbf16>
    %28 = vector.shape_cast %27 : vector<1x29x128xbf16> to vector<29x128xbf16>
    %c1_39 = arith.constant 1 : index
    %c1_40 = arith.constant 1 : index
    %c0_41 = arith.constant 0 : index
    %c0_42 = arith.constant 0 : index
    %29 = vector.load %arg2[%c1_39, %c1_40, %c0_41, %c0_42] : memref<2x2x128x64xbf16, #tpu.memory_space<vmem>>, vector<1x1x128x64xbf16>
    %30 = vector.shape_cast %29 : vector<1x1x128x64xbf16> to vector<128x64xbf16>
    %cst_43 = arith.constant dense<0.000000e+00> : vector<29x64xf32>
    %31 = tpu.matmul %28, %30, %cst_43 {dimension_numbers = #tpu.dot_dimension_numbers<[1], [0], [0], [1], [0, 0, 1, 1], [], []>} : vector<29x128xbf16>, vector<128x64xbf16>, vector<29x64xf32> -> vector<29x64xf32>
    %32 = arith.addf %26, %31 : vector<29x64xf32>
    %c0_44 = arith.constant 0 : index
    %c0_45 = arith.constant 0 : index
    %33 = vector.load %arg5[%c0_44, %c0_45] : memref<29x64xf32, #tpu.memory_space<vmem>>, vector<29x64xf32>
    tpu.vector_store %arg5[%c0_44, %c0_45], %32 {strides = array<i32>} : memref<29x64xf32, #tpu.memory_space<vmem>>, vector<29x64xf32>,
    %c0_46 = arith.constant 0 : index
    %c0_47 = arith.constant 0 : index
    %34 = vector.load %arg5[%c0_46, %c0_47] : memref<29x64xf32, #tpu.memory_space<vmem>>, vector<29x64xf32>
    %c0_48 = arith.constant 0 : index
    %c0_49 = arith.constant 0 : index
    %35 = vector.load %arg3[%c0_48, %c0_49] : memref<1x64xf32, #tpu.memory_space<vmem>>, vector<1x64xf32>
    %36 = vector.broadcast %35 : vector<1x64xf32> to vector<29x64xf32>
    %37 = arith.addf %34, %36 : vector<29x64xf32>
    %cst_50 = arith.constant 0.000000e+00 : f32
    %38 = vector.broadcast %cst_50 : f32 to vector<29x64xf32>
    %39 = arith.maximumf %37, %38 : vector<29x64xf32>
    %40 = arith.truncf %39 : vector<29x64xf32> to vector<29x64xbf16>
    %c0_51 = arith.constant 0 : index
    %c0_52 = arith.constant 0 : index
    %c0_53 = arith.constant 0 : index
    %41 = vector.load %arg4[%c0_51, %c0_52, %c0_53] : memref<1x29x64xbf16, #tpu.memory_space<vmem>>, vector<1x29x64xbf16>
    %42 = vector.shape_cast %41 : vector<1x29x64xbf16> to vector<29x64xbf16>
    %43 = vector.shape_cast %40 : vector<29x64xbf16> to vector<1x29x64xbf16>
    tpu.vector_store %arg4[%c0_51, %c0_52, %c0_53], %43 {strides = array<i32>} : memref<1x29x64xbf16, #tpu.memory_space<vmem>>, vector<1x29x64xbf16>,
    return
  }
  func.func @transform_0(%arg0: i32) -> (i32, i32, i32) {
    %c0_i32 = arith.constant 0 : i32
    %c0_i32_0 = arith.constant 0 : i32
    %c0_i32_1 = arith.constant 0 : i32
    return %arg0, %c0_i32, %c0_i32_0 : i32, i32, i32
  }
  func.func @transform_1(%arg0: i32) -> (i32, i32, i32, i32) {
    %c0_i32 = arith.constant 0 : i32
    %c0_i32_0 = arith.constant 0 : i32
    %c0_i32_1 = arith.constant 0 : i32
    %c0_i32_2 = arith.constant 0 : i32
    %c0_i32_3 = arith.constant 0 : i32
    return %c0_i32, %c0_i32_0, %c0_i32_1, %c0_i32_2 : i32, i32, i32, i32
  }
  func.func @transform_2(%arg0: i32) -> (i32, i32) {
    %c0_i32 = arith.constant 0 : i32
    %c0_i32_0 = arith.constant 0 : i32
    %c0_i32_1 = arith.constant 0 : i32
    return %c0_i32, %c0_i32_0 : i32, i32
  }
  func.func @transform_3(%arg0: i32) -> (i32, i32, i32) {
    %c0_i32 = arith.constant 0 : i32
    %c0_i32_0 = arith.constant 0 : i32
    %c0_i32_1 = arith.constant 0 : i32
    return %arg0, %c0_i32, %c0_i32_0 : i32, i32, i32
  }
}

module attributes {stable_mosaic.version = 11 : i64} {
  func.func @_conv_tap_kernel(%arg0: i32, %arg1: memref<1x25x64xbf16, #tpu.memory_space<vmem>>, %arg2: memref<3x3x64x64xbf16, #tpu.memory_space<vmem>>, %arg3: memref<1x64xf32, #tpu.memory_space<vmem>>, %arg4: memref<1x13x64xbf16, #tpu.memory_space<vmem>>, %arg5: memref<13x64xf32, #tpu.memory_space<vmem>>) attributes {dimension_semantics = [#tpu.dimension_semantics<parallel>], iteration_bounds = array<i64: 2>, scalar_prefetch = 0 : i64, scratch_operands = 1 : i64, tpu.core_type = #tpu.core_type<tc>, window_params = [{transform_indices = @transform_0, window_bounds = array<i64: 1, 25, 64>}, {pipeline_mode = #tpu.pipeline_mode<synchronous>, transform_indices = @transform_1, window_bounds = array<i64: 3, 3, 64, 64>}, {pipeline_mode = #tpu.pipeline_mode<synchronous>, transform_indices = @transform_2, window_bounds = array<i64: 1, 64>}, {transform_indices = @transform_3, window_bounds = array<i64: 1, 13, 64>}]} {
    %cst = arith.constant 0.000000e+00 : f32
    %0 = vector.broadcast %cst : f32 to vector<13x64xf32>
    %c0 = arith.constant 0 : index
    %c0_0 = arith.constant 0 : index
    %1 = vector.load %arg5[%c0, %c0_0] : memref<13x64xf32, #tpu.memory_space<vmem>>, vector<13x64xf32>
    tpu.vector_store %arg5[%c0, %c0_0], %0 {strides = array<i32>} : memref<13x64xf32, #tpu.memory_space<vmem>>, vector<13x64xf32>,
    %c0_1 = arith.constant 0 : index
    %c0_2 = arith.constant 0 : index
    %2 = vector.load %arg5[%c0_1, %c0_2] : memref<13x64xf32, #tpu.memory_space<vmem>>, vector<13x64xf32>
    %c0_3 = arith.constant 0 : index
    %c0_4 = arith.constant 0 : index
    %c0_5 = arith.constant 0 : index
    %3 = vector.load %arg1[%c0_3, %c0_4, %c0_5] : memref<1x25x64xbf16, #tpu.memory_space<vmem>>, vector<1x13x64xbf16>
    %4 = vector.shape_cast %3 : vector<1x13x64xbf16> to vector<13x64xbf16>
    %c0_6 = arith.constant 0 : index
    %c0_7 = arith.constant 0 : index
    %c0_8 = arith.constant 0 : index
    %c0_9 = arith.constant 0 : index
    %5 = vector.load %arg2[%c0_6, %c0_7, %c0_8, %c0_9] : memref<3x3x64x64xbf16, #tpu.memory_space<vmem>>, vector<1x1x64x64xbf16>
    %6 = vector.shape_cast %5 : vector<1x1x64x64xbf16> to vector<64x64xbf16>
    %cst_10 = arith.constant dense<0.000000e+00> : vector<13x64xf32>
    %7 = tpu.matmul %4, %6, %cst_10 {dimension_numbers = #tpu.dot_dimension_numbers<[1], [0], [0], [1], [0, 0, 1, 1], [], []>} : vector<13x64xbf16>, vector<64x64xbf16>, vector<13x64xf32> -> vector<13x64xf32>
    %8 = arith.addf %2, %7 : vector<13x64xf32>
    %c0_11 = arith.constant 0 : index
    %c0_12 = arith.constant 0 : index
    %9 = vector.load %arg5[%c0_11, %c0_12] : memref<13x64xf32, #tpu.memory_space<vmem>>, vector<13x64xf32>
    tpu.vector_store %arg5[%c0_11, %c0_12], %8 {strides = array<i32>} : memref<13x64xf32, #tpu.memory_space<vmem>>, vector<13x64xf32>,
    %c0_13 = arith.constant 0 : index
    %c0_14 = arith.constant 0 : index
    %10 = vector.load %arg5[%c0_13, %c0_14] : memref<13x64xf32, #tpu.memory_space<vmem>>, vector<13x64xf32>
    %c0_15 = arith.constant 0 : index
    %c1 = arith.constant 1 : index
    %c0_16 = arith.constant 0 : index
    %11 = vector.load %arg1[%c0_15, %c1, %c0_16] : memref<1x25x64xbf16, #tpu.memory_space<vmem>>, vector<1x13x64xbf16>
    %12 = vector.shape_cast %11 : vector<1x13x64xbf16> to vector<13x64xbf16>
    %c0_17 = arith.constant 0 : index
    %c1_18 = arith.constant 1 : index
    %c0_19 = arith.constant 0 : index
    %c0_20 = arith.constant 0 : index
    %13 = vector.load %arg2[%c0_17, %c1_18, %c0_19, %c0_20] : memref<3x3x64x64xbf16, #tpu.memory_space<vmem>>, vector<1x1x64x64xbf16>
    %14 = vector.shape_cast %13 : vector<1x1x64x64xbf16> to vector<64x64xbf16>
    %cst_21 = arith.constant dense<0.000000e+00> : vector<13x64xf32>
    %15 = tpu.matmul %12, %14, %cst_21 {dimension_numbers = #tpu.dot_dimension_numbers<[1], [0], [0], [1], [0, 0, 1, 1], [], []>} : vector<13x64xbf16>, vector<64x64xbf16>, vector<13x64xf32> -> vector<13x64xf32>
    %16 = arith.addf %10, %15 : vector<13x64xf32>
    %c0_22 = arith.constant 0 : index
    %c0_23 = arith.constant 0 : index
    %17 = vector.load %arg5[%c0_22, %c0_23] : memref<13x64xf32, #tpu.memory_space<vmem>>, vector<13x64xf32>
    tpu.vector_store %arg5[%c0_22, %c0_23], %16 {strides = array<i32>} : memref<13x64xf32, #tpu.memory_space<vmem>>, vector<13x64xf32>,
    %c0_24 = arith.constant 0 : index
    %c0_25 = arith.constant 0 : index
    %18 = vector.load %arg5[%c0_24, %c0_25] : memref<13x64xf32, #tpu.memory_space<vmem>>, vector<13x64xf32>
    %c0_26 = arith.constant 0 : index
    %c2 = arith.constant 2 : index
    %c0_27 = arith.constant 0 : index
    %19 = vector.load %arg1[%c0_26, %c2, %c0_27] : memref<1x25x64xbf16, #tpu.memory_space<vmem>>, vector<1x13x64xbf16>
    %20 = vector.shape_cast %19 : vector<1x13x64xbf16> to vector<13x64xbf16>
    %c0_28 = arith.constant 0 : index
    %c2_29 = arith.constant 2 : index
    %c0_30 = arith.constant 0 : index
    %c0_31 = arith.constant 0 : index
    %21 = vector.load %arg2[%c0_28, %c2_29, %c0_30, %c0_31] : memref<3x3x64x64xbf16, #tpu.memory_space<vmem>>, vector<1x1x64x64xbf16>
    %22 = vector.shape_cast %21 : vector<1x1x64x64xbf16> to vector<64x64xbf16>
    %cst_32 = arith.constant dense<0.000000e+00> : vector<13x64xf32>
    %23 = tpu.matmul %20, %22, %cst_32 {dimension_numbers = #tpu.dot_dimension_numbers<[1], [0], [0], [1], [0, 0, 1, 1], [], []>} : vector<13x64xbf16>, vector<64x64xbf16>, vector<13x64xf32> -> vector<13x64xf32>
    %24 = arith.addf %18, %23 : vector<13x64xf32>
    %c0_33 = arith.constant 0 : index
    %c0_34 = arith.constant 0 : index
    %25 = vector.load %arg5[%c0_33, %c0_34] : memref<13x64xf32, #tpu.memory_space<vmem>>, vector<13x64xf32>
    tpu.vector_store %arg5[%c0_33, %c0_34], %24 {strides = array<i32>} : memref<13x64xf32, #tpu.memory_space<vmem>>, vector<13x64xf32>,
    %c0_35 = arith.constant 0 : index
    %c0_36 = arith.constant 0 : index
    %26 = vector.load %arg5[%c0_35, %c0_36] : memref<13x64xf32, #tpu.memory_space<vmem>>, vector<13x64xf32>
    %c0_37 = arith.constant 0 : index
    %c5 = arith.constant 5 : index
    %c0_38 = arith.constant 0 : index
    %27 = vector.load %arg1[%c0_37, %c5, %c0_38] : memref<1x25x64xbf16, #tpu.memory_space<vmem>>, vector<1x13x64xbf16>
    %28 = vector.shape_cast %27 : vector<1x13x64xbf16> to vector<13x64xbf16>
    %c1_39 = arith.constant 1 : index
    %c0_40 = arith.constant 0 : index
    %c0_41 = arith.constant 0 : index
    %c0_42 = arith.constant 0 : index
    %29 = vector.load %arg2[%c1_39, %c0_40, %c0_41, %c0_42] : memref<3x3x64x64xbf16, #tpu.memory_space<vmem>>, vector<1x1x64x64xbf16>
    %30 = vector.shape_cast %29 : vector<1x1x64x64xbf16> to vector<64x64xbf16>
    %cst_43 = arith.constant dense<0.000000e+00> : vector<13x64xf32>
    %31 = tpu.matmul %28, %30, %cst_43 {dimension_numbers = #tpu.dot_dimension_numbers<[1], [0], [0], [1], [0, 0, 1, 1], [], []>} : vector<13x64xbf16>, vector<64x64xbf16>, vector<13x64xf32> -> vector<13x64xf32>
    %32 = arith.addf %26, %31 : vector<13x64xf32>
    %c0_44 = arith.constant 0 : index
    %c0_45 = arith.constant 0 : index
    %33 = vector.load %arg5[%c0_44, %c0_45] : memref<13x64xf32, #tpu.memory_space<vmem>>, vector<13x64xf32>
    tpu.vector_store %arg5[%c0_44, %c0_45], %32 {strides = array<i32>} : memref<13x64xf32, #tpu.memory_space<vmem>>, vector<13x64xf32>,
    %c0_46 = arith.constant 0 : index
    %c0_47 = arith.constant 0 : index
    %34 = vector.load %arg5[%c0_46, %c0_47] : memref<13x64xf32, #tpu.memory_space<vmem>>, vector<13x64xf32>
    %c0_48 = arith.constant 0 : index
    %c6 = arith.constant 6 : index
    %c0_49 = arith.constant 0 : index
    %35 = vector.load %arg1[%c0_48, %c6, %c0_49] : memref<1x25x64xbf16, #tpu.memory_space<vmem>>, vector<1x13x64xbf16>
    %36 = vector.shape_cast %35 : vector<1x13x64xbf16> to vector<13x64xbf16>
    %c1_50 = arith.constant 1 : index
    %c1_51 = arith.constant 1 : index
    %c0_52 = arith.constant 0 : index
    %c0_53 = arith.constant 0 : index
    %37 = vector.load %arg2[%c1_50, %c1_51, %c0_52, %c0_53] : memref<3x3x64x64xbf16, #tpu.memory_space<vmem>>, vector<1x1x64x64xbf16>
    %38 = vector.shape_cast %37 : vector<1x1x64x64xbf16> to vector<64x64xbf16>
    %cst_54 = arith.constant dense<0.000000e+00> : vector<13x64xf32>
    %39 = tpu.matmul %36, %38, %cst_54 {dimension_numbers = #tpu.dot_dimension_numbers<[1], [0], [0], [1], [0, 0, 1, 1], [], []>} : vector<13x64xbf16>, vector<64x64xbf16>, vector<13x64xf32> -> vector<13x64xf32>
    %40 = arith.addf %34, %39 : vector<13x64xf32>
    %c0_55 = arith.constant 0 : index
    %c0_56 = arith.constant 0 : index
    %41 = vector.load %arg5[%c0_55, %c0_56] : memref<13x64xf32, #tpu.memory_space<vmem>>, vector<13x64xf32>
    tpu.vector_store %arg5[%c0_55, %c0_56], %40 {strides = array<i32>} : memref<13x64xf32, #tpu.memory_space<vmem>>, vector<13x64xf32>,
    %c0_57 = arith.constant 0 : index
    %c0_58 = arith.constant 0 : index
    %42 = vector.load %arg5[%c0_57, %c0_58] : memref<13x64xf32, #tpu.memory_space<vmem>>, vector<13x64xf32>
    %c0_59 = arith.constant 0 : index
    %c7 = arith.constant 7 : index
    %c0_60 = arith.constant 0 : index
    %43 = vector.load %arg1[%c0_59, %c7, %c0_60] : memref<1x25x64xbf16, #tpu.memory_space<vmem>>, vector<1x13x64xbf16>
    %44 = vector.shape_cast %43 : vector<1x13x64xbf16> to vector<13x64xbf16>
    %c1_61 = arith.constant 1 : index
    %c2_62 = arith.constant 2 : index
    %c0_63 = arith.constant 0 : index
    %c0_64 = arith.constant 0 : index
    %45 = vector.load %arg2[%c1_61, %c2_62, %c0_63, %c0_64] : memref<3x3x64x64xbf16, #tpu.memory_space<vmem>>, vector<1x1x64x64xbf16>
    %46 = vector.shape_cast %45 : vector<1x1x64x64xbf16> to vector<64x64xbf16>
    %cst_65 = arith.constant dense<0.000000e+00> : vector<13x64xf32>
    %47 = tpu.matmul %44, %46, %cst_65 {dimension_numbers = #tpu.dot_dimension_numbers<[1], [0], [0], [1], [0, 0, 1, 1], [], []>} : vector<13x64xbf16>, vector<64x64xbf16>, vector<13x64xf32> -> vector<13x64xf32>
    %48 = arith.addf %42, %47 : vector<13x64xf32>
    %c0_66 = arith.constant 0 : index
    %c0_67 = arith.constant 0 : index
    %49 = vector.load %arg5[%c0_66, %c0_67] : memref<13x64xf32, #tpu.memory_space<vmem>>, vector<13x64xf32>
    tpu.vector_store %arg5[%c0_66, %c0_67], %48 {strides = array<i32>} : memref<13x64xf32, #tpu.memory_space<vmem>>, vector<13x64xf32>,
    %c0_68 = arith.constant 0 : index
    %c0_69 = arith.constant 0 : index
    %50 = vector.load %arg5[%c0_68, %c0_69] : memref<13x64xf32, #tpu.memory_space<vmem>>, vector<13x64xf32>
    %c0_70 = arith.constant 0 : index
    %c10 = arith.constant 10 : index
    %c0_71 = arith.constant 0 : index
    %51 = vector.load %arg1[%c0_70, %c10, %c0_71] : memref<1x25x64xbf16, #tpu.memory_space<vmem>>, vector<1x13x64xbf16>
    %52 = vector.shape_cast %51 : vector<1x13x64xbf16> to vector<13x64xbf16>
    %c2_72 = arith.constant 2 : index
    %c0_73 = arith.constant 0 : index
    %c0_74 = arith.constant 0 : index
    %c0_75 = arith.constant 0 : index
    %53 = vector.load %arg2[%c2_72, %c0_73, %c0_74, %c0_75] : memref<3x3x64x64xbf16, #tpu.memory_space<vmem>>, vector<1x1x64x64xbf16>
    %54 = vector.shape_cast %53 : vector<1x1x64x64xbf16> to vector<64x64xbf16>
    %cst_76 = arith.constant dense<0.000000e+00> : vector<13x64xf32>
    %55 = tpu.matmul %52, %54, %cst_76 {dimension_numbers = #tpu.dot_dimension_numbers<[1], [0], [0], [1], [0, 0, 1, 1], [], []>} : vector<13x64xbf16>, vector<64x64xbf16>, vector<13x64xf32> -> vector<13x64xf32>
    %56 = arith.addf %50, %55 : vector<13x64xf32>
    %c0_77 = arith.constant 0 : index
    %c0_78 = arith.constant 0 : index
    %57 = vector.load %arg5[%c0_77, %c0_78] : memref<13x64xf32, #tpu.memory_space<vmem>>, vector<13x64xf32>
    tpu.vector_store %arg5[%c0_77, %c0_78], %56 {strides = array<i32>} : memref<13x64xf32, #tpu.memory_space<vmem>>, vector<13x64xf32>,
    %c0_79 = arith.constant 0 : index
    %c0_80 = arith.constant 0 : index
    %58 = vector.load %arg5[%c0_79, %c0_80] : memref<13x64xf32, #tpu.memory_space<vmem>>, vector<13x64xf32>
    %c0_81 = arith.constant 0 : index
    %c11 = arith.constant 11 : index
    %c0_82 = arith.constant 0 : index
    %59 = vector.load %arg1[%c0_81, %c11, %c0_82] : memref<1x25x64xbf16, #tpu.memory_space<vmem>>, vector<1x13x64xbf16>
    %60 = vector.shape_cast %59 : vector<1x13x64xbf16> to vector<13x64xbf16>
    %c2_83 = arith.constant 2 : index
    %c1_84 = arith.constant 1 : index
    %c0_85 = arith.constant 0 : index
    %c0_86 = arith.constant 0 : index
    %61 = vector.load %arg2[%c2_83, %c1_84, %c0_85, %c0_86] : memref<3x3x64x64xbf16, #tpu.memory_space<vmem>>, vector<1x1x64x64xbf16>
    %62 = vector.shape_cast %61 : vector<1x1x64x64xbf16> to vector<64x64xbf16>
    %cst_87 = arith.constant dense<0.000000e+00> : vector<13x64xf32>
    %63 = tpu.matmul %60, %62, %cst_87 {dimension_numbers = #tpu.dot_dimension_numbers<[1], [0], [0], [1], [0, 0, 1, 1], [], []>} : vector<13x64xbf16>, vector<64x64xbf16>, vector<13x64xf32> -> vector<13x64xf32>
    %64 = arith.addf %58, %63 : vector<13x64xf32>
    %c0_88 = arith.constant 0 : index
    %c0_89 = arith.constant 0 : index
    %65 = vector.load %arg5[%c0_88, %c0_89] : memref<13x64xf32, #tpu.memory_space<vmem>>, vector<13x64xf32>
    tpu.vector_store %arg5[%c0_88, %c0_89], %64 {strides = array<i32>} : memref<13x64xf32, #tpu.memory_space<vmem>>, vector<13x64xf32>,
    %c0_90 = arith.constant 0 : index
    %c0_91 = arith.constant 0 : index
    %66 = vector.load %arg5[%c0_90, %c0_91] : memref<13x64xf32, #tpu.memory_space<vmem>>, vector<13x64xf32>
    %c0_92 = arith.constant 0 : index
    %c12 = arith.constant 12 : index
    %c0_93 = arith.constant 0 : index
    %67 = vector.load %arg1[%c0_92, %c12, %c0_93] : memref<1x25x64xbf16, #tpu.memory_space<vmem>>, vector<1x13x64xbf16>
    %68 = vector.shape_cast %67 : vector<1x13x64xbf16> to vector<13x64xbf16>
    %c2_94 = arith.constant 2 : index
    %c2_95 = arith.constant 2 : index
    %c0_96 = arith.constant 0 : index
    %c0_97 = arith.constant 0 : index
    %69 = vector.load %arg2[%c2_94, %c2_95, %c0_96, %c0_97] : memref<3x3x64x64xbf16, #tpu.memory_space<vmem>>, vector<1x1x64x64xbf16>
    %70 = vector.shape_cast %69 : vector<1x1x64x64xbf16> to vector<64x64xbf16>
    %cst_98 = arith.constant dense<0.000000e+00> : vector<13x64xf32>
    %71 = tpu.matmul %68, %70, %cst_98 {dimension_numbers = #tpu.dot_dimension_numbers<[1], [0], [0], [1], [0, 0, 1, 1], [], []>} : vector<13x64xbf16>, vector<64x64xbf16>, vector<13x64xf32> -> vector<13x64xf32>
    %72 = arith.addf %66, %71 : vector<13x64xf32>
    %c0_99 = arith.constant 0 : index
    %c0_100 = arith.constant 0 : index
    %73 = vector.load %arg5[%c0_99, %c0_100] : memref<13x64xf32, #tpu.memory_space<vmem>>, vector<13x64xf32>
    tpu.vector_store %arg5[%c0_99, %c0_100], %72 {strides = array<i32>} : memref<13x64xf32, #tpu.memory_space<vmem>>, vector<13x64xf32>,
    %c0_101 = arith.constant 0 : index
    %c0_102 = arith.constant 0 : index
    %74 = vector.load %arg5[%c0_101, %c0_102] : memref<13x64xf32, #tpu.memory_space<vmem>>, vector<13x64xf32>
    %c0_103 = arith.constant 0 : index
    %c0_104 = arith.constant 0 : index
    %75 = vector.load %arg3[%c0_103, %c0_104] : memref<1x64xf32, #tpu.memory_space<vmem>>, vector<1x64xf32>
    %76 = vector.broadcast %75 : vector<1x64xf32> to vector<13x64xf32>
    %77 = arith.addf %74, %76 : vector<13x64xf32>
    %cst_105 = arith.constant 0.000000e+00 : f32
    %78 = vector.broadcast %cst_105 : f32 to vector<13x64xf32>
    %79 = arith.maximumf %77, %78 : vector<13x64xf32>
    %80 = arith.truncf %79 : vector<13x64xf32> to vector<13x64xbf16>
    %c0_106 = arith.constant 0 : index
    %c0_107 = arith.constant 0 : index
    %c0_108 = arith.constant 0 : index
    %81 = vector.load %arg4[%c0_106, %c0_107, %c0_108] : memref<1x13x64xbf16, #tpu.memory_space<vmem>>, vector<1x13x64xbf16>
    %82 = vector.shape_cast %81 : vector<1x13x64xbf16> to vector<13x64xbf16>
    %83 = vector.shape_cast %80 : vector<13x64xbf16> to vector<1x13x64xbf16>
    tpu.vector_store %arg4[%c0_106, %c0_107, %c0_108], %83 {strides = array<i32>} : memref<1x13x64xbf16, #tpu.memory_space<vmem>>, vector<1x13x64xbf16>,
    return
  }
  func.func @transform_0(%arg0: i32) -> (i32, i32, i32) {
    %c0_i32 = arith.constant 0 : i32
    %c0_i32_0 = arith.constant 0 : i32
    %c0_i32_1 = arith.constant 0 : i32
    return %arg0, %c0_i32, %c0_i32_0 : i32, i32, i32
  }
  func.func @transform_1(%arg0: i32) -> (i32, i32, i32, i32) {
    %c0_i32 = arith.constant 0 : i32
    %c0_i32_0 = arith.constant 0 : i32
    %c0_i32_1 = arith.constant 0 : i32
    %c0_i32_2 = arith.constant 0 : i32
    %c0_i32_3 = arith.constant 0 : i32
    return %c0_i32, %c0_i32_0, %c0_i32_1, %c0_i32_2 : i32, i32, i32, i32
  }
  func.func @transform_2(%arg0: i32) -> (i32, i32) {
    %c0_i32 = arith.constant 0 : i32
    %c0_i32_0 = arith.constant 0 : i32
    %c0_i32_1 = arith.constant 0 : i32
    return %c0_i32, %c0_i32_0 : i32, i32
  }
  func.func @transform_3(%arg0: i32) -> (i32, i32, i32) {
    %c0_i32 = arith.constant 0 : i32
    %c0_i32_0 = arith.constant 0 : i32
    %c0_i32_1 = arith.constant 0 : i32
    return %arg0, %c0_i32, %c0_i32_0 : i32, i32, i32
  }
}

module attributes {stable_mosaic.version = 11 : i64} {
  func.func @_head_kernel(%arg0: i32, %arg1: memref<2x576xbf16, #tpu.memory_space<vmem>>, %arg2: memref<576x512xbf16, #tpu.memory_space<vmem>>, %arg3: memref<1x512xf32, #tpu.memory_space<vmem>>, %arg4: memref<512x128xbf16, #tpu.memory_space<vmem>>, %arg5: memref<1x128xf32, #tpu.memory_space<vmem>>, %arg6: memref<2x128xf32, #tpu.memory_space<vmem>>) attributes {dimension_semantics = [#tpu.dimension_semantics<parallel>], iteration_bounds = array<i64: 1>, scalar_prefetch = 0 : i64, scratch_operands = 0 : i64, tpu.core_type = #tpu.core_type<tc>, window_params = [{transform_indices = @transform_0, window_bounds = array<i64: 2, 576>}, {pipeline_mode = #tpu.pipeline_mode<synchronous>, transform_indices = @transform_1, window_bounds = array<i64: 576, 512>}, {pipeline_mode = #tpu.pipeline_mode<synchronous>, transform_indices = @transform_2, window_bounds = array<i64: 1, 512>}, {pipeline_mode = #tpu.pipeline_mode<synchronous>, transform_indices = @transform_3, window_bounds = array<i64: 512, 128>}, {pipeline_mode = #tpu.pipeline_mode<synchronous>, transform_indices = @transform_4, window_bounds = array<i64: 1, 128>}, {transform_indices = @transform_5, window_bounds = array<i64: 2, 128>}]} {
    %c0 = arith.constant 0 : index
    %c0_0 = arith.constant 0 : index
    %0 = vector.load %arg1[%c0, %c0_0] : memref<2x576xbf16, #tpu.memory_space<vmem>>, vector<2x576xbf16>
    %c0_1 = arith.constant 0 : index
    %c0_2 = arith.constant 0 : index
    %1 = vector.load %arg2[%c0_1, %c0_2] : memref<576x512xbf16, #tpu.memory_space<vmem>>, vector<576x512xbf16>
    %cst = arith.constant dense<0.000000e+00> : vector<2x512xf32>
    %2 = tpu.matmul %0, %1, %cst {dimension_numbers = #tpu.dot_dimension_numbers<[1], [0], [0], [1], [0, 0, 1, 1], [], []>} : vector<2x576xbf16>, vector<576x512xbf16>, vector<2x512xf32> -> vector<2x512xf32>
    %c0_3 = arith.constant 0 : index
    %c0_4 = arith.constant 0 : index
    %3 = vector.load %arg3[%c0_3, %c0_4] : memref<1x512xf32, #tpu.memory_space<vmem>>, vector<1x512xf32>
    %4 = vector.broadcast %3 : vector<1x512xf32> to vector<2x512xf32>
    %5 = arith.addf %2, %4 : vector<2x512xf32>
    %cst_5 = arith.constant 0.000000e+00 : f32
    %6 = vector.broadcast %cst_5 : f32 to vector<2x512xf32>
    %7 = arith.maximumf %5, %6 : vector<2x512xf32>
    %8 = arith.truncf %7 : vector<2x512xf32> to vector<2x512xbf16>
    %c0_6 = arith.constant 0 : index
    %c0_7 = arith.constant 0 : index
    %9 = vector.load %arg4[%c0_6, %c0_7] : memref<512x128xbf16, #tpu.memory_space<vmem>>, vector<512x128xbf16>
    %cst_8 = arith.constant dense<0.000000e+00> : vector<2x128xf32>
    %10 = tpu.matmul %8, %9, %cst_8 {dimension_numbers = #tpu.dot_dimension_numbers<[1], [0], [0], [1], [0, 0, 1, 1], [], []>} : vector<2x512xbf16>, vector<512x128xbf16>, vector<2x128xf32> -> vector<2x128xf32>
    %c0_9 = arith.constant 0 : index
    %c0_10 = arith.constant 0 : index
    %11 = vector.load %arg5[%c0_9, %c0_10] : memref<1x128xf32, #tpu.memory_space<vmem>>, vector<1x128xf32>
    %12 = vector.broadcast %11 : vector<1x128xf32> to vector<2x128xf32>
    %13 = arith.addf %10, %12 : vector<2x128xf32>
    %c0_11 = arith.constant 0 : index
    %c0_12 = arith.constant 0 : index
    %14 = vector.load %arg6[%c0_11, %c0_12] : memref<2x128xf32, #tpu.memory_space<vmem>>, vector<2x128xf32>
    tpu.vector_store %arg6[%c0_11, %c0_12], %13 {strides = array<i32>} : memref<2x128xf32, #tpu.memory_space<vmem>>, vector<2x128xf32>,
    return
  }
  func.func @transform_0(%arg0: i32) -> (i32, i32) {
    %c0_i32 = arith.constant 0 : i32
    %c0_i32_0 = arith.constant 0 : i32
    return %arg0, %c0_i32 : i32, i32
  }
  func.func @transform_1(%arg0: i32) -> (i32, i32) {
    %c0_i32 = arith.constant 0 : i32
    %c0_i32_0 = arith.constant 0 : i32
    %c0_i32_1 = arith.constant 0 : i32
    return %c0_i32, %c0_i32_0 : i32, i32
  }
  func.func @transform_2(%arg0: i32) -> (i32, i32) {
    %c0_i32 = arith.constant 0 : i32
    %c0_i32_0 = arith.constant 0 : i32
    %c0_i32_1 = arith.constant 0 : i32
    return %c0_i32, %c0_i32_0 : i32, i32
  }
  func.func @transform_3(%arg0: i32) -> (i32, i32) {
    %c0_i32 = arith.constant 0 : i32
    %c0_i32_0 = arith.constant 0 : i32
    %c0_i32_1 = arith.constant 0 : i32
    return %c0_i32, %c0_i32_0 : i32, i32
  }
  func.func @transform_4(%arg0: i32) -> (i32, i32) {
    %c0_i32 = arith.constant 0 : i32
    %c0_i32_0 = arith.constant 0 : i32
    %c0_i32_1 = arith.constant 0 : i32
    return %c0_i32, %c0_i32_0 : i32, i32
  }
  func.func @transform_5(%arg0: i32) -> (i32, i32) {
    %c0_i32 = arith.constant 0 : i32
    %c0_i32_0 = arith.constant 0 : i32
    return %arg0, %c0_i32 : i32, i32
  }
}

</mosaic_0001>

<bundles_post_ra>
// kernel: forward.4
= control target key start
LH: loop header
LB: loop body
LE: loop exit
PB: predicated region body
PF: predicated region fallthrough
CT: control target
= control target key end

     0   :  { %s2220_s12 = smov 0   ;;  %s2575_s0 = inlined_call_operand.vmem [shape: bf16[2,169,48], index: 0, kind: input, shape index: {}]   ;;  %s2576_s1 = inlined_call_operand.vmem [shape: bf16[2,2,48,32], index: 1, kind: input, shape index: {}]   ;;  %s2577_s2 = inlined_call_operand.vmem [shape: f32[1,32], index: 2, kind: input, shape index: {}]   ;;  %s2578_s3 = inlined_call_operand.vmem [shape: bf16[2,155,32], index: 3, kind: output, shape index: {}]  }
   0x1 LB: > { %s1810_s13 = sadd.s32 4294967295, %s2197_s12   ;;  %p1814_p0 = scmp.ge.s32.totalorder %s2197_s12, 1  ;;  %s2197_s12 = sphi %s2220_s12, %s13_s12  }
   0x2   : > { %p137_p1 = scmp.lt.s32.totalorder %s2197_s12, 3 }
   0x4   : > { %p138_p2 = pnand %p1814_p0, %p137_p1 }
   0x5   : > { %p161_p3 = scmp.lt.s32.totalorder (!%p138_p2), %s1810_s13, 1 }
   0x6   : > { %141 = sbr.rel (%p138_p2) target bundleno = 323 (0x143), region = 32 }
   0xb   : > { %v2138_v0 = vld [vmem:[%s2576_s1 + $0x10] sm:$0xff]   ;;  %v2139_v1 = vld [vmem:[%s2576_s1 + $0x8] sm:$0xff]   ;;  %s2580_s13 = smov (!%p161_p3, %s1810_s13), 1  ;;  %v2141_v3 = vld [vmem:[%s2576_s1] sm:$0xff]   ;;  %vm308_vm0 = vcmask 392192   ;;  %vm172_vm1 = vcmask 261120  }
   0xc   : > { %2023 = vmatprep.subr.bf16.mxu0 %v2138_v0  ;;  %v2140_v2 = vld [vmem:[%s2576_s1 + $0x28] sm:$0xff]   ;;  %v2142_v4 = vld [vmem:[%s2576_s1 + $0x20] sm:$0xff]   ;;  %s2127_s24 = smul.u32 88, %s2580_s13  ;;  %v2146_v6 = vld [vmem:[%s2576_s1 + $0x18] sm:$0xff]   ;;  %v2199_v8 = vmov 0.0   ;;  %vm1359_vm4 = vcmask 1044480  }
   0xd   : > { %2024 = vmatpush3.bf16.msra.mxu0 %v2138_v0  ;;  %2049 = vmatprep.subr.bf16.mxu1 %v2140_v2  ;;  %v2145_v5 = vld [vmem:[%s2576_s1 + $0x40] sm:$0xff]   ;;  %175 = vst.msk [vmem:[#allocation2 + $0x10] sm:$0xff] %vm172_vm1, %v2199_v8  ;;  %173 = vst.msk [vmem:[#allocation2] sm:$0xff] %vm172_vm1, %v2199_v8  ;;  %vm589_vm2 = vsmask.f32 7424  ;;  %v2152_v21 = vld [vmem:[%s2576_s1 + $0x58] sm:$0xff]  }
   0xe   : > { %2025 = vmatprep.subr.bf16.mxu0 %v2139_v1  ;;  %2050 = vmatpush3.bf16.msra.mxu1 %v2140_v2  ;;  %s2249_s27 = scalar_lea.vmem %s2575_s0, %s2127_s24  ;;  %174 = vst.msk [vmem:[#allocation2 + $0x8] sm:$0xff] %vm172_vm1, %v2199_v8  ;;  %176 = vst.msk [vmem:[#allocation2 + $0x18] sm:$0xff] %vm172_vm1, %v2199_v8  ;;  %v2155_v35 = vld [vmem:[%s2576_s1 + $0x38] sm:$0xff]   ;;  %v2162_v52 = vld [vmem:[%s2576_s1 + $0x50] sm:$0xff]   ;;  %vm967_vm3 = vsmask.f32 5376 }
   0xf   : > { %2051 = vmatprep.subr.bf16.mxu1 %v2142_v4  ;;  %v2143_v7 = vld [vmem:[%s2249_s27] sm:$0xff]   ;;  %177 = vst.msk [vmem:[#allocation2 + $0x20] sm:$0xff] %vm172_vm1, %v2199_v8  ;;  %178 = vst.msk [vmem:[#allocation2 + $0x28] sm:$0xff] %vm172_vm1, %v2199_v8  ;;  %v2144_v9 = vld [vmem:[%s2249_s27 + $0x8] sm:$0xff]   ;;  %vm192_vm5 = vcmask 256000   ;;  %s2128_s19 = smul.u32 80, %s2580_s13 }
  0x10   : > { %179 = vst.msk [vmem:[#allocation2 + $0x30] sm:$0xff] %vm172_vm1, %v2199_v8  ;;  %180 = vst.msk [vmem:[#allocation2 + $0x38] sm:$0xff] %vm172_vm1, %v2199_v8  ;;  %2029 = vmatprep.mubr.msk.bf16.mxu0 %vm308_vm0, %v2143_v7  ;;  %v2147_v10 = vld [vmem:[%s2249_s27] sm:$0xff]   ;;  %v2148_v11 = vld [vmem:[%s2249_s27 + $0x8] sm:$0xff]   ;;  %vm1729_vm6 = vcmask 257024   ;;  %vm1749_vm7 = vcmask 254976  }
  0x11   : > { %2026 = vmatpush3.bf16.msra.mxu0 %v2139_v1  ;;  %181 = vst.msk [vmem:[#allocation2 + $0x40] sm:$0xff] %vm172_vm1, %v2199_v8  ;;  %182 = vst.msk [vmem:[#allocation2 + $0x48] sm:$0xff] %vm172_vm1, %v2199_v8  ;;  %v2149_v12 = vld [vmem:[%s2249_s27 + $0x10] sm:$0xff]   ;;  %v591_v13 = vshrl.u32 %v2147_v10, 16  ;;  %v593_v14 = vshll.u32 %v2147_v10, 16  ;;  %v598_v15 = vshll.u32 %v2148_v11, 16  ;;  %s2489_s21 = scalar_lea.vmem %s2578_s3, %s2128_s19 }
  0x12   : > { %183 = vst.msk [vmem:[#allocation2 + $0x50] sm:$0xff] %vm172_vm1, %v2199_v8  ;;  %184 = vst.msk [vmem:[#allocation2 + $0x58] sm:$0xff] %vm172_vm1, %v2199_v8  ;;  %2027 = vmatprep.subr.bf16.mxu0 %v2141_v3  ;;  %2052 = vmatpush3.bf16.msra.mxu1 %v2142_v4  ;;  %v602_v16 = vshrl.u32 %v2148_v11, 16  ;;  %v606_v17 = vshll.u32 %v2149_v12, 16  ;;  %v2150_v18 = vld [vmem:[%s2249_s27 + $0x10] sm:$0xff]   ;;  %v2153_v23 = vld [vmem:[%s2249_s27 + $0x18] sm:$0xff]  }
  0x13   : > { %185 = vst.msk [vmem:[#allocation2 + $0x60] sm:$0xff] %vm172_vm1, %v2199_v8  ;;  %186 = vst.msk [vmem:[#allocation2 + $0x68] sm:$0xff] %vm172_vm1, %v2199_v8  ;;  %2053 = vmatprep.subr.bf16.mxu1 %v2146_v6  ;;  %v595_v19 = vrot.slane %v593_v14, 1  ;;  %v600_v20 = vrot.slane %v598_v15, 1  ;;  %v2151_v26 = vld [vmem:[%s2249_s27 + $0x18] sm:$0xff]   ;;  %v610_v27 = vshrl.u32 %v2149_v12, 16 }
  0x14   : > { %187 = vst.msk [vmem:[#allocation2 + $0x70] sm:$0xff] %vm172_vm1, %v2199_v8  ;;  %188 = vst.msk [vmem:[#allocation2 + $0x78] sm:$0xff] %vm172_vm1, %v2199_v8  ;;  %v608_v22 = vrot.slane %v606_v17, 1  ;;  %v2154_v28 = vld [vmem:[%s2249_s27 + $0x20] sm:$0xff]   ;;  %v614_v29 = vshll.u32 %v2153_v23, 16  ;;  %v618_v30 = vshrl.u32 %v2153_v23, 16 }
  0x15   : > { %189 = vst.msk [vmem:[#allocation2 + $0x80] sm:$0xff] %vm172_vm1, %v2199_v8  ;;  %190 = vst.msk [vmem:[#allocation2 + $0x88] sm:$0xff] %vm172_vm1, %v2199_v8  ;;  %2028 = vmatpush3.bf16.msra.mxu0 %v2141_v3  ;;  %v596_v24 = vor.u32 %v595_v19, %v591_v13  ;;  %v604_v25 = vor.u32 %v602_v16, %v600_v20  ;;  %v622_v34 = vshll.u32 %v2154_v28, 16  ;;  %v2156_v37 = vld [vmem:[%s2249_s27 + $0x20] sm:$0xff]   ;;  %v2158_v41 = vld [vmem:[%s2249_s27 + $0x28] sm:$0xff]   ;;  %v626_v42 = vshrl.u32 %v2154_v28, 16 }
  0x16   : > { %191 = vst.msk [vmem:[#allocation2 + $0x90] sm:$0xff] %vm172_vm1, %v2199_v8  ;;  %2075 = vmatprep.subr.bf16.mxu0 %v2145_v5  ;;  %2054 = vmatpush3.bf16.msra.mxu1 %v2146_v6  ;;  %v612_v33 = vor.u32 %v610_v27, %v608_v22  ;;  %v616_v36 = vrot.slane %v614_v29, 1  ;;  %v2159_v43 = vld [vmem:[%s2249_s27 + $0x30] sm:$0xff]   ;;  %v630_v45 = vshll.u32 %v2158_v41, 16  ;;  %v2157_v46 = vld [vmem:[%s2249_s27 + $0x28] sm:$0xff]   ;;  %v634_v47 = vshrl.u32 %v2158_v41, 16 }
  0x17   : > { %2101 = vmatprep.subr.bf16.mxu1 %v2152_v21  ;;  %v601_v31 = vsel %vm589_vm2, %v596_v24, %v600_v20  ;;  %v609_v32 = vsel %vm589_vm2, %v604_v25, %v608_v22  ;;  %v624_v38 = vrot.slane %v622_v34, 1  ;;  %v638_v48 = vshll.u32 %v2159_v43, 16  ;;  %v2160_v51 = vld [vmem:[%s2249_s27 + $0x30] sm:$0xff]   ;;  %v2164_v57 = vld [vmem:[%s2249_s27 + $0x38] sm:$0xff]   ;;  %v2165_v59 = vld [vmem:[%s2249_s27 + $0x40] sm:$0xff]  }
  0x18   : > { %2030 = vmatmul.mubr.msk.bf16.vlgmr.msra.gmra.mxu0 %vm308_vm0, %v2144_v9  ;;  %2055 = vmatprep.mubr.msk.bf16.mxu1 %vm308_vm0, %v601_v31  ;;  %v617_v39 = vsel %vm589_vm2, %v612_v33, %v616_v36  ;;  %v620_v40 = vor.u32 %v618_v30, %v616_v36  ;;  %v632_v50 = vrot.slane %v630_v45, 1  ;;  %v2163_v54 = vld [vmem:[%s2576_s1 + $0x30] sm:$0xff]   ;;  %v642_v55 = vshrl.u32 %v2159_v43, 16  ;;  %v2169_v62 = vld [vmem:[%s2576_s1 + $0x48] sm:$0xff]   ;;  %v2161_v1 = vld [vmem:[%s2249_s27 + $0x38] sm:$0xff]  }
  0x19   : > { %2076 = vmatpush3.bf16.msra.mxu0 %v2145_v5  ;;  %2033 = vmatprep.mubr.msk.bf16.mxu0 %vm308_vm0, %v2150_v18  ;;  %v628_v44 = vor.u32 %v626_v42, %v624_v38  ;;  %v640_v56 = vrot.slane %v638_v48, 1  ;;  %v646_v61 = vshll.u32 %v2164_v57, 16  ;;  %v650_v63 = vshrl.u32 %v2164_v57, 16  ;;  %v2171_v3 = vld [vmem:[%s2249_s27 + $0xc] sm:$0xff]   ;;  %v2166_v5 = vld [vmem:[%s2249_s27 + $0x40] sm:$0xff]   ;;  %v2172_v9 = vld [vmem:[%s2249_s27 + $0x14] sm:$0xff]  }
  0x1a   : > { %2056 = vmatmul.mubr.msk.bf16.vlgmr.msra.gmra.mxu1 %vm308_vm0, %v609_v32  ;;  %2077 = vmatprep.subr.bf16.mxu0 %v2155_v35  ;;  %v625_v49 = vsel %vm589_vm2, %v620_v40, %v624_v38  ;;  %v636_v58 = vor.u32 %v634_v47, %v632_v50  ;;  %v654_v0 = vshll.u32 %v2165_v59, 16  ;;  %v2168_v6 = vld [vmem:[%s2249_s27 + $0x48] sm:$0x3f]   ;;  %v658_v7 = vshrl.u32 %v2165_v59, 16  ;;  %v2176_v36 = vld [vmem:[%s2249_s27 + $0x1c] sm:$0xff]   ;;  %v2181_v57 = vld [vmem:[%s2249_s27 + $0x34] sm:$0xff]  }
  0x1b   : > { %2102 = vmatpush3.bf16.msra.mxu1 %v2152_v21  ;;  %2059 = vmatprep.mubr.msk.bf16.mxu1 %vm308_vm0, %v617_v39  ;;  %v633_v53 = vsel %vm589_vm2, %v628_v44, %v632_v50  ;;  %v644_v60 = vor.u32 %v642_v55, %v640_v56  ;;  %v648_v2 = vrot.slane %v646_v61, 1  ;;  %v662_v12 = vshll.u32 %v2168_v6, 16  ;;  %v2170_v13 = vld [vmem:[%s2249_s27 + $0x4] sm:$0xfc]   ;;  %v2175_v50 = vld [vmem:[%s2249_s27 + $0x14] sm:$0xff]  }
  0x1c   : > { %2103 = vmatprep.subr.bf16.mxu1 %v2162_v52  ;;  %v641_v4 = vsel %vm589_vm2, %v636_v58, %v640_v56  ;;  %v656_v11 = vrot.slane %v654_v0, 1  ;;  %v977_v14 = vshrl.u32 %v2171_v3, 16  ;;  %v980_v15 = vshll.u32 %v2171_v3, 16  ;;  %v2167_v25 = vld [vmem:[%s2249_s27 + $0x48] sm:$0x3f]   ;;  %v2184_v0 = vld [vmem:[%s2249_s27 + $0x3c] sm:$0xff]  }
  0x1d   : > { %2078 = vmatpush3.bf16.msra.mxu0 %v2155_v35  ;;  %v649_v10 = vsel %vm589_vm2, %v644_v60, %v648_v2  ;;  %v652_v16 = vor.u32 %v650_v63, %v648_v2  ;;  %v664_v18 = vrot.slane %v662_v12, 1  ;;  %v986_v19 = vshrl.u32 %v2172_v9, 16  ;;  %v2173_v31 = vld [vmem:[%s2249_s27 + $0x4] sm:$0xf8]   ;;  %v2174_v35 = vld [vmem:[%s2249_s27 + $0xc] sm:$0xff]  }
  0x1e   : > { %2079 = vmatprep.subr.bf16.mxu0 %v2163_v54  ;;  %v660_v17 = vor.u32 %v658_v7, %v656_v11  ;;  %v969_v20 = vshrl.u32 %v2170_v13, 16  ;;  %v972_v21 = vshll.u32 %v2170_v13, 16  ;;  %v979_v22 = vrot.slane %v977_v14, 2  ;;  %v2177_v39 = vld [vmem:[%s2249_s27 + $0x24] sm:$0xff]   ;;  %v2182_v14 = vld [vmem:[%s2249_s27 + $0x2c] sm:$0xff]  }
  0x1f   : > { %2104 = vmatpush3.bf16.msra.mxu1 %v2162_v52  ;;  %v982_v23 = vrot.slane %v980_v15, 3  ;;  %v989_v24 = vshll.u32 %v2172_v9, 16  ;;  %v988_v29 = vrot.slane %v986_v19, 2  ;;  %v657_v30 = vsel %vm589_vm2, %v652_v16, %v656_v11  ;;  %v2179_v11 = vld [vmem:[%s2249_s27 + $0x24] sm:$0xff]   ;;  %193 = vst.msk [vmem:[#allocation2 + $0x98] sm:$0x7] %vm192_vm5, %v2199_v8 }
  0x20   : > { %2034 = vmatmul.mubr.msk.bf16.gmra.mxu0 %vm308_vm0, %v2151_v26  ;;  %2105 = vmatprep.subr.bf16.mxu1 %v2169_v62  ;;  %v971_v26 = vrot.slane %v969_v20, 2  ;;  %v974_v27 = vrot.slane %v972_v21, 3  ;;  %v665_v32 = vsel %vm589_vm2, %v660_v17, %v664_v18  ;;  %v995_v40 = vshrl.u32 %v2176_v36, 16  ;;  %v2185_v17 = vld [vmem:[%s2249_s27 + $0x44] sm:$0xff]   ;;  %v2188_v21 = vld [vmem:[%s2249_s27 + $0x4c] sm:$0xff]  }
  0x21   : > { %2037 = vmatprep.mubr.msk.bf16.mxu0 %vm308_vm0, %v2156_v37  ;;  %2080 = vmatpush3.bf16.msra.mxu0 %v2163_v54  ;;  %v983_v28 = vor.u32 %v982_v23, %v979_v22  ;;  %v991_v34 = vrot.slane %v989_v24, 3  ;;  %v666_v37 = vshrl.u32 %v2168_v6, 16  ;;  %v998_v41 = vshll.u32 %v2176_v36, 16  ;;  %v2178_v54 = vld [vmem:[%s2249_s27 + $0x1c] sm:$0xff]  }
  0x22   : > { %2060 = vmatmul.mubr.msk.bf16.gmra.mxu1 %vm308_vm0, %v625_v49  ;;  %v975_v33 = vor.u32 %v974_v27, %v971_v26  ;;  %v1360_v43 = vrot.slane %v2173_v31, 3  ;;  %v1361_v44 = vrot.slane %v2174_v35, 3  ;;  %v997_v45 = vrot.slane %v995_v40, 2  ;;  %v2183_v31 = vld [vmem:[%s2249_s27 + $0x34] sm:$0xff]  }
  0x23   : > { %2063 = vmatprep.mubr.msk.bf16.mxu1 %vm308_vm0, %v633_v53  ;;  %2106 = vmatpush3.bf16.msra.mxu1 %v2169_v62  ;;  %v992_v42 = vor.u32 %v991_v34, %v988_v29  ;;  %v1004_v47 = vshrl.u32 %v2177_v39, 16  ;;  %v1007_v48 = vshll.u32 %v2177_v39, 16  ;;  %v668_v49 = vor.u32 %v666_v37, %v664_v18 }
  0x24   : > { %v984_v38 = vsel %vm967_vm3, %v975_v33, %v983_v28  ;;  %v1362_v53 = vsel %vm1359_vm4, %v1360_v43, %v1361_v44  ;;  %v1365_v2 = vrot.slane %v2178_v54, 3  ;;  %v1022_v3 = vshrl.u32 %v2181_v57, 16  ;;  %v2186_v33 = vld [vmem:[%s2249_s27 + $0x3c] sm:$0xff]  }
  0x25   : > { %v993_v58 = vsel %vm967_vm3, %v983_v28, %v992_v42  ;;  %v1006_v59 = vrot.slane %v1004_v47, 2  ;;  %v1009_v60 = vrot.slane %v1007_v48, 3  ;;  %v1031_v7 = vshrl.u32 %v2184_v0, 16  ;;  %v2189_v47 = vld [vmem:[%s2249_s27 + $0x4c] sm:$0xff]  }
  0x26   : > { %v1034_v9 = vshll.u32 %v2184_v0, 16  ;;  %v1024_v13 = vrot.slane %v1022_v3, 2  ;;  %v1367_v22 = vrot.slane %v2179_v11, 3  ;;  %v1369_v23 = vrot.slane %v2182_v14, 3  ;;  %v201_v14 = vld [vmem:[#allocation2 + $0x38] sm:$0xff] }
  0x27   : > { %v1033_v19 = vrot.slane %v1031_v7, 2  ;;  %v1043_v26 = vshll.u32 %v2185_v17, 16  ;;  %v1049_v28 = vshrl.u32 %v2188_v21, 16  ;;  %v1052_v29 = vshll.u32 %v2188_v21, 16 }
  0x28   : > { %2038 = vmatmul.mubr.msk.bf16.gmra.mxu0 %vm308_vm0, %v2157_v46  ;;  %v1000_v46 = vrot.slane %v998_v41, 3  ;;  %v1036_v20 = vrot.slane %v1034_v9, 3  ;;  %v1371_v40 = vrot.slane %v2183_v31, 3  ;;  %v1373_v41 = vrot.slane %v2186_v33, 3  ;;  %v198_v9 = vld [vmem:[#allocation2 + $0x20] sm:$0xff] }
  0x29   : > { %2041 = vmatprep.mubr.msk.bf16.mxu0 %vm308_vm0, %v2160_v51  ;;  %v2180_v51 = vld [vmem:[%s2249_s27 + $0x2c] sm:$0xff]   ;;  %v1045_v36 = vrot.slane %v1043_v26, 3  ;;  %v1054_v39 = vrot.slane %v1052_v29, 3  ;;  %vm1750_vm8 = vsmask.f32 1280 }
  0x2a   : > { %2064 = vmatmul.mubr.msk.bf16.gmra.mxu1 %vm308_vm0, %v641_v4  ;;  %v1001_v52 = vor.u32 %v1000_v46, %v997_v45  ;;  %v1013_v55 = vshrl.u32 %v2180_v51, 16  ;;  %v1016_v56 = vshll.u32 %v2180_v51, 16  ;;  %v1010_v4 = vor.u32 %v1009_v60, %v1006_v59  ;;  %v2187_v45 = vld [vmem:[%s2249_s27 + $0x44] sm:$0xff]   ;;  %v204_v26 = vld [vmem:[#allocation2 + $0x50] sm:$0xff]  ;;  %vm1751_vm9 = vmand %vm1749_vm7, %vm1750_vm8 }
  0x2b   : > { %2067 = vmatprep.mubr.msk.bf16.mxu1 %vm308_vm0, %v649_v10  ;;  %v1037_v27 = vor.u32 %v1036_v20, %v1033_v19  ;;  %v1374_v46 = vsel %vm1359_vm4, %v1371_v40, %v1373_v41  ;;  %v1377_v51 = vrot.slane %v2189_v47, 3  ;;  %v194_v59 = vld [vmem:[#allocation2] sm:$0xff]  ;;  %v199_v20 = vld [vmem:[#allocation2 + $0x28] sm:$0xff] }
  0x2c   : > { %v1002_v61 = vsel %vm967_vm3, %v992_v42, %v1001_v52  ;;  %v1015_v62 = vrot.slane %v1013_v55, 2  ;;  %v1018_v63 = vrot.slane %v1016_v56, 3  ;;  %v1011_v15 = vsel %vm967_vm3, %v1001_v52, %v1010_v4 }
  0x2e   : > { %v1019_v6 = vor.u32 %v1018_v63, %v1015_v62  ;;  %v197_v62 = vld [vmem:[#allocation2 + $0x18] sm:$0xff] }
  0x30   : > { %2042 = vmatmul.mubr.msk.bf16.gmra.mxu0 %vm308_vm0, %v2161_v1  ;;  %v1363_v1 = vrot.slane %v2175_v50, 3  ;;  %v1020_v18 = vsel %vm967_vm3, %v1010_v4, %v1019_v6  ;;  %v1375_v50 = vrot.slane %v2187_v45, 3 }
  0x31   : > { %2045 = vmatprep.mubr.msk.bf16.mxu0 %vm308_vm0, %v2166_v5  ;;  %v1025_v5 = vshll.u32 %v2181_v57, 16  ;;  %v196_v57 = vld [vmem:[#allocation2 + $0x10] sm:$0xff] }
  0x32   : > { %2068 = vmatmul.mubr.msk.bf16.gmra.mxu1 %vm308_vm0, %v657_v30  ;;  %v1364_v10 = vsel %vm1359_vm4, %v1361_v44, %v1363_v1  ;;  %v1366_v12 = vsel %vm1359_vm4, %v1363_v1, %v1365_v2  ;;  %v1368_v30 = vsel %vm1359_vm4, %v1365_v2, %v1367_v22  ;;  %v1372_v44 = vsel %vm1359_vm4, %v1369_v23, %v1371_v40  ;;  %v195_v1 = vld [vmem:[#allocation2 + $0x8] sm:$0xff] }
  0x33   : > { %2071 = vmatprep.mubr.msk.bf16.mxu1 %vm308_vm0, %v665_v32  ;;  %v1027_v16 = vrot.slane %v1025_v5, 3  ;;  %v1370_v32 = vsel %vm1359_vm4, %v1367_v22, %v1369_v23  ;;  %v1376_v52 = vsel %vm1359_vm4, %v1373_v41, %v1375_v50  ;;  %v1378_v54 = vsel %vm1359_vm4, %v1375_v50, %v1377_v51  ;;  %v200_v5 = vld [vmem:[#allocation2 + $0x30] sm:$0xff] }
  0x34   : > { %v208_v50 = vld [vmem:[#allocation2 + $0x70] sm:$0xff] }
  0x35   : > { %v1028_v24 = vor.u32 %v1027_v16, %v1024_v13 }
  0x37   : > { %v1029_v34 = vsel %vm967_vm3, %v1019_v6, %v1028_v24  ;;  %v1038_v37 = vsel %vm967_vm3, %v1028_v24, %v1037_v27 }
  0x38   : > { %2046 = vmatmul.mubr.msk.bf16.gmra.mxu0 %vm308_vm0, %v2167_v25  ;;  %v1040_v25 = vshrl.u32 %v2185_v17, 16 }
  0x39   : > { %2081 = vmatprep.mubr.msk.bf16.mxu0 %vm308_vm0, %v984_v38  ;;  %v1051_v38 = vrot.slane %v1049_v28, 2 }
  0x3a   : > { %2072 = vmatmul.mubr.msk.bf16.gmra.mxu1 %vm308_vm0, %v668_v49  ;;  %v1042_v35 = vrot.slane %v1040_v25, 2 }
  0x3b   : > { %2107 = vmatprep.mubr.msk.bf16.mxu1 %vm308_vm0, %v1362_v53  ;;  %v1055_v43 = vor.u32 %v1054_v39, %v1051_v38  ;;  %v2190_v53 = vld [vmem:[%s2249_s27 + $0x54] ss:$0 sps:$4 sm:$0x11]   ;;  %v205_v38 = vld [vmem:[#allocation2 + $0x58] sm:$0xff] }
  0x3c   : > { %v1046_v42 = vor.u32 %v1045_v36, %v1042_v35  ;;  %v1379_v55 = vrot.slane %v2190_v53, 3 }
  0x3e   : > { %v1047_v48 = vsel %vm967_vm3, %v1037_v27, %v1046_v42  ;;  %v1056_v49 = vsel %vm967_vm3, %v1046_v42, %v1055_v43  ;;  %v1380_v56 = vsel %vm1359_vm4, %v1377_v51, %v1379_v55 }
  0x40   : > { %2082 = vmatmul.mubr.msk.bf16.vlgmr.msra.gmra.mxu0 %vm308_vm0, %v993_v58 }
  0x41   : > { %2085 = vmatprep.mubr.msk.bf16.mxu0 %vm308_vm0, %v1002_v61 }
  0x42   : > { %2108 = vmatmul.mubr.msk.bf16.vlgmr.msra.gmra.mxu1 %vm308_vm0, %v1364_v10 }
  0x43   : > { %2111 = vmatprep.mubr.msk.bf16.mxu1 %vm308_vm0, %v1366_v12 }
  0x48   : > { %2086 = vmatmul.mubr.msk.bf16.gmra.mxu0 %vm308_vm0, %v1011_v15 }
  0x49   : > { %2089 = vmatprep.mubr.msk.bf16.mxu0 %vm308_vm0, %v1020_v18 }
  0x4a   : > { %2112 = vmatmul.mubr.msk.bf16.gmra.mxu1 %vm308_vm0, %v1368_v30 }
  0x4b   : > { %2115 = vmatprep.mubr.msk.bf16.mxu1 %vm308_vm0, %v1370_v32  ;;  %v202_v32 = vld [vmem:[#allocation2 + $0x40] sm:$0xff] }
  0x50   : > { %2090 = vmatmul.mubr.msk.bf16.gmra.mxu0 %vm308_vm0, %v1029_v34 }
  0x51   : > { %2093 = vmatprep.mubr.msk.bf16.mxu0 %vm308_vm0, %v1038_v37 }
  0x52   : > { %2116 = vmatmul.mubr.msk.bf16.gmra.mxu1 %vm308_vm0, %v1372_v44  ;;  %v203_v44 = vld [vmem:[#allocation2 + $0x48] sm:$0xff] }
  0x53   : > { %2119 = vmatprep.mubr.msk.bf16.mxu1 %vm308_vm0, %v1374_v46 }
  0x58   : > { %2094 = vmatmul.mubr.msk.bf16.gmra.mxu0 %vm308_vm0, %v1047_v48 }
  0x59   : > { %2097 = vmatprep.mubr.msk.bf16.mxu0 %vm308_vm0, %v1056_v49 }
  0x5a   : > { %2120 = vmatmul.mubr.msk.bf16.gmra.mxu1 %vm308_vm0, %v1376_v52 }
  0x5b   : > { %2123 = vmatprep.mubr.msk.bf16.mxu1 %vm308_vm0, %v1378_v54 }
  0x60   : > { %2098 = vmatmul.mubr.msk.bf16.gmra.mxu0 %vm308_vm0, %v1055_v43 }
  0x62   : > { %2124 = vmatmul.mubr.msk.bf16.gmra.mxu1 %vm308_vm0, %v1380_v56  ;;  %v206_v56 = vld [vmem:[#allocation2 + $0x60] sm:$0xff] }
  0xd8   : > { %v2031_v58 = vpop.f32.mrf.mxu0 }
  0xd9   : > { %v454_v60 = vadd.f32 %v2031_v58, %v196_v57 }
  0xda   : > { %v373_v61 = vpop.f32.mrf.mxu0  ;;  %v2057_v3 = vpop.f32.mrf.mxu1 }
  0xdb   : > { %474 = vst.msk [vmem:[#allocation2 + $0x10] sm:$0xff] %vm172_vm1, %v454_v60  ;;  %v452_v63 = vadd.f32 %v373_v61, %v194_v59 }
  0xdc   : > { %v2032_v0 = vpop.f32.mrf.mxu0  ;;  %v751_v6 = vpop.f32.mrf.mxu1 }
  0xdd   : > { %472 = vst.msk [vmem:[#allocation2] sm:$0xff] %vm172_vm1, %v452_v63  ;;  %v455_v2 = vadd.f32 %v2032_v0, %v197_v62  ;;  %v209_v62 = vld [vmem:[#allocation2 + $0x78] sm:$0xff] }
  0xde   : > { %v376_v4 = vpop.f32.mrf.mxu0  ;;  %v2058_v12 = vpop.f32.mrf.mxu1 }
  0xdf   : > { %475 = vst.msk [vmem:[#allocation2 + $0x18] sm:$0xff] %vm172_vm1, %v455_v2  ;;  %v453_v8 = vadd.f32 %v376_v4, %v195_v1  ;;  %v207_v4 = vld [vmem:[#allocation2 + $0x68] sm:$0xff] }
  0xe0   : > { %v2035_v7 = vpop.f32.mrf.mxu0  ;;  %v754_v18 = vpop.f32.mrf.mxu1 }
  0xe1   : > { %473 = vst.msk [vmem:[#allocation2 + $0x8] sm:$0xff] %vm172_vm1, %v453_v8  ;;  %v458_v10 = vadd.f32 %v2035_v7, %v200_v5 }
  0xe2   : > { %v494_v11 = vld [vmem:[#allocation2 + $0x10] sm:$0xff]  ;;  %v389_v13 = vpop.f32.mrf.mxu0  ;;  %v2061_v24 = vpop.f32.mrf.mxu1 }
  0xe3   : > { %v832_v15 = vadd.f32 %v2057_v3, %v494_v11  ;;  %478 = vst.msk [vmem:[#allocation2 + $0x30] sm:$0xff] %vm172_vm1, %v458_v10  ;;  %v456_v16 = vadd.f32 %v389_v13, %v198_v9  ;;  %v212_v10 = vld [vmem:[#allocation2 + $0x90] sm:$0xff] }
  0xe4   : > { %v492_v17 = vld [vmem:[#allocation2] sm:$0xff]  ;;  %v2036_v19 = vpop.f32.mrf.mxu0  ;;  %v767_v30 = vpop.f32.mrf.mxu1 }
  0xe5   : > { %852 = vst.msk [vmem:[#allocation2 + $0x10] sm:$0xff] %vm172_vm1, %v832_v15  ;;  %v830_v21 = vadd.f32 %v751_v6, %v492_v17  ;;  %476 = vst.msk [vmem:[#allocation2 + $0x20] sm:$0xff] %vm172_vm1, %v456_v16  ;;  %v459_v22 = vadd.f32 %v2036_v19, %v201_v14  ;;  %v210_v16 = vld [vmem:[#allocation2 + $0x80] sm:$0xff] }
  0xe6   : > { %v495_v23 = vld [vmem:[#allocation2 + $0x18] sm:$0xff]  ;;  %v392_v25 = vpop.f32.mrf.mxu0  ;;  %v2062_v36 = vpop.f32.mrf.mxu1 }
  0xe7   : > { %850 = vst.msk [vmem:[#allocation2] sm:$0xff] %vm172_vm1, %v830_v21  ;;  %v833_v27 = vadd.f32 %v2058_v12, %v495_v23  ;;  %479 = vst.msk [vmem:[#allocation2 + $0x38] sm:$0xff] %vm172_vm1, %v459_v22  ;;  %v457_v28 = vadd.f32 %v392_v25, %v199_v20  ;;  %v213_v22 = vld [vmem:[#allocation2 + $0x98] sm:$0x7] }
  0xe8   : > { %v493_v29 = vld [vmem:[#allocation2 + $0x8] sm:$0xff]  ;;  %v2039_v31 = vpop.f32.mrf.mxu0  ;;  %v770_v42 = vpop.f32.mrf.mxu1 }
  0xe9   : > { %853 = vst.msk [vmem:[#allocation2 + $0x18] sm:$0xff] %vm172_vm1, %v833_v27  ;;  %v831_v33 = vadd.f32 %v754_v18, %v493_v29  ;;  %477 = vst.msk [vmem:[#allocation2 + $0x28] sm:$0xff] %vm172_vm1, %v457_v28  ;;  %v462_v34 = vadd.f32 %v2039_v31, %v204_v26  ;;  %v211_v28 = vld [vmem:[#allocation2 + $0x88] sm:$0xff] }
  0xea   : > { %v498_v35 = vld [vmem:[#allocation2 + $0x30] sm:$0xff]  ;;  %v405_v37 = vpop.f32.mrf.mxu0  ;;  %v2065_v48 = vpop.f32.mrf.mxu1 }
  0xeb   : > { %851 = vst.msk [vmem:[#allocation2 + $0x8] sm:$0xff] %vm172_vm1, %v831_v33  ;;  %v836_v39 = vadd.f32 %v2061_v24, %v498_v35  ;;  %482 = vst.msk [vmem:[#allocation2 + $0x50] sm:$0xff] %vm172_vm1, %v462_v34  ;;  %v460_v40 = vadd.f32 %v405_v37, %v202_v32 }
  0xec   : > { %v496_v41 = vld [vmem:[#allocation2 + $0x20] sm:$0xff]  ;;  %v2040_v43 = vpop.f32.mrf.mxu0  ;;  %v783_v54 = vpop.f32.mrf.mxu1 }
  0xed   : > { %856 = vst.msk [vmem:[#allocation2 + $0x30] sm:$0xff] %vm172_vm1, %v836_v39  ;;  %v834_v45 = vadd.f32 %v767_v30, %v496_v41  ;;  %480 = vst.msk [vmem:[#allocation2 + $0x40] sm:$0xff] %vm172_vm1, %v460_v40  ;;  %v463_v46 = vadd.f32 %v2040_v43, %v205_v38  ;;  %v872_v38 = vld [vmem:[#allocation2 + $0x10] sm:$0xff] }
  0xee   : > { %v499_v47 = vld [vmem:[#allocation2 + $0x38] sm:$0xff]  ;;  %v408_v49 = vpop.f32.mrf.mxu0  ;;  %v2066_v60 = vpop.f32.mrf.mxu1 }
  0xef   : > { %854 = vst.msk [vmem:[#allocation2 + $0x20] sm:$0xff] %vm172_vm1, %v834_v45  ;;  %v837_v51 = vadd.f32 %v2062_v36, %v499_v47  ;;  %483 = vst.msk [vmem:[#allocation2 + $0x58] sm:$0xff] %vm172_vm1, %v463_v46  ;;  %v461_v52 = vadd.f32 %v408_v49, %v203_v44  ;;  %v870_v44 = vld [vmem:[#allocation2] sm:$0xff] }
  0xf0   : > { %v497_v53 = vld [vmem:[#allocation2 + $0x28] sm:$0xff]  ;;  %v2043_v55 = vpop.f32.mrf.mxu0  ;;  %v786_v2 = vpop.f32.mrf.mxu1 }
  0xf1   : > { %857 = vst.msk [vmem:[#allocation2 + $0x38] sm:$0xff] %vm172_vm1, %v837_v51  ;;  %v835_v57 = vadd.f32 %v770_v42, %v497_v53  ;;  %481 = vst.msk [vmem:[#allocation2 + $0x48] sm:$0xff] %vm172_vm1, %v461_v52  ;;  %v466_v58 = vadd.f32 %v2043_v55, %v208_v50  ;;  %v873_v50 = vld [vmem:[#allocation2 + $0x18] sm:$0xff] }
  0xf2   : > { %v502_v59 = vld [vmem:[#allocation2 + $0x50] sm:$0xff]  ;;  %v421_v61 = vpop.f32.mrf.mxu0  ;;  %v2069_v7 = vpop.f32.mrf.mxu1 }
  0xf3   : > { %855 = vst.msk [vmem:[#allocation2 + $0x28] sm:$0xff] %vm172_vm1, %v835_v57  ;;  %v840_v63 = vadd.f32 %v2065_v48, %v502_v59  ;;  %486 = vst.msk [vmem:[#allocation2 + $0x70] sm:$0xff] %vm172_vm1, %v466_v58  ;;  %v464_v0 = vadd.f32 %v421_v61, %v206_v56  ;;  %v871_v56 = vld [vmem:[#allocation2 + $0x8] sm:$0xff] }
  0xf4   : > { %v500_v1 = vld [vmem:[#allocation2 + $0x40] sm:$0xff]  ;;  %v2044_v3 = vpop.f32.mrf.mxu0  ;;  %v799_v14 = vpop.f32.mrf.mxu1 }
  0xf5   : > { %860 = vst.msk [vmem:[#allocation2 + $0x50] sm:$0xff] %vm172_vm1, %v840_v63  ;;  %v838_v5 = vadd.f32 %v783_v54, %v500_v1  ;;  %484 = vst.msk [vmem:[#allocation2 + $0x60] sm:$0xff] %vm172_vm1, %v464_v0  ;;  %v467_v8 = vadd.f32 %v2044_v3, %v209_v62  ;;  %v876_v62 = vld [vmem:[#allocation2 + $0x30] sm:$0xff] }
  0xf6   : > { %v503_v6 = vld [vmem:[#allocation2 + $0x58] sm:$0xff]  ;;  %v424_v9 = vpop.f32.mrf.mxu0  ;;  %v2070_v20 = vpop.f32.mrf.mxu1 }
  0xf7   : > { %858 = vst.msk [vmem:[#allocation2 + $0x40] sm:$0xff] %vm172_vm1, %v838_v5  ;;  %v841_v11 = vadd.f32 %v2066_v60, %v503_v6  ;;  %487 = vst.msk [vmem:[#allocation2 + $0x78] sm:$0xff] %vm172_vm1, %v467_v8  ;;  %v465_v12 = vadd.f32 %v424_v9, %v207_v4  ;;  %v874_v4 = vld [vmem:[#allocation2 + $0x20] sm:$0xff] }
  0xf8   : > { %v501_v13 = vld [vmem:[#allocation2 + $0x48] sm:$0xff]  ;;  %v2047_v15 = vpop.f32.mrf.mxu0  ;;  %v802_v26 = vpop.f32.mrf.mxu1 }
  0xf9   : > { %861 = vst.msk [vmem:[#allocation2 + $0x58] sm:$0xff] %vm172_vm1, %v841_v11  ;;  %v839_v17 = vadd.f32 %v786_v2, %v501_v13  ;;  %485 = vst.msk [vmem:[#allocation2 + $0x68] sm:$0xff] %vm172_vm1, %v465_v12  ;;  %v470_v18 = vadd.f32 %v2047_v15, %v212_v10  ;;  %v877_v10 = vld [vmem:[#allocation2 + $0x38] sm:$0xff] }
  0xfa   : > { %v506_v19 = vld [vmem:[#allocation2 + $0x70] sm:$0xff]  ;;  %v437_v21 = vpop.f32.mrf.mxu0  ;;  %v2073_v32 = vpop.f32.mrf.mxu1 }
  0xfb   : > { %859 = vst.msk [vmem:[#allocation2 + $0x48] sm:$0xff] %vm172_vm1, %v839_v17  ;;  %v844_v23 = vadd.f32 %v2069_v7, %v506_v19  ;;  %490 = vst.msk [vmem:[#allocation2 + $0x90] sm:$0xff] %vm172_vm1, %v470_v18  ;;  %v468_v24 = vadd.f32 %v437_v21, %v210_v16  ;;  %v875_v16 = vld [vmem:[#allocation2 + $0x28] sm:$0xff] }
  0xfc   : > { %v504_v25 = vld [vmem:[#allocation2 + $0x60] sm:$0xff]  ;;  %v2048_v27 = vpop.f32.mrf.mxu0  ;;  %v815_v37 = vpop.f32.mrf.mxu1 }
  0xfd   : > { %864 = vst.msk [vmem:[#allocation2 + $0x70] sm:$0xff] %vm172_vm1, %v844_v23  ;;  %v842_v29 = vadd.f32 %v799_v14, %v504_v25  ;;  %488 = vst.msk [vmem:[#allocation2 + $0x80] sm:$0xff] %vm172_vm1, %v468_v24  ;;  %v471_v30 = vadd.f32 %v2048_v27, %v213_v22  ;;  %v880_v22 = vld [vmem:[#allocation2 + $0x50] sm:$0xff] }
  0xfe   : > { %v507_v31 = vld [vmem:[#allocation2 + $0x78] sm:$0xff]  ;;  %v440_v33 = vpop.f32.mrf.mxu0  ;;  %v2074_v43 = vpop.f32.mrf.mxu1 }
  0xff   : > { %862 = vst.msk [vmem:[#allocation2 + $0x60] sm:$0xff] %vm172_vm1, %v842_v29  ;;  %v845_v34 = vadd.f32 %v2070_v20, %v507_v31  ;;  %v469_v35 = vadd.f32 %v440_v33, %v211_v28  ;;  %v878_v29 = vld [vmem:[#allocation2 + $0x40] sm:$0xff] }
 0x100   : > { %491 = vst.msk [vmem:[#allocation2 + $0x98] sm:$0x7] %vm192_vm5, %v471_v30  ;;  %v505_v36 = vld [vmem:[#allocation2 + $0x68] sm:$0xff]  ;;  %v2083_v39 = vpop.f32.mrf.mxu0  ;;  %v818_v49 = vpop.f32.mrf.mxu1 }
 0x101   : > { %865 = vst.msk [vmem:[#allocation2 + $0x78] sm:$0xff] %vm172_vm1, %v845_v34  ;;  %v843_v40 = vadd.f32 %v802_v26, %v505_v36  ;;  %489 = vst.msk [vmem:[#allocation2 + $0x88] sm:$0xff] %vm172_vm1, %v469_v35  ;;  %v1220_v41 = vadd.f32 %v2083_v39, %v872_v38  ;;  %v2475_v26 = vld [vmem:[%s2577_s2] ss:$0 sm:$0xff]  ;;  %v881_v36 = vld [vmem:[#allocation2 + $0x58] sm:$0xff] }
 0x102   : > { %v510_v42 = vld [vmem:[#allocation2 + $0x90] sm:$0xff]  ;;  %v1139_v45 = vpop.f32.mrf.mxu0  ;;  %v2109_v55 = vpop.f32.mrf.mxu1 }
 0x103   : > { %863 = vst.msk [vmem:[#allocation2 + $0x68] sm:$0xff] %vm172_vm1, %v843_v40  ;;  %v848_v46 = vadd.f32 %v2073_v32, %v510_v42  ;;  %1240 = vst.msk [vmem:[#allocation2 + $0x10] sm:$0xff] %vm172_vm1, %v1220_v41  ;;  %v1218_v47 = vadd.f32 %v1139_v45, %v870_v44  ;;  %v879_v44 = vld [vmem:[#allocation2 + $0x48] sm:$0xff] }
 0x104   : > { %v508_v48 = vld [vmem:[#allocation2 + $0x80] sm:$0xff]  ;;  %v2084_v51 = vpop.f32.mrf.mxu0  ;;  %v1463_v61 = vpop.f32.mrf.mxu1 }
 0x105   : > { %868 = vst.msk [vmem:[#allocation2 + $0x90] sm:$0xff] %vm172_vm1, %v848_v46  ;;  %v846_v52 = vadd.f32 %v815_v37, %v508_v48  ;;  %1238 = vst.msk [vmem:[#allocation2] sm:$0xff] %vm172_vm1, %v1218_v47  ;;  %v1221_v53 = vadd.f32 %v2084_v51, %v873_v50 }
 0x106   : > { %v1142_v57 = vpop.f32.mrf.mxu0  ;;  %v2110_v3 = vpop.f32.mrf.mxu1 }
 0x107   : > { %v511_v54 = vld [vmem:[#allocation2 + $0x98] sm:$0x7]  ;;  %866 = vst.msk [vmem:[#allocation2 + $0x80] sm:$0xff] %vm172_vm1, %v846_v52  ;;  %1241 = vst.msk [vmem:[#allocation2 + $0x18] sm:$0xff] %vm172_vm1, %v1221_v53  ;;  %v1219_v59 = vadd.f32 %v1142_v57, %v871_v56 }
 0x108   : > { %v849_v58 = vadd.f32 %v2074_v43, %v511_v54  ;;  %v509_v60 = vld [vmem:[#allocation2 + $0x88] sm:$0xff]  ;;  %v2087_v63 = vpop.f32.mrf.mxu0  ;;  %v1466_v9 = vpop.f32.mrf.mxu1 }
 0x109   : > { %v847_v0 = vadd.f32 %v818_v49, %v509_v60  ;;  %1239 = vst.msk [vmem:[#allocation2 + $0x8] sm:$0xff] %vm172_vm1, %v1219_v59  ;;  %v1224_v1 = vadd.f32 %v2087_v63, %v876_v62 }
 0x10a   : > { %869 = vst.msk [vmem:[#allocation2 + $0x98] sm:$0x7] %vm192_vm5, %v849_v58  ;;  %v1260_v2 = vld [vmem:[#allocation2 + $0x10] sm:$0xff]  ;;  %v1155_v5 = vpop.f32.mrf.mxu0  ;;  %v2113_v15 = vpop.f32.mrf.mxu1 }
 0x10b   : > { %867 = vst.msk [vmem:[#allocation2 + $0x88] sm:$0xff] %vm172_vm1, %v847_v0  ;;  %v1544_v8 = vadd.f32 %v2109_v55, %v1260_v2  ;;  %1244 = vst.msk [vmem:[#allocation2 + $0x30] sm:$0xff] %vm172_vm1, %v1224_v1  ;;  %v1222_v6 = vadd.f32 %v1155_v5, %v874_v4  ;;  %v884_v58 = vld [vmem:[#allocation2 + $0x70] sm:$0xff]  ;;  %v882_v4 = vld [vmem:[#allocation2 + $0x60] sm:$0xff] }
 0x10c   : > { %v1258_v7 = vld [vmem:[#allocation2] sm:$0xff]  ;;  %v2088_v11 = vpop.f32.mrf.mxu0  ;;  %v1479_v21 = vpop.f32.mrf.mxu1 }
 0x10d   : > { %1564 = vst.msk [vmem:[#allocation2 + $0x10] sm:$0xff] %vm172_vm1, %v1544_v8  ;;  %v1542_v12 = vadd.f32 %v1463_v61, %v1258_v7  ;;  %1242 = vst.msk [vmem:[#allocation2 + $0x20] sm:$0xff] %vm172_vm1, %v1222_v6  ;;  %v1225_v13 = vadd.f32 %v2088_v11, %v877_v10 }
 0x10e   : > { %v1261_v14 = vld [vmem:[#allocation2 + $0x18] sm:$0xff]  ;;  %v1158_v17 = vpop.f32.mrf.mxu0  ;;  %v2114_v28 = vpop.f32.mrf.mxu1 }
 0x10f   : > { %1562 = vst.msk [vmem:[#allocation2] sm:$0xff] %vm172_vm1, %v1542_v12  ;;  %v1545_v18 = vadd.f32 %v2110_v3, %v1261_v14  ;;  %1245 = vst.msk [vmem:[#allocation2 + $0x38] sm:$0xff] %vm172_vm1, %v1225_v13  ;;  %v1223_v19 = vadd.f32 %v1158_v17, %v875_v16  ;;  %v885_v14 = vld [vmem:[#allocation2 + $0x78] sm:$0xff] }
 0x110   : > { %v1259_v20 = vld [vmem:[#allocation2 + $0x8] sm:$0xff]  ;;  %v2091_v23 = vpop.f32.mrf.mxu0  ;;  %v1482_v35 = vpop.f32.mrf.mxu1 }
 0x111   : > { %1565 = vst.msk [vmem:[#allocation2 + $0x18] sm:$0xff] %vm172_vm1, %v1545_v18  ;;  %v1543_v24 = vadd.f32 %v1466_v9, %v1259_v20  ;;  %1243 = vst.msk [vmem:[#allocation2 + $0x28] sm:$0xff] %vm172_vm1, %v1223_v19  ;;  %v1228_v25 = vadd.f32 %v2091_v23, %v880_v22 }
 0x112   : > { %v1264_v27 = vld [vmem:[#allocation2 + $0x30] sm:$0xff]  ;;  %v1171_v30 = vpop.f32.mrf.mxu0  ;;  %v2117_v43 = vpop.f32.mrf.mxu1 }
 0x113   : > { %1563 = vst.msk [vmem:[#allocation2 + $0x8] sm:$0xff] %vm172_vm1, %v1543_v24  ;;  %v1548_v31 = vadd.f32 %v2113_v15, %v1264_v27  ;;  %1248 = vst.msk [vmem:[#allocation2 + $0x50] sm:$0xff] %vm172_vm1, %v1228_v25  ;;  %v1226_v32 = vadd.f32 %v1171_v30, %v878_v29  ;;  %v883_v24 = vld [vmem:[#allocation2 + $0x68] sm:$0xff] }
 0x114   : > { %v1584_v33 = vld [vmem:[#allocation2 + $0x10] sm:$0xff]  ;;  %v1262_v34 = vld [vmem:[#allocation2 + $0x20] sm:$0xff]  ;;  %v2092_v37 = vpop.f32.mrf.mxu0  ;;  %v1495_v52 = vpop.f32.mrf.mxu1 }
 0x115   : > { %v1611_v38 = vadd.f32 %v2475_v26, %v1584_v33  ;;  %1568 = vst.msk [vmem:[#allocation2 + $0x30] sm:$0xff] %vm172_vm1, %v1548_v31  ;;  %v1546_v39 = vadd.f32 %v1479_v21, %v1262_v34  ;;  %1246 = vst.msk [vmem:[#allocation2 + $0x40] sm:$0xff] %vm172_vm1, %v1226_v32  ;;  %v1229_v40 = vadd.f32 %v2092_v37, %v881_v36 }
 0x116   : > { %v1582_v41 = vld [vmem:[#allocation2] sm:$0xff]  ;;  %v1265_v42 = vld [vmem:[#allocation2 + $0x38] sm:$0xff]  ;;  %v1174_v45 = vpop.f32.mrf.mxu0  ;;  %v2118_v62 = vpop.f32.mrf.mxu1 }
 0x117   : > { %v1631_v46 = vmax.f32 %v1611_v38, 0.0  ;;  %v1609_v47 = vadd.f32 %v2475_v26, %v1582_v41  ;;  %1566 = vst.msk [vmem:[#allocation2 + $0x20] sm:$0xff] %vm172_vm1, %v1546_v39  ;;  %v1549_v48 = vadd.f32 %v2114_v28, %v1265_v42  ;;  %1249 = vst.msk [vmem:[#allocation2 + $0x58] sm:$0xff] %vm172_vm1, %v1229_v40  ;;  %v1227_v49 = vadd.f32 %v1174_v45, %v879_v44  ;;  %v886_v39 = vld [vmem:[#allocation2 + $0x80] sm:$0xff] }
 0x118   : > { %v1585_v50 = vld [vmem:[#allocation2 + $0x18] sm:$0xff]  ;;  %v1263_v51 = vld [vmem:[#allocation2 + $0x28] sm:$0xff]  ;;  %v2095_v53 = vpop.f32.mrf.mxu0  ;;  %v1498_v7 = vpop.f32.mrf.mxu1 }
 0x119   : > { %v1953_v54 = vpack.c.bf16 %v1631_v46, %v1631_v46  ;;  %v1629_v55 = vmax.f32 %v1609_v47, 0.0  ;;  %v1612_v56 = vadd.f32 %v2475_v26, %v1585_v50  ;;  %1569 = vst.msk [vmem:[#allocation2 + $0x38] sm:$0xff] %vm172_vm1, %v1549_v48  ;;  %v1547_v57 = vadd.f32 %v1482_v35, %v1263_v51  ;;  %1247 = vst.msk [vmem:[#allocation2 + $0x48] sm:$0xff] %vm172_vm1, %v1227_v49  ;;  %v888_v35 = vld [vmem:[#allocation2 + $0x90] sm:$0xff]  ;;  %v889_v49 = vld [vmem:[#allocation2 + $0x98] sm:$0x7] }
 0x11a   : > { %v1583_v59 = vld [vmem:[#allocation2 + $0x8] sm:$0xff]  ;;  %v1268_v60 = vld [vmem:[#allocation2 + $0x50] sm:$0xff]  ;;  %v1232_v61 = vadd.f32 %v2095_v53, %v884_v58  ;;  %v1187_v63 = vpop.f32.mrf.mxu0  ;;  %v2121_v18 = vpop.f32.mrf.mxu1 }
 0x11b   : > { %1732 = vst.msk [vmem:[%s2489_s21 + $0x8] sm:$0xf] %vm1729_vm6, %v1953_v54  ;;  %v1951_v0 = vpack.c.bf16 %v1629_v55, %v1629_v55  ;;  %v1632_v1 = vmax.f32 %v1612_v56, 0.0  ;;  %v1610_v2 = vadd.f32 %v2475_v26, %v1583_v59  ;;  %v1552_v3 = vadd.f32 %v2117_v43, %v1268_v60  ;;  %v887_v59 = vld [vmem:[#allocation2 + $0x88] sm:$0xff] }
 0x11c   : > { %1567 = vst.msk [vmem:[#allocation2 + $0x28] sm:$0xff] %vm172_vm1, %v1547_v57  ;;  %v1588_v5 = vld [vmem:[#allocation2 + $0x30] sm:$0xff]  ;;  %v1266_v8 = vld [vmem:[#allocation2 + $0x40] sm:$0xff]  ;;  %1252 = vst.msk [vmem:[#allocation2 + $0x70] sm:$0xff] %vm172_vm1, %v1232_v61  ;;  %v1230_v6 = vadd.f32 %v1187_v63, %v882_v4  ;;  %v2096_v9 = vpop.f32.mrf.mxu0  ;;  %v1511_v29 = vpop.f32.mrf.mxu1 }
 0x11d   : > { %1730 = vst.msk [vmem:[%s2489_s21] sm:$0xf] %vm1729_vm6, %v1951_v0  ;;  %v1954_v10 = vpack.c.bf16 %v1632_v1, %v1632_v1  ;;  %v1630_v11 = vmax.f32 %v1610_v2, 0.0  ;;  %v1615_v12 = vadd.f32 %v2475_v26, %v1588_v5  ;;  %v1550_v13 = vadd.f32 %v1495_v52, %v1266_v8 }
 0x11e   : > { %1572 = vst.msk [vmem:[#allocation2 + $0x50] sm:$0xff] %vm172_vm1, %v1552_v3  ;;  %v1586_v15 = vld [vmem:[#allocation2 + $0x20] sm:$0xff]  ;;  %v1269_v16 = vld [vmem:[#allocation2 + $0x58] sm:$0xff]  ;;  %1250 = vst.msk [vmem:[#allocation2 + $0x60] sm:$0xff] %vm172_vm1, %v1230_v6  ;;  %v1233_v17 = vadd.f32 %v2096_v9, %v885_v14  ;;  %v1190_v19 = vpop.f32.mrf.mxu0  ;;  %v2122_v38 = vpop.f32.mrf.mxu1 }
 0x11f   : > { %1733 = vst.msk [vmem:[%s2489_s21 + $0xc] sm:$0xf] %vm1729_vm6, %v1954_v10  ;;  %v1952_v20 = vpack.c.bf16 %v1630_v11, %v1630_v11  ;;  %v1635_v21 = vmax.f32 %v1615_v12, 0.0  ;;  %v1613_v22 = vadd.f32 %v2475_v26, %v1586_v15  ;;  %v1553_v23 = vadd.f32 %v2118_v62, %v1269_v16 }
 0x120   : > { %1570 = vst.msk [vmem:[#allocation2 + $0x40] sm:$0xff] %vm172_vm1, %v1550_v13  ;;  %v1589_v25 = vld [vmem:[#allocation2 + $0x38] sm:$0xff]  ;;  %v1267_v27 = vld [vmem:[#allocation2 + $0x48] sm:$0xff]  ;;  %1253 = vst.msk [vmem:[#allocation2 + $0x78] sm:$0xff] %vm172_vm1, %v1233_v17  ;;  %v1231_v28 = vadd.f32 %v1190_v19, %v883_v24  ;;  %v2099_v30 = vpop.f32.mrf.mxu0  ;;  %v1514_v48 = vpop.f32.mrf.mxu1 }
 0x121   : > { %1731 = vst.msk [vmem:[%s2489_s21 + $0x4] sm:$0xf] %vm1729_vm6, %v1952_v20  ;;  %v1957_v31 = vpack.c.bf16 %v1635_v21, %v1635_v21  ;;  %v1633_v32 = vmax.f32 %v1613_v22, 0.0  ;;  %v1616_v33 = vadd.f32 %v2475_v26, %v1589_v25  ;;  %v1551_v34 = vadd.f32 %v1498_v7, %v1267_v27 }
 0x122   : > { %1573 = vst.msk [vmem:[#allocation2 + $0x58] sm:$0xff] %vm172_vm1, %v1553_v23  ;;  %1251 = vst.msk [vmem:[#allocation2 + $0x68] sm:$0xff] %vm172_vm1, %v1231_v28  ;;  %v1236_v37 = vadd.f32 %v2099_v30, %v888_v35  ;;  %v1203_v40 = vpop.f32.mrf.mxu0  ;;  %v2125_v58 = vpop.f32.mrf.mxu1 }
 0x123   : > { %v1587_v36 = vld [vmem:[#allocation2 + $0x28] sm:$0xff]  ;;  %1736 = vst.msk [vmem:[%s2489_s21 + $0x18] sm:$0xf] %vm1729_vm6, %v1957_v31  ;;  %v1955_v41 = vpack.c.bf16 %v1633_v32, %v1633_v32  ;;  %v1636_v42 = vmax.f32 %v1616_v33, 0.0  ;;  %v1272_v44 = vld [vmem:[#allocation2 + $0x70] sm:$0xff]  ;;  %v1234_v45 = vadd.f32 %v1203_v40, %v886_v39 }
 0x124   : > { %v1614_v43 = vadd.f32 %v2475_v26, %v1587_v36  ;;  %1571 = vst.msk [vmem:[#allocation2 + $0x48] sm:$0xff] %vm172_vm1, %v1551_v34  ;;  %v1556_v47 = vadd.f32 %v2121_v18, %v1272_v44  ;;  %1256 = vst.msk [vmem:[#allocation2 + $0x90] sm:$0xff] %vm172_vm1, %v1236_v37  ;;  %v2100_v50 = vpop.f32.mrf.mxu0  ;;  %v1527_v4 = vpop.f32.mrf.mxu1 }
 0x125   : > { %v1592_v46 = vld [vmem:[#allocation2 + $0x50] sm:$0xff]  ;;  %1734 = vst.msk [vmem:[%s2489_s21 + $0x10] sm:$0xf] %vm1729_vm6, %v1955_v41  ;;  %v1958_v51 = vpack.c.bf16 %v1636_v42, %v1636_v42  ;;  %v1270_v54 = vld [vmem:[#allocation2 + $0x60] sm:$0xff]  ;;  %v1237_v55 = vadd.f32 %v2100_v50, %v889_v49 }
 0x126   : > { %v1634_v52 = vmax.f32 %v1614_v43, 0.0  ;;  %v1619_v53 = vadd.f32 %v2475_v26, %v1592_v46  ;;  %1254 = vst.msk [vmem:[#allocation2 + $0x80] sm:$0xff] %vm172_vm1, %v1234_v45  ;;  %1576 = vst.msk [vmem:[#allocation2 + $0x70] sm:$0xff] %vm172_vm1, %v1556_v47  ;;  %v1554_v57 = vadd.f32 %v1511_v29, %v1270_v54  ;;  %v1206_v60 = vpop.f32.mrf.mxu0  ;;  %v2126_v17 = vpop.f32.mrf.mxu1 }
 0x127   : > { %v1590_v56 = vld [vmem:[#allocation2 + $0x40] sm:$0xff]  ;;  %1737 = vst.msk [vmem:[%s2489_s21 + $0x1c] sm:$0xf] %vm1729_vm6, %v1958_v51  ;;  %v1273_v0 = vld [vmem:[#allocation2 + $0x78] sm:$0xff]  ;;  %v1235_v1 = vadd.f32 %v1206_v60, %v887_v59 }
 0x128   : > { %v1956_v61 = vpack.c.bf16 %v1634_v52, %v1634_v52  ;;  %v1639_v62 = vmax.f32 %v1619_v53, 0.0  ;;  %v1617_v63 = vadd.f32 %v2475_v26, %v1590_v56  ;;  %1257 = vst.msk [vmem:[#allocation2 + $0x98] sm:$0x7] %vm192_vm5, %v1237_v55  ;;  %v1557_v3 = vadd.f32 %v2122_v38, %v1273_v0  ;;  %v1530_v31 = vpop.f32.mrf.mxu1 }
 0x129   : > { %v1593_v2 = vld [vmem:[#allocation2 + $0x58] sm:$0xff]  ;;  %1574 = vst.msk [vmem:[#allocation2 + $0x60] sm:$0xff] %vm172_vm1, %v1554_v57  ;;  %v1271_v7 = vld [vmem:[#allocation2 + $0x68] sm:$0xff]  ;;  %1255 = vst.msk [vmem:[#allocation2 + $0x88] sm:$0xff] %vm172_vm1, %v1235_v1 }
 0x12a   : > { %1735 = vst.msk [vmem:[%s2489_s21 + $0x14] sm:$0xf] %vm1729_vm6, %v1956_v61  ;;  %v1961_v5 = vpack.c.bf16 %v1639_v62, %v1639_v62  ;;  %v1637_v8 = vmax.f32 %v1617_v63, 0.0  ;;  %v1620_v6 = vadd.f32 %v2475_v26, %v1593_v2  ;;  %v1555_v10 = vadd.f32 %v1514_v48, %v1271_v7  ;;  %v1752_v57 = vld [vmem:[%s2489_s21 + $0x4c] sm:$0x3] }
 0x12b   : > { %v1591_v9 = vld [vmem:[#allocation2 + $0x48] sm:$0xff]  ;;  %1577 = vst.msk [vmem:[#allocation2 + $0x78] sm:$0xff] %vm172_vm1, %v1557_v3  ;;  %v1276_v14 = vld [vmem:[#allocation2 + $0x90] sm:$0xff] }
 0x12c   : > { %1740 = vst.msk [vmem:[%s2489_s21 + $0x28] sm:$0xf] %vm1729_vm6, %v1961_v5  ;;  %v1959_v11 = vpack.c.bf16 %v1637_v8, %v1637_v8  ;;  %v1640_v12 = vmax.f32 %v1620_v6, 0.0  ;;  %v1618_v13 = vadd.f32 %v2475_v26, %v1591_v9  ;;  %v1560_v15 = vadd.f32 %v2125_v58, %v1276_v14 }
 0x12d   : > { %1575 = vst.msk [vmem:[#allocation2 + $0x68] sm:$0xff] %vm172_vm1, %v1555_v10  ;;  %v1274_v16 = vld [vmem:[#allocation2 + $0x80] sm:$0xff]  ;;  %v1596_v20 = vld [vmem:[#allocation2 + $0x70] sm:$0xff] }
 0x12e   : > { %1738 = vst.msk [vmem:[%s2489_s21 + $0x20] sm:$0xf] %vm1729_vm6, %v1959_v11  ;;  %v1962_v18 = vpack.c.bf16 %v1640_v12, %v1640_v12  ;;  %v1638_v19 = vmax.f32 %v1618_v13, 0.0  ;;  %v1558_v21 = vadd.f32 %v1527_v4, %v1274_v16  ;;  %v1623_v22 = vadd.f32 %v2475_v26, %v1596_v20 }
 0x12f   : > { %1580 = vst.msk [vmem:[#allocation2 + $0x90] sm:$0xff] %vm172_vm1, %v1560_v15  ;;  %v1277_v23 = vld [vmem:[#allocation2 + $0x98] sm:$0x7] }
 0x130   : > { %1741 = vst.msk [vmem:[%s2489_s21 + $0x2c] sm:$0xf] %vm1729_vm6, %v1962_v18  ;;  %v1960_v24 = vpack.c.bf16 %v1638_v19, %v1638_v19  ;;  %v1594_v25 = vld [vmem:[#allocation2 + $0x60] sm:$0xff]  ;;  %v1561_v27 = vadd.f32 %v2126_v17, %v1277_v23  ;;  %v1643_v28 = vmax.f32 %v1623_v22, 0.0  ;;  %v1275_v30 = vld [vmem:[#allocation2 + $0x88] sm:$0xff] }
 0x131   : > { %1578 = vst.msk [vmem:[#allocation2 + $0x80] sm:$0xff] %vm172_vm1, %v1558_v21  ;;  %v1621_v29 = vadd.f32 %v2475_v26, %v1594_v25  ;;  %v1559_v33 = vadd.f32 %v1530_v31, %v1275_v30 }
 0x132   : > { %1739 = vst.msk [vmem:[%s2489_s21 + $0x24] sm:$0xf] %vm1729_vm6, %v1960_v24  ;;  %v1597_v32 = vld [vmem:[#allocation2 + $0x78] sm:$0xff]  ;;  %v1965_v34 = vpack.c.bf16 %v1643_v28, %v1643_v28 }
 0x133   : > { %1581 = vst.msk [vmem:[#allocation2 + $0x98] sm:$0x7] %vm192_vm5, %v1561_v27  ;;  %v1641_v35 = vmax.f32 %v1621_v29, 0.0  ;;  %v1624_v36 = vadd.f32 %v2475_v26, %v1597_v32 }
 0x134   : > { %v1595_v37 = vld [vmem:[#allocation2 + $0x68] sm:$0xff]  ;;  %1579 = vst.msk [vmem:[#allocation2 + $0x88] sm:$0xff] %vm172_vm1, %v1559_v33 }
 0x135   : > { %1744 = vst.msk [vmem:[%s2489_s21 + $0x38] sm:$0xf] %vm1729_vm6, %v1965_v34  ;;  %v1963_v38 = vpack.c.bf16 %v1641_v35, %v1641_v35  ;;  %v1644_v39 = vmax.f32 %v1624_v36, 0.0  ;;  %v1622_v40 = vadd.f32 %v2475_v26, %v1595_v37 }
 0x136   : > { %v1600_v41 = vld [vmem:[#allocation2 + $0x90] sm:$0xff] }
 0x137   : > { %1742 = vst.msk [vmem:[%s2489_s21 + $0x30] sm:$0xf] %vm1729_vm6, %v1963_v38  ;;  %v1966_v42 = vpack.c.bf16 %v1644_v39, %v1644_v39  ;;  %v1642_v43 = vmax.f32 %v1622_v40, 0.0  ;;  %v1627_v44 = vadd.f32 %v2475_v26, %v1600_v41 }
 0x138   : > { %v1598_v45 = vld [vmem:[#allocation2 + $0x80] sm:$0xff] }
 0x139   : > { %v1625_v46 = vadd.f32 %v2475_v26, %v1598_v45  ;;  %1745 = vst.msk [vmem:[%s2489_s21 + $0x3c] sm:$0xf] %vm1729_vm6, %v1966_v42  ;;  %v1964_v47 = vpack.c.bf16 %v1642_v43, %v1642_v43  ;;  %v1647_v48 = vmax.f32 %v1627_v44, 0.0 }
 0x13a   : > { %v1601_v49 = vld [vmem:[#allocation2 + $0x98] sm:$0x7] }
 0x13b   : > { %v1645_v50 = vmax.f32 %v1625_v46, 0.0  ;;  %v1628_v51 = vadd.f32 %v2475_v26, %v1601_v49  ;;  %1743 = vst.msk [vmem:[%s2489_s21 + $0x34] sm:$0xf] %vm1729_vm6, %v1964_v47  ;;  %v1969_v52 = vpack.c.bf16 %v1647_v48, %v1647_v48  ;;  %v1599_v53 = vld [vmem:[#allocation2 + $0x88] sm:$0xff] }
 0x13c   : > { %v1626_v56 = vadd.f32 %v2475_v26, %v1599_v53 }
 0x13d   : > { %v1967_v54 = vpack.c.bf16 %v1645_v50, %v1645_v50  ;;  %v1648_v55 = vmax.f32 %v1628_v51, 0.0  ;;  %1748 = vst.msk [vmem:[%s2489_s21 + $0x48] sm:$0xf] %vm1729_vm6, %v1969_v52 }
 0x13e   : > { %v1646_v59 = vmax.f32 %v1626_v56, 0.0 }
 0x13f   : > { %1746 = vst.msk [vmem:[%s2489_s21 + $0x40] sm:$0xf] %vm1729_vm6, %v1967_v54  ;;  %v1970_v58 = vpack.c.bf16 %v1648_v55, %v1648_v55 }
 0x140   : > { %v1968_v61 = vpack.c.bf16 %v1646_v59, %v1646_v59 }
 0x141   : > { %v1753_v60 = vsel %vm1751_vm9, %v1970_v58, %v1752_v57 }
 0x142   : > { %1754 = vst [vmem:[%s2489_s21 + $0x4c] sm:$0x3] %v1753_v60  ;;  %1747 = vst.msk [vmem:[%s2489_s21 + $0x44] sm:$0xf] %vm1729_vm6, %v1968_v61 }
 0x143 PF: > { %s13_s12 = sadd.s32 1, %s2197_s12  }
 0x144   : > { %p10_p4 = scmp.ge.s32.totalorder %s13_s12, 4  }
 0x146   :  { %12 = sbr.rel (!%p10_p4) target bundleno = 1 (0x1), region = 65 }

// kernel: forward.5
= control target key start
LH: loop header
LB: loop body
LE: loop exit
PB: predicated region body
PF: predicated region fallthrough
CT: control target
= control target key end

     0   :  { %s1213_s12 = smov 0   ;;  %s1379_s0 = inlined_call_operand.vmem [shape: bf16[2,36,128], index: 0, kind: input, shape index: {}]   ;;  %s1380_s1 = inlined_call_operand.vmem [shape: bf16[2,2,128,64], index: 1, kind: input, shape index: {}]   ;;  %s1381_s2 = inlined_call_operand.vmem [shape: f32[1,64], index: 2, kind: input, shape index: {}]   ;;  %s1382_s3 = inlined_call_operand.vmem [shape: bf16[2,29,64], index: 3, kind: output, shape index: {}]  }
   0x1 LB: > { %s902_s13 = sadd.s32 4294967295, %s1190_s12   ;;  %p906_p0 = scmp.ge.s32.totalorder %s1190_s12, 1  ;;  %s1190_s12 = sphi %s1213_s12, %s13_s12  }
   0x2   : > { %p137_p1 = scmp.lt.s32.totalorder %s1190_s12, 3 }
   0x4   : > { %p138_p2 = pnand %p906_p0, %p137_p1 }
   0x5   : > { %p161_p3 = scmp.lt.s32.totalorder (!%p138_p2), %s902_s13, 1 }
   0x6   : > { %141 = sbr.rel (%p138_p2) target bundleno = 302 (0x12e), region = 32 }
   0xb   : > { %v1142_v0 = vld [vmem:[%s1380_s1 + $0x38] sm:$0xff]   ;;  %v1143_v1 = vld [vmem:[%s1380_s1 + $0x30] sm:$0xff]   ;;  %v1145_v3 = vld [vmem:[%s1380_s1 + $0x28] sm:$0xff]   ;;  %vm172_vm0 = vcmask 523264   ;;  %s1384_s13 = smov (!%p161_p3, %s902_s13), 1  ;;  %v1192_v6 = vmov 0.0  }
   0xc   : > { %1052 = vmatprep.subr.bf16.mxu0 %v1142_v0  ;;  %v1144_v2 = vld [vmem:[%s1380_s1 + $0x78] sm:$0xff]   ;;  %v1146_v4 = vld [vmem:[%s1380_s1 + $0x70] sm:$0xff]   ;;  %v1148_v5 = vld [vmem:[%s1380_s1 + $0x68] sm:$0xff]   ;;  %175 = vst.msk [vmem:[#allocation2 + $0x10] sm:$0xff] %vm172_vm0, %v1192_v6  ;;  %s1132_s30 = smul.u32 20, %s1384_s13  ;;  %vm516_vm2 = vcmask 1044480  }
   0xd   : > { %1053 = vmatpush3.bf16.msra.mxu0 %v1142_v0  ;;  %1072 = vmatprep.subr.bf16.mxu1 %v1144_v2  ;;  %173 = vst.msk [vmem:[#allocation2] sm:$0xff] %vm172_vm0, %v1192_v6  ;;  %174 = vst.msk [vmem:[#allocation2 + $0x8] sm:$0xff] %vm172_vm0, %v1192_v6  ;;  %v1147_v7 = vld [vmem:[%s1380_s1 + $0x20] sm:$0xff]   ;;  %v1149_v9 = vld [vmem:[%s1380_s1 + $0x18] sm:$0xff]   ;;  %vm354_vm1 = vsmask.f32 7424 }
   0xe   : > { %1054 = vmatprep.subr.bf16.mxu0 %v1143_v1  ;;  %1073 = vmatpush3.bf16.msra.mxu1 %v1144_v2  ;;  %v1150_v8 = vld [vmem:[%s1380_s1 + $0x60] sm:$0xff]   ;;  %v1152_v10 = vld [vmem:[%s1380_s1 + $0x58] sm:$0xff]   ;;  %s1263_s10 = scalar_lea.vmem %s1379_s0, %s1132_s30  ;;  %v1151_v12 = vld [vmem:[%s1380_s1 + $0x10] sm:$0xff]   ;;  %vm668_vm3 = vsmask.f32 4352  ;;  %vm176_vm4 = vcmask 520192  }
   0xf   : > { %1074 = vmatprep.subr.bf16.mxu1 %v1146_v4  ;;  %v1157_v11 = vld [vmem:[%s1263_s10] sm:$0xff]   ;;  %v1153_v13 = vld [vmem:[%s1380_s1 + $0x8] sm:$0xff]   ;;  %v1154_v14 = vld [vmem:[%s1380_s1 + $0x50] sm:$0xff]   ;;  %177 = vst.msk [vmem:[#allocation2 + $0x18] sm:$0x1f] %vm176_vm4, %v1192_v6  ;;  %s1007_s7 = sshll.u32 %s1384_s13, 4 }
  0x10   : > { %1068 = vmatprep.mubr.bf16.mxu0 %v1157_v11  ;;  %v1161_v15 = vld [vmem:[%s1263_s10] sm:$0xff]   ;;  %v1162_v16 = vld [vmem:[%s1263_s10 + $0x8] sm:$0x7f]   ;;  %v1160_v26 = vld [vmem:[%s1380_s1 + $0xb8] sm:$0xff]   ;;  %s170_s11 = scalar_lea.vmem %s1382_s3, %s1007_s7  ;;  %vm837_vm5 = vcmask 519168   ;;  %vm841_vm6 = vcmask 518144  }
  0x11   : > { %1055 = vmatpush3.bf16.msra.mxu0 %v1143_v1  ;;  %v1156_v17 = vld [vmem:[%s1380_s1 + $0x48] sm:$0xff]   ;;  %v356_v18 = vshrl.u32 %v1161_v15, 16  ;;  %v358_v19 = vshll.u32 %v1161_v15, 16  ;;  %v363_v20 = vshll.u32 %v1162_v16, 16  ;;  %v1155_v21 = vld [vmem:[%s1380_s1] sm:$0xff]   ;;  %v367_v28 = vshrl.u32 %v1162_v16, 16 }
  0x12   : > { %1056 = vmatprep.subr.bf16.mxu0 %v1145_v3  ;;  %1075 = vmatpush3.bf16.msra.mxu1 %v1146_v4  ;;  %v1159_v24 = vld [vmem:[%s1380_s1 + $0x40] sm:$0xff]   ;;  %v1158_v29 = vld [vmem:[%s1263_s10 + $0x8] sm:$0x7f]   ;;  %v1164_v30 = vld [vmem:[%s1380_s1 + $0xf8] sm:$0xff]   ;;  %vm842_vm7 = vsmask.f32 2304 }
  0x13   : > { %1076 = vmatprep.subr.bf16.mxu1 %v1148_v5  ;;  %v360_v22 = vrot.slane %v358_v19, 1  ;;  %v365_v23 = vrot.slane %v363_v20, 1  ;;  %v1163_v31 = vld [vmem:[%s1380_s1 + $0xb0] sm:$0xff]   ;;  %v1165_v34 = vld [vmem:[%s1380_s1 + $0xa8] sm:$0xff]   ;;  %v1177_v35 = vld [vmem:[%s1263_s10] sm:$0xf8]  }
  0x14   : > { %v1166_v33 = vld [vmem:[%s1380_s1 + $0xf0] sm:$0xff]   ;;  %v1304_v36 = vld [vmem:[%s1263_s10 + $0x8] sm:$0xff]   ;;  %v1167_v37 = vld [vmem:[%s1380_s1 + $0xa0] sm:$0xff]   ;;  %v517_v39 = vrot.slane %v1177_v35, 3 }
  0x15   : > { %1057 = vmatpush3.bf16.msra.mxu0 %v1145_v3  ;;  %v361_v25 = vor.u32 %v360_v22, %v356_v18  ;;  %v369_v32 = vor.u32 %v367_v28, %v365_v23  ;;  %v1168_v38 = vld [vmem:[%s1380_s1 + $0xe8] sm:$0xff]   ;;  %v518_v40 = vrot.slane %v1304_v36, 3  ;;  %v1181_v43 = vld [vmem:[%s1263_s10] sm:$0xf8]   ;;  %v1169_v49 = vld [vmem:[%s1380_s1 + $0x98] sm:$0xff]  }
  0x16   : > { %1058 = vmatprep.subr.bf16.mxu0 %v1147_v7  ;;  %1077 = vmatpush3.bf16.msra.mxu1 %v1148_v5  ;;  %v1182_v41 = vld [vmem:[%s1263_s10 + $0x8] sm:$0xff]   ;;  %v1170_v44 = vld [vmem:[%s1380_s1 + $0xe0] sm:$0xff]   ;;  %v670_v47 = vshrl.u32 %v1181_v43, 16  ;;  %v673_v48 = vshll.u32 %v1181_v43, 16  ;;  %v1172_v54 = vld [vmem:[%s1380_s1 + $0xd8] sm:$0xff]  }
  0x17   : > { %1078 = vmatprep.subr.bf16.mxu1 %v1150_v8  ;;  %v366_v27 = vsel %vm354_vm1, %v361_v25, %v365_v23  ;;  %v519_v42 = vsel %vm516_vm2, %v517_v39, %v518_v40  ;;  %v678_v45 = vshrl.u32 %v1182_v41, 16  ;;  %v681_v46 = vshll.u32 %v1182_v41, 16  ;;  %v1171_v57 = vld [vmem:[%s1380_s1 + $0x90] sm:$0xff]   ;;  %v1173_v61 = vld [vmem:[%s1380_s1 + $0x88] sm:$0xff]   ;;  %v1175_v2 = vld [vmem:[%s1380_s1 + $0x80] sm:$0xff]  }
  0x18   : > { %1088 = vmatprep.mubr.bf16.mxu1 %v366_v27  ;;  %v672_v52 = vrot.slane %v670_v47, 3  ;;  %v675_v53 = vrot.slane %v673_v48, 4  ;;  %v1183_v59 = vld [vmem:[%s1263_s10 + $0x10] ss:$0 sps:$4 sm:$0x33]   ;;  %v1176_v0 = vld [vmem:[%s1380_s1 + $0xc8] sm:$0xff]   ;;  %vm843_vm8 = vmand %vm841_vm6, %vm842_vm7 }
  0x19   : > { %1059 = vmatpush3.bf16.msra.mxu0 %v1147_v7  ;;  %v680_v50 = vrot.slane %v678_v45, 3  ;;  %v683_v51 = vrot.slane %v681_v46, 4  ;;  %v1174_v60 = vld [vmem:[%s1380_s1 + $0xd0] sm:$0xff]   ;;  %v687_v62 = vshrl.u32 %v1183_v59, 16  ;;  %v690_v63 = vshll.u32 %v1183_v59, 16  ;;  %v1180_v5 = vld [vmem:[%s1380_s1 + $0xc0] sm:$0xff]  }
  0x1a   : > { %1060 = vmatprep.subr.bf16.mxu0 %v1149_v9  ;;  %1079 = vmatpush3.bf16.msra.mxu1 %v1150_v8  ;;  %v676_v56 = vor.u32 %v675_v53, %v672_v52  ;;  %v1179_v1 = vld [vmem:[%s1263_s10 + $0x10] ss:$0 sps:$4 sm:$0x33]   ;;  %v181_v16 = vld [vmem:[#allocation2 + $0x18] sm:$0x1f]  ;;  %v179_v20 = vld [vmem:[#allocation2 + $0x8] sm:$0xff] }
  0x1b   : > { %1080 = vmatprep.subr.bf16.mxu1 %v1152_v10  ;;  %v684_v55 = vor.u32 %v683_v51, %v680_v50  ;;  %v689_v3 = vrot.slane %v687_v62, 3  ;;  %v692_v4 = vrot.slane %v690_v63, 4  ;;  %v520_v7 = vrot.slane %v1179_v1, 3  ;;  %v180_v11 = vld [vmem:[#allocation2 + $0x10] sm:$0xff] }
  0x1d   : > { %1061 = vmatpush3.bf16.msra.mxu0 %v1149_v9  ;;  %v685_v58 = vsel %vm668_vm3, %v676_v56, %v684_v55  ;;  %v693_v8 = vor.u32 %v692_v4, %v689_v3  ;;  %v521_v9 = vsel %vm516_vm2, %v518_v40, %v520_v7 }
  0x1e   : > { %1062 = vmatprep.subr.bf16.mxu0 %v1151_v12  ;;  %1081 = vmatpush3.bf16.msra.mxu1 %v1152_v10 }
  0x1f   : > { %1082 = vmatprep.subr.bf16.mxu1 %v1154_v14  ;;  %v694_v10 = vsel %vm668_vm3, %v684_v55, %v693_v8 }
  0x21   : > { %1063 = vmatpush3.bf16.msra.mxu0 %v1151_v12 }
  0x22   : > { %1064 = vmatprep.subr.bf16.mxu0 %v1153_v13  ;;  %1083 = vmatpush3.bf16.msra.mxu1 %v1154_v14 }
  0x23   : > { %1084 = vmatprep.subr.bf16.mxu1 %v1156_v17 }
  0x25   : > { %1065 = vmatpush3.bf16.msra.mxu0 %v1153_v13  ;;  %v178_v13 = vld [vmem:[#allocation2] sm:$0xff] }
  0x26   : > { %1066 = vmatprep.subr.bf16.mxu0 %v1155_v21  ;;  %1085 = vmatpush3.bf16.msra.mxu1 %v1156_v17 }
  0x27   : > { %1086 = vmatprep.subr.bf16.mxu1 %v1159_v24 }
  0x29   : > { %1067 = vmatpush3.bf16.msra.mxu0 %v1155_v21 }
  0x2a   : > { %1092 = vmatprep.subr.bf16.mxu0 %v1160_v26  ;;  %1087 = vmatpush3.bf16.msra.mxu1 %v1159_v24 }
  0x2b   : > { %1112 = vmatprep.subr.bf16.mxu1 %v1164_v30 }
  0x2c   : > { %1069 = vmatmul.mubr.bf16.vlgmr.msra.gmra.mxu0 %v1158_v29 }
  0x2d   : > { %1093 = vmatpush3.bf16.msra.mxu0 %v1160_v26  ;;  %1089 = vmatmul.mubr.bf16.vlgmr.msra.gmra.mxu1 %v369_v32 }
  0x2e   : > { %1094 = vmatprep.subr.bf16.mxu0 %v1163_v31  ;;  %1113 = vmatpush3.bf16.msra.mxu1 %v1164_v30 }
  0x2f   : > { %1114 = vmatprep.subr.bf16.mxu1 %v1166_v33  ;;  %1108 = vmatprep.mubr.bf16.mxu0 %v519_v42 }
  0x30   : > { %1128 = vmatprep.mubr.bf16.mxu1 %v685_v58  ;;  %v1000_v58 = vld [vmem:[%s1381_s2] ss:$0 sm:$0xff] }
  0x31   : > { %1095 = vmatpush3.bf16.msra.mxu0 %v1163_v31 }
  0x32   : > { %1096 = vmatprep.subr.bf16.mxu0 %v1165_v34  ;;  %1115 = vmatpush3.bf16.msra.mxu1 %v1166_v33 }
  0x33   : > { %1116 = vmatprep.subr.bf16.mxu1 %v1168_v38 }
  0x35   : > { %1097 = vmatpush3.bf16.msra.mxu0 %v1165_v34 }
  0x36   : > { %1098 = vmatprep.subr.bf16.mxu0 %v1167_v37  ;;  %1117 = vmatpush3.bf16.msra.mxu1 %v1168_v38 }
  0x37   : > { %1118 = vmatprep.subr.bf16.mxu1 %v1170_v44 }
  0x39   : > { %1099 = vmatpush3.bf16.msra.mxu0 %v1167_v37 }
  0x3a   : > { %1100 = vmatprep.subr.bf16.mxu0 %v1169_v49  ;;  %1119 = vmatpush3.bf16.msra.mxu1 %v1170_v44 }
  0x3b   : > { %1120 = vmatprep.subr.bf16.mxu1 %v1172_v54 }
  0x3d   : > { %1101 = vmatpush3.bf16.msra.mxu0 %v1169_v49 }
  0x3e   : > { %1102 = vmatprep.subr.bf16.mxu0 %v1171_v57  ;;  %1121 = vmatpush3.bf16.msra.mxu1 %v1172_v54 }
  0x3f   : > { %1122 = vmatprep.subr.bf16.mxu1 %v1174_v60 }
  0x41   : > { %1103 = vmatpush3.bf16.msra.mxu0 %v1171_v57 }
  0x42   : > { %1104 = vmatprep.subr.bf16.mxu0 %v1173_v61  ;;  %1123 = vmatpush3.bf16.msra.mxu1 %v1174_v60 }
  0x43   : > { %1124 = vmatprep.subr.bf16.mxu1 %v1176_v0 }
  0x45   : > { %1105 = vmatpush3.bf16.msra.mxu0 %v1173_v61 }
  0x46   : > { %1106 = vmatprep.subr.bf16.mxu0 %v1175_v2  ;;  %1125 = vmatpush3.bf16.msra.mxu1 %v1176_v0 }
  0x47   : > { %1126 = vmatprep.subr.bf16.mxu1 %v1180_v5 }
  0x49   : > { %1107 = vmatpush3.bf16.msra.mxu0 %v1175_v2 }
  0x4a   : > { %1127 = vmatpush3.bf16.msra.mxu1 %v1180_v5 }
  0x4c   : > { %1109 = vmatmul.mubr.bf16.vlgmr.msra.gmra.mxu0 %v521_v9  ;;  %v844_v9 = vld [vmem:[%s170_s11 + $0xc] sm:$0x7] }
  0x4d   : > { %1129 = vmatmul.mubr.bf16.vlgmr.msra.gmra.mxu1 %v694_v10 }
  0xec   : > { %v1070_v12 = vpop.f32.mrf.mxu0 }
  0xed   : > { %v313_v14 = vadd.f32 %v1070_v12, %v180_v11  ;;  %v1090_v19 = vpop.f32.mrf.mxu1 }
  0xee   : > { %v296_v15 = vpop.f32.mrf.mxu0 }
  0xef   : > { %317 = vst.msk [vmem:[#allocation2 + $0x10] sm:$0xff] %vm172_vm0, %v313_v14  ;;  %v311_v17 = vadd.f32 %v296_v15, %v178_v13  ;;  %v454_v6 = vpop.f32.mrf.mxu1 }
  0xf0   : > { %v1071_v18 = vpop.f32.mrf.mxu0 }
  0xf1   : > { %315 = vst.msk [vmem:[#allocation2] sm:$0xff] %vm172_vm0, %v311_v17  ;;  %v314_v21 = vadd.f32 %v1071_v18, %v181_v16  ;;  %v1091_v27 = vpop.f32.mrf.mxu1 }
  0xf2   : > { %v299_v22 = vpop.f32.mrf.mxu0 }
  0xf3   : > { %318 = vst.msk [vmem:[#allocation2 + $0x18] sm:$0x1f] %vm176_vm4, %v314_v21  ;;  %v312_v23 = vadd.f32 %v299_v22, %v179_v20  ;;  %v457_v32 = vpop.f32.mrf.mxu1 }
  0xf5   : > { %316 = vst.msk [vmem:[#allocation2 + $0x8] sm:$0xff] %vm172_vm0, %v312_v23 }
  0xf6   : > { %v321_v24 = vld [vmem:[#allocation2 + $0x10] sm:$0xff] }
  0xf7   : > { %v471_v25 = vadd.f32 %v1090_v19, %v321_v24 }
  0xf8   : > { %v319_v26 = vld [vmem:[#allocation2] sm:$0xff] }
  0xf9   : > { %475 = vst.msk [vmem:[#allocation2 + $0x10] sm:$0xff] %vm172_vm0, %v471_v25  ;;  %v469_v28 = vadd.f32 %v454_v6, %v319_v26 }
  0xfa   : > { %v322_v29 = vld [vmem:[#allocation2 + $0x18] sm:$0x1f] }
  0xfb   : > { %473 = vst.msk [vmem:[#allocation2] sm:$0xff] %vm172_vm0, %v469_v28  ;;  %v472_v30 = vadd.f32 %v1091_v27, %v322_v29 }
  0xfc   : > { %v320_v31 = vld [vmem:[#allocation2 + $0x8] sm:$0xff] }
  0xfd   : > { %476 = vst.msk [vmem:[#allocation2 + $0x18] sm:$0x1f] %vm176_vm4, %v472_v30  ;;  %v470_v33 = vadd.f32 %v457_v32, %v320_v31 }
  0xff   : > { %474 = vst.msk [vmem:[#allocation2 + $0x8] sm:$0xff] %vm172_vm0, %v470_v33 }
 0x100   : > { %v479_v34 = vld [vmem:[#allocation2 + $0x10] sm:$0xff] }
 0x102   : > { %v477_v37 = vld [vmem:[#allocation2] sm:$0xff] }
 0x104   : > { %v480_v40 = vld [vmem:[#allocation2 + $0x18] sm:$0x1f] }
 0x106   : > { %v478_v44 = vld [vmem:[#allocation2 + $0x8] sm:$0xff] }
 0x10c   : > { %v1110_v35 = vpop.f32.mrf.mxu0 }
 0x10d   : > { %v623_v36 = vadd.f32 %v1110_v35, %v479_v34  ;;  %v1130_v42 = vpop.f32.mrf.mxu1 }
 0x10e   : > { %v606_v38 = vpop.f32.mrf.mxu0 }
 0x10f   : > { %627 = vst.msk [vmem:[#allocation2 + $0x10] sm:$0xff] %vm172_vm0, %v623_v36  ;;  %v621_v39 = vadd.f32 %v606_v38, %v477_v37  ;;  %v779_v47 = vpop.f32.mrf.mxu1 }
 0x110   : > { %v1111_v41 = vpop.f32.mrf.mxu0 }
 0x111   : > { %625 = vst.msk [vmem:[#allocation2] sm:$0xff] %vm172_vm0, %v621_v39  ;;  %v624_v43 = vadd.f32 %v1111_v41, %v480_v40  ;;  %v1131_v51 = vpop.f32.mrf.mxu1 }
 0x112   : > { %v609_v45 = vpop.f32.mrf.mxu0 }
 0x113   : > { %628 = vst.msk [vmem:[#allocation2 + $0x18] sm:$0x1f] %vm176_vm4, %v624_v43  ;;  %v622_v46 = vadd.f32 %v609_v45, %v478_v44  ;;  %v782_v56 = vpop.f32.mrf.mxu1 }
 0x115   : > { %626 = vst.msk [vmem:[#allocation2 + $0x8] sm:$0xff] %vm172_vm0, %v622_v46 }
 0x116   : > { %v631_v48 = vld [vmem:[#allocation2 + $0x10] sm:$0xff] }
 0x117   : > { %v796_v49 = vadd.f32 %v1130_v42, %v631_v48 }
 0x118   : > { %v629_v50 = vld [vmem:[#allocation2] sm:$0xff] }
 0x119   : > { %800 = vst.msk [vmem:[#allocation2 + $0x10] sm:$0xff] %vm172_vm0, %v796_v49  ;;  %v794_v52 = vadd.f32 %v779_v47, %v629_v50 }
 0x11a   : > { %v632_v53 = vld [vmem:[#allocation2 + $0x18] sm:$0x1f] }
 0x11b   : > { %798 = vst.msk [vmem:[#allocation2] sm:$0xff] %vm172_vm0, %v794_v52  ;;  %v797_v54 = vadd.f32 %v1131_v51, %v632_v53 }
 0x11c   : > { %v630_v55 = vld [vmem:[#allocation2 + $0x8] sm:$0xff] }
 0x11d   : > { %801 = vst.msk [vmem:[#allocation2 + $0x18] sm:$0x1f] %vm176_vm4, %v797_v54  ;;  %v795_v57 = vadd.f32 %v782_v56, %v630_v55 }
 0x11f   : > { %799 = vst.msk [vmem:[#allocation2 + $0x8] sm:$0xff] %vm172_vm0, %v795_v57 }
 0x120   : > { %v804_v59 = vld [vmem:[#allocation2 + $0x10] sm:$0xff] }
 0x121   : > { %v815_v60 = vadd.f32 %v1000_v58, %v804_v59 }
 0x122   : > { %v802_v61 = vld [vmem:[#allocation2] sm:$0xff] }
 0x123   : > { %v819_v62 = vmax.f32 %v815_v60, 0.0  ;;  %v813_v63 = vadd.f32 %v1000_v58, %v802_v61 }
 0x124   : > { %v805_v0 = vld [vmem:[#allocation2 + $0x18] sm:$0x1f] }
 0x125   : > { %v1010_v1 = vpack.c.bf16 %v819_v62, %v819_v62  ;;  %v817_v2 = vmax.f32 %v813_v63, 0.0  ;;  %v816_v3 = vadd.f32 %v1000_v58, %v805_v0 }
 0x126   : > { %v803_v4 = vld [vmem:[#allocation2 + $0x8] sm:$0xff] }
 0x127   : > { %840 = vst.msk [vmem:[%s170_s11 + $0x8] sm:$0xf] %vm837_vm5, %v1010_v1  ;;  %v1008_v5 = vpack.c.bf16 %v817_v2, %v817_v2  ;;  %v820_v7 = vmax.f32 %v816_v3, 0.0  ;;  %v814_v8 = vadd.f32 %v1000_v58, %v803_v4 }
 0x129   : > { %838 = vst.msk [vmem:[%s170_s11] sm:$0xf] %vm837_vm5, %v1008_v5  ;;  %v1011_v10 = vpack.c.bf16 %v820_v7, %v820_v7  ;;  %v818_v11 = vmax.f32 %v814_v8, 0.0 }
 0x12b   : > { %v845_v12 = vsel %vm843_vm8, %v1011_v10, %v844_v9  ;;  %v1009_v13 = vpack.c.bf16 %v818_v11, %v818_v11 }
 0x12c   : > { %846 = vst [vmem:[%s170_s11 + $0xc] sm:$0x7] %v845_v12 }
 0x12d   : > { %839 = vst.msk [vmem:[%s170_s11 + $0x4] sm:$0xf] %vm837_vm5, %v1009_v13 }
 0x12e PF: > { %s13_s12 = sadd.s32 1, %s1190_s12  }
 0x12f   : > { %p10_p4 = scmp.ge.s32.totalorder %s13_s12, 4  }
 0x131   :  { %12 = sbr.rel (!%p10_p4) target bundleno = 1 (0x1), region = 65 }

// kernel: forward.6
= control target key start
LH: loop header
LB: loop body
LE: loop exit
PB: predicated region body
PF: predicated region fallthrough
CT: control target
= control target key end

     0   :  { %s1528_s12 = smov 0   ;;  %s1760_s0 = inlined_call_operand.vmem [shape: bf16[2,25,64], index: 0, kind: input, shape index: {}]   ;;  %s1761_s1 = inlined_call_operand.vmem [shape: bf16[3,3,64,64], index: 1, kind: input, shape index: {}]   ;;  %s1762_s2 = inlined_call_operand.vmem [shape: f32[1,64], index: 2, kind: input, shape index: {}]   ;;  %s1763_s3 = inlined_call_operand.vmem [shape: bf16[2,13,64], index: 3, kind: output, shape index: {}]  }
   0x1 LB: > { %s1146_s13 = sadd.s32 4294967295, %s1504_s12   ;;  %p1150_p0 = scmp.ge.s32.totalorder %s1504_s12, 1  ;;  %s1504_s12 = sphi %s1528_s12, %s13_s12  }
   0x2   : > { %p137_p1 = scmp.lt.s32.totalorder %s1504_s12, 3 }
   0x4   : > { %p138_p2 = pnand %p1150_p0, %p137_p1 }
   0x5   : > { %p161_p3 = scmp.lt.s32.totalorder (!%p138_p2), %s1146_s13, 1 }
   0x6   : > { %141 = sbr.rel (%p138_p2) target bundleno = 323 (0x143), region = 32 }
   0xb   : > { %v1449_v0 = vld [vmem:[%s1761_s1 + $0x18] sm:$0xff]   ;;  %v1506_v1 = vmov 0.0   ;;  %v1450_v2 = vld [vmem:[%s1761_s1 + $0x10] sm:$0xff]   ;;  %vm1507_vm0 = vmmov 0   ;;  %vm172_vm1 = vcmask 523264   ;;  %s1765_s13 = smov (!%p161_p3, %s1146_s13), 1 }
   0xc   : > { %1331 = vmatprep.subr.bf16.mxu0 %v1506_v1  ;;  %1343 = vmatprep.subr.bf16.mxu1 %v1506_v1  ;;  %v1451_v3 = vld [vmem:[%s1761_s1 + $0x38] sm:$0xff]   ;;  %v1453_v4 = vld [vmem:[%s1761_s1 + $0x30] sm:$0xff]   ;;  %173 = vst.msk [vmem:[#allocation2] sm:$0xff] %vm172_vm1, %v1506_v1  ;;  %v1452_v5 = vld [vmem:[%s1761_s1 + $0x8] sm:$0xff]   ;;  %s1282_s24 = sshll.u32 %s1765_s13, 4  ;;  %vm587_vm3 = vcmask 1044480  }
   0xd   : > { %1332 = vmatpush3.bf16.msra.mxu0 %v1449_v0  ;;  %1339 = vmatprep.mubr.msk.bf16.mxu0 %vm1507_vm0, %v1506_v1  ;;  %s1568_s27 = scalar_lea.vmem %s1760_s0, %s1282_s24  ;;  %v1455_v6 = vld [vmem:[%s1761_s1 + $0x28] sm:$0xff]   ;;  %v1454_v7 = vld [vmem:[%s1761_s1] sm:$0xff]   ;;  %v1458_v13 = vld [vmem:[%s1761_s1 + $0x58] sm:$0xff]   ;;  %vm475_vm2 = vsmask.f32 5376  ;;  %vm986_vm5 = vcmask 1045504  }
   0xe   : > { %1333 = vmatprep.subr.bf16.mxu0 %v1506_v1  ;;  %1351 = vmatprep.mubr.msk.bf16.mxu1 %vm1507_vm0, %v1506_v1  ;;  %v1459_v8 = vld [vmem:[%s1568_s27] sm:$0x7f]   ;;  %v1462_v16 = vld [vmem:[%s1761_s1 + $0x78] sm:$0xff]   ;;  %v1460_v17 = vld [vmem:[%s1761_s1 + $0x50] sm:$0xff]   ;;  %vm685_vm4 = vsmask.f32 4352 }
   0xf   : > { %1344 = vmatpush3.bf16.msra.mxu1 %v1451_v3  ;;  %v1457_v9 = vld [vmem:[%s1761_s1 + $0x20] sm:$0xff]   ;;  %v284_v10 = vshrl.u32 %v1459_v8, 16  ;;  %v286_v11 = vshll.u32 %v1459_v8, 16  ;;  %v1464_v18 = vld [vmem:[%s1761_s1 + $0x70] sm:$0xff]   ;;  %v1461_v19 = vld [vmem:[%s1761_s1 + $0x48] sm:$0xff]   ;;  %vm174_vm6 = vcmask 520192  }
  0x10   : > { %1345 = vmatprep.subr.bf16.mxu1 %v1506_v1  ;;  %v1456_v12 = vld [vmem:[%s1568_s27] sm:$0x7f]   ;;  %v1466_v22 = vld [vmem:[%s1761_s1 + $0x68] sm:$0xff]   ;;  %v1467_v37 = vld [vmem:[%s1761_s1 + $0x98] sm:$0xff]   ;;  %175 = vst.msk [vmem:[#allocation2 + $0x8] sm:$0x1f] %vm174_vm6, %v1506_v1 }
  0x11   : > { %1334 = vmatpush3.bf16.msra.mxu0 %v1450_v2  ;;  %v288_v14 = vrot.slane %v286_v11, 1  ;;  %v1465_v20 = vld [vmem:[%s1568_s27] sm:$0xfe]   ;;  %v1471_v23 = vld [vmem:[%s1568_s27 + $0x8] ss:$0 sps:$4 sm:$0x11]  }
  0x12   : > { %1335 = vmatprep.subr.bf16.mxu0 %v1506_v1  ;;  %v1470_v21 = vld [vmem:[%s1568_s27] sm:$0xfc]   ;;  %v485_v27 = vshrl.u32 %v1471_v23, 16  ;;  %v488_v28 = vshll.u32 %v1471_v23, 16  ;;  %v380_v33 = vrot.slane %v1465_v20, 1  ;;  %v1473_v39 = vld [vmem:[%s1761_s1 + $0xb8] sm:$0xff]  }
  0x13   : > { %1346 = vmatpush3.bf16.msra.mxu1 %v1453_v4  ;;  %v289_v15 = vor.u32 %v288_v14, %v284_v10  ;;  %v477_v24 = vshrl.u32 %v1470_v21, 16  ;;  %v480_v25 = vshll.u32 %v1470_v21, 16  ;;  %v1463_v26 = vld [vmem:[%s1761_s1 + $0x40] sm:$0xff]   ;;  %v1469_v40 = vld [vmem:[%s1761_s1 + $0x90] sm:$0xff]   ;;  %v1472_v43 = vld [vmem:[%s1761_s1 + $0x88] sm:$0xff]   ;;  %s1283_s18 = sshll.u32 %s1765_s13, 3 }
  0x14   : > { %1347 = vmatprep.subr.bf16.mxu1 %v1506_v1  ;;  %v487_v31 = vrot.slane %v485_v27, 2  ;;  %v490_v32 = vrot.slane %v488_v28, 3  ;;  %v1468_v34 = vld [vmem:[%s1761_s1 + $0x60] sm:$0xff]   ;;  %v1483_v42 = vld [vmem:[%s1568_s27 + $0x8] ss:$0 sps:$4 sm:$0x33]   ;;  %s170_s21 = scalar_lea.vmem %s1763_s3, %s1283_s18 }
  0x15   : > { %1336 = vmatpush3.bf16.msra.mxu0 %v1452_v5  ;;  %v479_v29 = vrot.slane %v477_v24, 2  ;;  %v482_v30 = vrot.slane %v480_v25, 3  ;;  %v1482_v41 = vld [vmem:[%s1568_s27] sm:$0xf8]   ;;  %v1475_v44 = vld [vmem:[%s1761_s1 + $0xb0] sm:$0xff]   ;;  %v695_v48 = vshrl.u32 %v1483_v42, 16 }
  0x16   : > { %1337 = vmatprep.subr.bf16.mxu0 %v1506_v1  ;;  %v491_v36 = vor.u32 %v490_v32, %v487_v31  ;;  %v1477_v45 = vld [vmem:[%s1568_s27 + $0x8] ss:$0 sps:$4 sm:$0x33]   ;;  %v687_v46 = vshrl.u32 %v1482_v41, 16  ;;  %v690_v47 = vshll.u32 %v1482_v41, 16  ;;  %v698_v49 = vshll.u32 %v1483_v42, 16 }
  0x17   : > { %1348 = vmatpush3.bf16.msra.mxu1 %v1455_v6  ;;  %v483_v35 = vor.u32 %v482_v30, %v479_v29  ;;  %v1476_v50 = vld [vmem:[%s1568_s27] sm:$0xf8]   ;;  %v1478_v51 = vld [vmem:[%s1761_s1 + $0xa8] sm:$0xff]   ;;  %v697_v54 = vrot.slane %v695_v48, 3  ;;  %v589_v58 = vrot.slane %v1477_v45, 3  ;;  %v1479_v63 = vld [vmem:[%s1761_s1 + $0xd8] sm:$0xff]  }
  0x18   : > { %1349 = vmatprep.subr.bf16.mxu1 %v1506_v1  ;;  %v689_v52 = vrot.slane %v687_v46, 3  ;;  %v692_v53 = vrot.slane %v690_v47, 4  ;;  %v700_v55 = vrot.slane %v698_v49, 4  ;;  %v1474_v56 = vld [vmem:[%s1761_s1 + $0x80] sm:$0xff]   ;;  %v588_v57 = vrot.slane %v1476_v50, 3  ;;  %v1485_v2 = vld [vmem:[%s1761_s1 + $0xf8] sm:$0xff]  }
  0x19   : > { %1338 = vmatpush3.bf16.msra.mxu0 %v1454_v7  ;;  %v492_v38 = vsel %vm475_vm2, %v483_v35, %v491_v36  ;;  %v1480_v59 = vld [vmem:[%s1761_s1 + $0xa0] sm:$0xff]   ;;  %v1481_v3 = vld [vmem:[%s1761_s1 + $0xd0] sm:$0xff]   ;;  %v1484_v6 = vld [vmem:[%s1761_s1 + $0xc8] sm:$0xff]   ;;  %vm1083_vm7 = vcmask 519168   ;;  %vm1085_vm8 = vcmask 518144  }
  0x1a   : > { %1355 = vmatprep.subr.bf16.mxu0 %v1506_v1  ;;  %v693_v60 = vor.u32 %v692_v53, %v689_v52  ;;  %v701_v61 = vor.u32 %v700_v55, %v697_v54  ;;  %v590_v62 = vsel %vm587_vm3, %v588_v57, %v589_v58  ;;  %v1493_v4 = vld [vmem:[%s1568_s27 + $0x4] sm:$0xfe]   ;;  %v1487_v5 = vld [vmem:[%s1761_s1 + $0xf0] sm:$0xff]   ;;  %v1497_v21 = vld [vmem:[%s1568_s27 + $0xc] ss:$0 sps:$4 sm:$0x11]  }
  0x1b   : > { %1350 = vmatpush3.bf16.msra.mxu1 %v1457_v9  ;;  %v885_v7 = vshrl.u32 %v1493_v4, 16  ;;  %v888_v8 = vshll.u32 %v1493_v4, 16  ;;  %v1489_v9 = vld [vmem:[%s1761_s1 + $0xe8] sm:$0xff]   ;;  %v1486_v11 = vld [vmem:[%s1761_s1 + $0xc0] sm:$0xff]   ;;  %v988_v24 = vrot.slane %v1497_v21, 2 }
  0x1c   : > { %1340 = vmatmul.mubr.msk.bf16.vlgmr.msra.gmra.mxu0 %vm172_vm1, %v1456_v12  ;;  %1367 = vmatprep.subr.bf16.mxu1 %v1506_v1  ;;  %v702_v0 = vsel %vm685_vm4, %v693_v60, %v701_v61  ;;  %v1488_v10 = vld [vmem:[%s1568_s27 + $0x4] sm:$0xfe]   ;;  %vm1086_vm9 = vsmask.f32 2304 }
  0x1d   : > { %1356 = vmatpush3.bf16.msra.mxu0 %v1458_v13  ;;  %1363 = vmatprep.mubr.msk.bf16.mxu0 %vm1507_vm0, %v1506_v1  ;;  %v887_v12 = vrot.slane %v885_v7, 1  ;;  %v890_v13 = vrot.slane %v888_v8, 2  ;;  %v1491_v14 = vld [vmem:[%s1761_s1 + $0xe0] sm:$0xff]   ;;  %v177_v30 = vld [vmem:[#allocation2 + $0x8] sm:$0x1f]  ;;  %vm1087_vm10 = vmand %vm1085_vm8, %vm1086_vm9 }
  0x1e   : > { %1352 = vmatmul.mubr.msk.bf16.vlgmr.msra.gmra.mxu1 %vm172_vm1, %v289_v15  ;;  %1357 = vmatprep.subr.bf16.mxu0 %v1506_v1  ;;  %v793_v15 = vrot.slane %v1488_v10, 1  ;;  %v1496_v20 = vld [vmem:[%s1568_s27 + $0x4] sm:$0xfc]  }
  0x1f   : > { %1368 = vmatpush3.bf16.msra.mxu1 %v1462_v16  ;;  %1375 = vmatprep.mubr.msk.bf16.mxu1 %vm1507_vm0, %v1506_v1  ;;  %v1490_v16 = vld [vmem:[%s1761_s1 + $0x118] sm:$0xff]   ;;  %v987_v23 = vrot.slane %v1496_v20, 2 }
  0x20   : > { %1369 = vmatprep.subr.bf16.mxu1 %v1506_v1 }
  0x21   : > { %1358 = vmatpush3.bf16.msra.mxu0 %v1460_v17  ;;  %v891_v17 = vor.u32 %v890_v13, %v887_v12  ;;  %v989_v25 = vsel %vm986_vm5, %v987_v23, %v988_v24 }
  0x22   : > { %1359 = vmatprep.subr.bf16.mxu0 %v1506_v1 }
  0x23   : > { %1370 = vmatpush3.bf16.msra.mxu1 %v1464_v18  ;;  %v1492_v18 = vld [vmem:[%s1761_s1 + $0x110] sm:$0xff]  }
  0x24   : > { %1371 = vmatprep.subr.bf16.mxu1 %v1506_v1 }
  0x25   : > { %1360 = vmatpush3.bf16.msra.mxu0 %v1461_v19  ;;  %v1494_v19 = vld [vmem:[%s1761_s1 + $0x108] sm:$0xff]  }
  0x26   : > { %1361 = vmatprep.subr.bf16.mxu0 %v1506_v1 }
  0x27   : > { %1372 = vmatpush3.bf16.msra.mxu1 %v1466_v22  ;;  %v1495_v22 = vld [vmem:[%s1761_s1 + $0x100] sm:$0xff]  }
  0x28   : > { %1373 = vmatprep.subr.bf16.mxu1 %v1506_v1 }
  0x29   : > { %1362 = vmatpush3.bf16.msra.mxu0 %v1463_v26  ;;  %v176_v26 = vld [vmem:[#allocation2] sm:$0xff] }
  0x2a   : > { %1379 = vmatprep.subr.bf16.mxu0 %v1506_v1 }
  0x2b   : > { %1374 = vmatpush3.bf16.msra.mxu1 %v1468_v34 }
  0x2c   : > { %1364 = vmatmul.mubr.msk.bf16.vlgmr.msra.gmra.mxu0 %vm172_vm1, %v380_v33  ;;  %1391 = vmatprep.subr.bf16.mxu1 %v1506_v1 }
  0x2d   : > { %1380 = vmatpush3.bf16.msra.mxu0 %v1467_v37  ;;  %1387 = vmatprep.mubr.msk.bf16.mxu0 %vm1507_vm0, %v1506_v1 }
  0x2e   : > { %1381 = vmatprep.subr.bf16.mxu0 %v1506_v1  ;;  %1376 = vmatmul.mubr.msk.bf16.vlgmr.msra.gmra.mxu1 %vm172_vm1, %v492_v38 }
  0x2f   : > { %1392 = vmatpush3.bf16.msra.mxu1 %v1473_v39  ;;  %1399 = vmatprep.mubr.msk.bf16.mxu1 %vm1507_vm0, %v1506_v1 }
  0x30   : > { %1393 = vmatprep.subr.bf16.mxu1 %v1506_v1 }
  0x31   : > { %1382 = vmatpush3.bf16.msra.mxu0 %v1469_v40 }
  0x32   : > { %1383 = vmatprep.subr.bf16.mxu0 %v1506_v1 }
  0x33   : > { %1394 = vmatpush3.bf16.msra.mxu1 %v1475_v44 }
  0x34   : > { %1395 = vmatprep.subr.bf16.mxu1 %v1506_v1 }
  0x35   : > { %1384 = vmatpush3.bf16.msra.mxu0 %v1472_v43 }
  0x36   : > { %1385 = vmatprep.subr.bf16.mxu0 %v1506_v1 }
  0x37   : > { %1396 = vmatpush3.bf16.msra.mxu1 %v1478_v51 }
  0x38   : > { %1397 = vmatprep.subr.bf16.mxu1 %v1506_v1 }
  0x39   : > { %1386 = vmatpush3.bf16.msra.mxu0 %v1474_v56 }
  0x3a   : > { %1403 = vmatprep.subr.bf16.mxu0 %v1506_v1 }
  0x3b   : > { %1398 = vmatpush3.bf16.msra.mxu1 %v1480_v59 }
  0x3c   : > { %1388 = vmatmul.mubr.msk.bf16.vlgmr.msra.gmra.mxu0 %vm172_vm1, %v590_v62  ;;  %1415 = vmatprep.subr.bf16.mxu1 %v1506_v1 }
  0x3d   : > { %1404 = vmatpush3.bf16.msra.mxu0 %v1479_v63  ;;  %1411 = vmatprep.mubr.msk.bf16.mxu0 %vm1507_vm0, %v1506_v1 }
  0x3e   : > { %1405 = vmatprep.subr.bf16.mxu0 %v1506_v1  ;;  %1400 = vmatmul.mubr.msk.bf16.vlgmr.msra.gmra.mxu1 %vm172_vm1, %v702_v0 }
  0x3f   : > { %1416 = vmatpush3.bf16.msra.mxu1 %v1485_v2  ;;  %1423 = vmatprep.mubr.msk.bf16.mxu1 %vm1507_vm0, %v1506_v1 }
  0x40   : > { %1417 = vmatprep.subr.bf16.mxu1 %v1506_v1 }
  0x41   : > { %1406 = vmatpush3.bf16.msra.mxu0 %v1481_v3 }
  0x42   : > { %1407 = vmatprep.subr.bf16.mxu0 %v1506_v1 }
  0x43   : > { %1418 = vmatpush3.bf16.msra.mxu1 %v1487_v5 }
  0x44   : > { %1419 = vmatprep.subr.bf16.mxu1 %v1506_v1 }
  0x45   : > { %1408 = vmatpush3.bf16.msra.mxu0 %v1484_v6 }
  0x46   : > { %1409 = vmatprep.subr.bf16.mxu0 %v1506_v1 }
  0x47   : > { %1420 = vmatpush3.bf16.msra.mxu1 %v1489_v9 }
  0x48   : > { %1421 = vmatprep.subr.bf16.mxu1 %v1506_v1 }
  0x49   : > { %1410 = vmatpush3.bf16.msra.mxu0 %v1486_v11 }
  0x4a   : > { %1427 = vmatprep.subr.bf16.mxu0 %v1506_v1 }
  0x4b   : > { %1422 = vmatpush3.bf16.msra.mxu1 %v1491_v14 }
  0x4c   : > { %1412 = vmatmul.mubr.msk.bf16.vlgmr.msra.gmra.mxu0 %vm172_vm1, %v793_v15 }
  0x4d   : > { %1428 = vmatpush3.bf16.msra.mxu0 %v1490_v16  ;;  %1435 = vmatprep.mubr.msk.bf16.mxu0 %vm1507_vm0, %v1506_v1 }
  0x4e   : > { %1429 = vmatprep.subr.bf16.mxu0 %v1506_v1  ;;  %1424 = vmatmul.mubr.msk.bf16.vlgmr.msra.gmra.mxu1 %vm172_vm1, %v891_v17 }
  0x51   : > { %1430 = vmatpush3.bf16.msra.mxu0 %v1492_v18 }
  0x52   : > { %1431 = vmatprep.subr.bf16.mxu0 %v1506_v1 }
  0x55   : > { %1432 = vmatpush3.bf16.msra.mxu0 %v1494_v19 }
  0x56   : > { %1433 = vmatprep.subr.bf16.mxu0 %v1506_v1 }
  0x59   : > { %1434 = vmatpush3.bf16.msra.mxu0 %v1495_v22 }
  0x5c   : > { %1436 = vmatmul.mubr.msk.bf16.vlgmr.msra.gmra.mxu0 %vm172_vm1, %v989_v25 }
  0xdc   : > { %v254_v27 = vpop.f32.mrf.mxu0 }
  0xdd   : > { %v261_v28 = vadd.f32 %v254_v27, %v176_v26 }
  0xde   : > { %v1341_v29 = vpop.f32.mrf.mxu0  ;;  %v351_v31 = vpop.f32.mrf.mxu1 }
  0xdf   : > { %263 = vst.msk [vmem:[#allocation2] sm:$0xff] %vm172_vm1, %v261_v28 }
  0xe0   : > { %v257_v32 = vpop.f32.mrf.mxu0  ;;  %v1353_v33 = vpop.f32.mrf.mxu1 }
  0xe1   : > { %v262_v34 = vadd.f32 %v257_v32, %v177_v30 }
  0xe2   : > { %v1342_v35 = vpop.f32.mrf.mxu0  ;;  %v354_v36 = vpop.f32.mrf.mxu1 }
  0xe3   : > { %264 = vst.msk [vmem:[#allocation2 + $0x8] sm:$0x1f] %vm174_vm6, %v262_v34  ;;  %v1277_v34 = vld [vmem:[%s1762_s2] ss:$0 sm:$0xff] }
  0xe4   : > { %v1354_v37 = vpop.f32.mrf.mxu1 }
  0xe6   : > { %v265_v38 = vld [vmem:[#allocation2] sm:$0xff] }
  0xe7   : > { %v358_v1 = vadd.f32 %v351_v31, %v265_v38 }
  0xe9   : > { %360 = vst.msk [vmem:[#allocation2] sm:$0xff] %vm172_vm1, %v358_v1 }
  0xea   : > { %v266_v39 = vld [vmem:[#allocation2 + $0x8] sm:$0x1f] }
  0xeb   : > { %v359_v40 = vadd.f32 %v354_v36, %v266_v39 }
  0xec   : > { %v442_v41 = vpop.f32.mrf.mxu0 }
  0xed   : > { %361 = vst.msk [vmem:[#allocation2 + $0x8] sm:$0x1f] %vm174_vm6, %v359_v40 }
  0xee   : > { %v1365_v42 = vpop.f32.mrf.mxu0  ;;  %v554_v43 = vpop.f32.mrf.mxu1 }
  0xf0   : > { %v362_v44 = vld [vmem:[#allocation2] sm:$0xff]  ;;  %v445_v45 = vpop.f32.mrf.mxu0  ;;  %v1377_v46 = vpop.f32.mrf.mxu1 }
  0xf1   : > { %v449_v47 = vadd.f32 %v442_v41, %v362_v44  ;;  %v1088_v41 = vld [vmem:[%s170_s21 + $0x4] sm:$0x7] }
  0xf2   : > { %v1366_v48 = vpop.f32.mrf.mxu0  ;;  %v557_v49 = vpop.f32.mrf.mxu1 }
  0xf3   : > { %451 = vst.msk [vmem:[#allocation2] sm:$0xff] %vm172_vm1, %v449_v47 }
  0xf4   : > { %v363_v50 = vld [vmem:[#allocation2 + $0x8] sm:$0x1f]  ;;  %v1378_v51 = vpop.f32.mrf.mxu1 }
  0xf5   : > { %v450_v52 = vadd.f32 %v445_v45, %v363_v50 }
  0xf7   : > { %452 = vst.msk [vmem:[#allocation2 + $0x8] sm:$0x1f] %vm174_vm6, %v450_v52 }
  0xfa   : > { %v453_v53 = vld [vmem:[#allocation2] sm:$0xff] }
  0xfb   : > { %v561_v54 = vadd.f32 %v554_v43, %v453_v53 }
  0xfc   : > { %v652_v55 = vpop.f32.mrf.mxu0 }
  0xfd   : > { %563 = vst.msk [vmem:[#allocation2] sm:$0xff] %vm172_vm1, %v561_v54 }
  0xfe   : > { %v454_v56 = vld [vmem:[#allocation2 + $0x8] sm:$0x1f]  ;;  %v1389_v57 = vpop.f32.mrf.mxu0  ;;  %v764_v58 = vpop.f32.mrf.mxu1 }
  0xff   : > { %v562_v59 = vadd.f32 %v557_v49, %v454_v56 }
 0x100   : > { %v655_v60 = vpop.f32.mrf.mxu0  ;;  %v1401_v61 = vpop.f32.mrf.mxu1 }
 0x101   : > { %564 = vst.msk [vmem:[#allocation2 + $0x8] sm:$0x1f] %vm174_vm6, %v562_v59 }
 0x102   : > { %v1390_v62 = vpop.f32.mrf.mxu0  ;;  %v767_v63 = vpop.f32.mrf.mxu1 }
 0x104   : > { %v565_v0 = vld [vmem:[#allocation2] sm:$0xff]  ;;  %v1402_v2 = vpop.f32.mrf.mxu1 }
 0x105   : > { %v659_v3 = vadd.f32 %v652_v55, %v565_v0 }
 0x107   : > { %661 = vst.msk [vmem:[#allocation2] sm:$0xff] %vm172_vm1, %v659_v3 }
 0x108   : > { %v566_v4 = vld [vmem:[#allocation2 + $0x8] sm:$0x1f] }
 0x109   : > { %v660_v5 = vadd.f32 %v655_v60, %v566_v4 }
 0x10b   : > { %662 = vst.msk [vmem:[#allocation2 + $0x8] sm:$0x1f] %vm174_vm6, %v660_v5 }
 0x10c   : > { %v855_v6 = vpop.f32.mrf.mxu0 }
 0x10e   : > { %v663_v7 = vld [vmem:[#allocation2] sm:$0xff]  ;;  %v1413_v8 = vpop.f32.mrf.mxu0  ;;  %v953_v9 = vpop.f32.mrf.mxu1 }
 0x10f   : > { %v771_v10 = vadd.f32 %v764_v58, %v663_v7 }
 0x110   : > { %v858_v11 = vpop.f32.mrf.mxu0  ;;  %v1425_v12 = vpop.f32.mrf.mxu1 }
 0x111   : > { %773 = vst.msk [vmem:[#allocation2] sm:$0xff] %vm172_vm1, %v771_v10 }
 0x112   : > { %v664_v13 = vld [vmem:[#allocation2 + $0x8] sm:$0x1f]  ;;  %v1414_v14 = vpop.f32.mrf.mxu0  ;;  %v956_v15 = vpop.f32.mrf.mxu1 }
 0x113   : > { %v772_v16 = vadd.f32 %v767_v63, %v664_v13 }
 0x114   : > { %v1426_v17 = vpop.f32.mrf.mxu1 }
 0x115   : > { %774 = vst.msk [vmem:[#allocation2 + $0x8] sm:$0x1f] %vm174_vm6, %v772_v16 }
 0x118   : > { %v775_v18 = vld [vmem:[#allocation2] sm:$0xff] }
 0x119   : > { %v862_v19 = vadd.f32 %v855_v6, %v775_v18 }
 0x11b   : > { %864 = vst.msk [vmem:[#allocation2] sm:$0xff] %vm172_vm1, %v862_v19 }
 0x11c   : > { %v776_v20 = vld [vmem:[#allocation2 + $0x8] sm:$0x1f]  ;;  %v1051_v21 = vpop.f32.mrf.mxu0 }
 0x11d   : > { %v863_v22 = vadd.f32 %v858_v11, %v776_v20 }
 0x11e   : > { %v1437_v23 = vpop.f32.mrf.mxu0 }
 0x11f   : > { %865 = vst.msk [vmem:[#allocation2 + $0x8] sm:$0x1f] %vm174_vm6, %v863_v22 }
 0x120   : > { %v1054_v24 = vpop.f32.mrf.mxu0 }
 0x122   : > { %v866_v25 = vld [vmem:[#allocation2] sm:$0xff]  ;;  %v1438_v26 = vpop.f32.mrf.mxu0 }
 0x123   : > { %v960_v27 = vadd.f32 %v953_v9, %v866_v25 }
 0x125   : > { %962 = vst.msk [vmem:[#allocation2] sm:$0xff] %vm172_vm1, %v960_v27 }
 0x126   : > { %v867_v28 = vld [vmem:[#allocation2 + $0x8] sm:$0x1f] }
 0x127   : > { %v961_v29 = vadd.f32 %v956_v15, %v867_v28 }
 0x129   : > { %963 = vst.msk [vmem:[#allocation2 + $0x8] sm:$0x1f] %vm174_vm6, %v961_v29 }
 0x12c   : > { %v964_v30 = vld [vmem:[#allocation2] sm:$0xff] }
 0x12d   : > { %v1058_v31 = vadd.f32 %v1051_v21, %v964_v30 }
 0x12f   : > { %1060 = vst.msk [vmem:[#allocation2] sm:$0xff] %vm172_vm1, %v1058_v31 }
 0x130   : > { %v965_v32 = vld [vmem:[#allocation2 + $0x8] sm:$0x1f] }
 0x131   : > { %v1059_v33 = vadd.f32 %v1054_v24, %v965_v32 }
 0x133   : > { %1061 = vst.msk [vmem:[#allocation2 + $0x8] sm:$0x1f] %vm174_vm6, %v1059_v33 }
 0x136   : > { %v1062_v35 = vld [vmem:[#allocation2] sm:$0xff] }
 0x137   : > { %v1071_v36 = vadd.f32 %v1277_v34, %v1062_v35 }
 0x139   : > { %v1073_v37 = vmax.f32 %v1071_v36, 0.0 }
 0x13a   : > { %v1063_v38 = vld [vmem:[#allocation2 + $0x8] sm:$0x1f] }
 0x13b   : > { %v1284_v1 = vpack.c.bf16 %v1073_v37, %v1073_v37  ;;  %v1072_v39 = vadd.f32 %v1277_v34, %v1063_v38 }
 0x13d   : > { %1084 = vst.msk [vmem:[%s170_s21] sm:$0xf] %vm1083_vm7, %v1284_v1  ;;  %v1074_v40 = vmax.f32 %v1072_v39, 0.0 }
 0x13f   : > { %v1285_v42 = vpack.c.bf16 %v1074_v40, %v1074_v40 }
 0x141   : > { %v1089_v43 = vsel %vm1087_vm10, %v1285_v42, %v1088_v41 }
 0x142   : > { %1090 = vst [vmem:[%s170_s21 + $0x4] sm:$0x7] %v1089_v43 }
 0x143 PF: > { %s13_s12 = sadd.s32 1, %s1504_s12  }
 0x144   : > { %p10_p4 = scmp.ge.s32.totalorder %s13_s12, 4  }
 0x146   :  { %12 = sbr.rel (!%p10_p4) target bundleno = 1 (0x1), region = 70 }

// kernel: forward.7
= control target key start
LH: loop header
LB: loop body
LE: loop exit
PB: predicated region body
PF: predicated region fallthrough
CT: control target
= control target key end

     0   :  { %v169_v36 = vlaneseq  ;;  %v2066_v37 = vmov 1966171168   ;;  %vm953_vm0 = vcmask 523264   ;;  %s2680_s0 = inlined_call_operand.vmem [shape: bf16[2,576], index: 0, kind: input, shape index: {}]   ;;  %s2681_s1 = inlined_call_operand.vmem [shape: bf16[576,512], index: 1, kind: input, shape index: {}]   ;;  %s2682_s2 = inlined_call_operand.vmem [shape: f32[1,512], index: 2, kind: input, shape index: {}]   ;;  %s2683_s3 = inlined_call_operand.vmem [shape: bf16[512,128], index: 3, kind: input, shape index: {}]   ;;  %s2684_s4 = inlined_call_operand.vmem [shape: f32[1,128], index: 4, kind: input, shape index: {}]   ;;  %s2685_s5 = inlined_call_operand.hbm [shape: f32[2,128], index: 5, kind: output, shape index: {}]  }
   0x1   :  { %v1795_v0 = vld [vmem:[%s2681_s1 + $0xe4] ss:$16 sps:$4 sm:$0xff]   ;;  %v1799_v2 = vld [vmem:[%s2681_s1 + $0xe0] ss:$16 sps:$4 sm:$0xff]   ;;  %v192_v38 = vunpack.c.l.s4 %v2066_v37  ;;  %v1924_v37 = vld [vmem:[%s2681_s1 + $0x4c] ss:$16 sps:$4 sm:$0xff]  }
   0x2   :  { %v1797_v1 = vld [vmem:[%s2681_s1 + $0x2e4] ss:$16 sps:$4 sm:$0xff]   ;;  %957 = vmatprep.subr.bf16.mxu0 %v1795_v0  ;;  %v1800_v3 = vld [vmem:[%s2681_s1 + $0x2e0] ss:$16 sps:$4 sm:$0xff]   ;;  %v2216_v42 = vshrl.u32 %v169_v36, 7 }
   0x3   :  { %998 = vmatprep.subr.bf16.mxu1 %v1797_v1  ;;  %v1801_v4 = vld [vmem:[%s2681_s1 + $0xc4] ss:$16 sps:$4 sm:$0xff]   ;;  %958 = vmatpush1.bf16.msra.mxu0 %v1799_v2  ;;  %v1805_v6 = vld [vmem:[%s2681_s1 + $0xc0] ss:$16 sps:$4 sm:$0xff]   ;;  %v193_v43 = vunpack.c.0.s8 %v192_v38  ;;  %v1919_v36 = vld [vmem:[%s2681_s1 + $0x2e8] ss:$16 sps:$4 sm:$0xff]  }
   0x4   :  { %999 = vmatpush1.bf16.msra.mxu1 %v1800_v3  ;;  %v1803_v5 = vld [vmem:[%s2681_s1 + $0x2c4] ss:$16 sps:$4 sm:$0xff]   ;;  %959 = vmatprep.subr.bf16.mxu0 %v1801_v4  ;;  %v1806_v7 = vld [vmem:[%s2681_s1 + $0x2c0] ss:$16 sps:$4 sm:$0xff]   ;;  %v1927_v38 = vld [vmem:[%s2681_s1 + $0x2cc] ss:$16 sps:$4 sm:$0xff]  }
   0x5   :  { %1000 = vmatprep.subr.bf16.mxu1 %v1803_v5  ;;  %v1807_v8 = vld [vmem:[%s2681_s1 + $0xa4] ss:$16 sps:$4 sm:$0xff]   ;;  %v1811_v10 = vld [vmem:[%s2681_s1 + $0xa0] ss:$16 sps:$4 sm:$0xff]   ;;  %v2234_v49 = vsub.s32 %v193_v43, %v2216_v42  ;;  %v1933_v43 = vld [vmem:[%s2681_s1 + $0x2ac] ss:$16 sps:$4 sm:$0xff]  }
   0x6   :  { %v1809_v9 = vld [vmem:[%s2681_s1 + $0x2a4] ss:$16 sps:$4 sm:$0xff]   ;;  %v1812_v11 = vld [vmem:[%s2681_s1 + $0x2a0] ss:$16 sps:$4 sm:$0xff]  }
   0x7   :  { %960 = vmatpush1.bf16.msra.mxu0 %v1805_v6  ;;  %v1813_v12 = vld [vmem:[%s2681_s1 + $0x84] ss:$16 sps:$4 sm:$0xff]   ;;  %v1817_v14 = vld [vmem:[%s2681_s1 + $0x80] ss:$16 sps:$4 sm:$0xff]  }
   0x8   :  { %1001 = vmatpush1.bf16.msra.mxu1 %v1806_v7  ;;  %961 = vmatprep.subr.bf16.mxu0 %v1807_v8  ;;  %v1815_v13 = vld [vmem:[%s2681_s1 + $0x284] ss:$16 sps:$4 sm:$0xff]   ;;  %v1818_v15 = vld [vmem:[%s2681_s1 + $0x280] ss:$16 sps:$4 sm:$0xff]  }
   0x9   :  { %1002 = vmatprep.subr.bf16.mxu1 %v1809_v9  ;;  %v1819_v16 = vld [vmem:[%s2681_s1 + $0x64] ss:$16 sps:$4 sm:$0xff]   ;;  %v1823_v18 = vld [vmem:[%s2681_s1 + $0x60] ss:$16 sps:$4 sm:$0xff]  }
   0xa   :  { %v1821_v17 = vld [vmem:[%s2681_s1 + $0x264] ss:$16 sps:$4 sm:$0xff]   ;;  %v1824_v19 = vld [vmem:[%s2681_s1 + $0x260] ss:$16 sps:$4 sm:$0xff]  }
   0xb   :  { %962 = vmatpush1.bf16.msra.mxu0 %v1811_v10  ;;  %v1825_v20 = vld [vmem:[%s2681_s1 + $0x44] ss:$16 sps:$4 sm:$0xff]   ;;  %v1829_v22 = vld [vmem:[%s2681_s1 + $0x40] ss:$16 sps:$4 sm:$0xff]  }
   0xc   :  { %1003 = vmatpush1.bf16.msra.mxu1 %v1812_v11  ;;  %963 = vmatprep.subr.bf16.mxu0 %v1813_v12  ;;  %v1827_v21 = vld [vmem:[%s2681_s1 + $0x244] ss:$16 sps:$4 sm:$0xff]   ;;  %v1830_v23 = vld [vmem:[%s2681_s1 + $0x240] ss:$16 sps:$4 sm:$0xff]  }
   0xd   :  { %1004 = vmatprep.subr.bf16.mxu1 %v1815_v13  ;;  %v1831_v24 = vld [vmem:[%s2681_s1 + $0x24] ss:$16 sps:$4 sm:$0xff]   ;;  %v1835_v26 = vld [vmem:[%s2681_s1 + $0x20] ss:$16 sps:$4 sm:$0xff]   ;;  %v1897_v13 = vld [vmem:[%s2681_s1 + $0xec] ss:$16 sps:$4 sm:$0xff]  }
   0xe   :  { %v1833_v25 = vld [vmem:[%s2681_s1 + $0x224] ss:$16 sps:$4 sm:$0xff]   ;;  %v1836_v27 = vld [vmem:[%s2681_s1 + $0x220] ss:$16 sps:$4 sm:$0xff]  }
   0xf   :  { %964 = vmatpush1.bf16.msra.mxu0 %v1817_v14  ;;  %v1837_v28 = vld [vmem:[%s2681_s1 + $0x4] ss:$16 sps:$4 sm:$0xff]   ;;  %v1841_v30 = vld [vmem:[%s2681_s1] ss:$16 sps:$4 sm:$0xff]  }
  0x10   :  { %1005 = vmatpush1.bf16.msra.mxu1 %v1818_v15  ;;  %965 = vmatprep.subr.bf16.mxu0 %v1819_v16  ;;  %v1839_v29 = vld [vmem:[%s2681_s1 + $0x204] ss:$16 sps:$4 sm:$0xff]   ;;  %v1842_v31 = vld [vmem:[%s2681_s1 + $0x200] ss:$16 sps:$4 sm:$0xff]   ;;  %v1895_v16 = vld [vmem:[%s2681_s1 + $0xe8] ss:$16 sps:$4 sm:$0xff]  }
  0x11   :  { %1006 = vmatprep.subr.bf16.mxu1 %v1821_v17  ;;  %v1843_v32 = vld [vmem:[%s2681_s1 + $0x1e4] ss:$16 sps:$4 sm:$0xff]   ;;  %v1847_v34 = vld [vmem:[%s2681_s1 + $0x1e0] ss:$16 sps:$4 sm:$0xff]  }
  0x12   :  { %v1845_v33 = vld [vmem:[%s2681_s1 + $0x3e4] ss:$16 sps:$4 sm:$0xff]   ;;  %v1848_v35 = vld [vmem:[%s2681_s1 + $0x3e0] ss:$16 sps:$4 sm:$0xff]  }
  0x13   :  { %966 = vmatpush1.bf16.msra.mxu0 %v1823_v18  ;;  %v1849_v39 = vld [vmem:[%s2681_s1 + $0x1c4] ss:$16 sps:$4 sm:$0xff]   ;;  %v1853_v41 = vld [vmem:[%s2681_s1 + $0x1c0] ss:$16 sps:$4 sm:$0xff]   ;;  %v1903_v18 = vld [vmem:[%s2681_s1 + $0xcc] ss:$16 sps:$4 sm:$0xff]  }
  0x14   :  { %1007 = vmatpush1.bf16.msra.mxu1 %v1824_v19  ;;  %967 = vmatprep.subr.bf16.mxu0 %v1825_v20  ;;  %v1851_v40 = vld [vmem:[%s2681_s1 + $0x3c4] ss:$16 sps:$4 sm:$0xff]   ;;  %v1854_v44 = vld [vmem:[%s2681_s1 + $0x3c0] ss:$16 sps:$4 sm:$0xff]   ;;  %v1901_v20 = vld [vmem:[%s2681_s1 + $0xc8] ss:$16 sps:$4 sm:$0xff]  }
  0x15   :  { %1008 = vmatprep.subr.bf16.mxu1 %v1827_v21  ;;  %v1855_v45 = vld [vmem:[%s2681_s1 + $0x1a4] ss:$16 sps:$4 sm:$0xff]   ;;  %v1859_v47 = vld [vmem:[%s2681_s1 + $0x1a0] ss:$16 sps:$4 sm:$0xff]  }
  0x16   :  { %v1857_v46 = vld [vmem:[%s2681_s1 + $0x3a4] ss:$16 sps:$4 sm:$0xff]   ;;  %v1860_v48 = vld [vmem:[%s2681_s1 + $0x3a0] ss:$16 sps:$4 sm:$0xff]  }
  0x17   :  { %968 = vmatpush1.bf16.msra.mxu0 %v1829_v22  ;;  %v1861_v50 = vld [vmem:[%s2681_s1 + $0x184] ss:$16 sps:$4 sm:$0xff]   ;;  %v1865_v53 = vld [vmem:[%s2681_s1 + $0x180] ss:$16 sps:$4 sm:$0xff]   ;;  %v1909_v22 = vld [vmem:[%s2681_s1 + $0xac] ss:$16 sps:$4 sm:$0xff]  }
  0x18   :  { %1009 = vmatpush1.bf16.msra.mxu1 %v1830_v23  ;;  %969 = vmatprep.subr.bf16.mxu0 %v1831_v24  ;;  %v1863_v51 = vld [vmem:[%s2681_s1 + $0x384] ss:$16 sps:$4 sm:$0xff]   ;;  %v1866_v55 = vld [vmem:[%s2681_s1 + $0x380] ss:$16 sps:$4 sm:$0xff]   ;;  %v2067_v23 = vmov 0  }
  0x19   :  { %1010 = vmatprep.subr.bf16.mxu1 %v1833_v25  ;;  %v2245_v52 = vld [vmem:[%s2680_s0] sm:$0x1f] }
  0x1a   :  { %v197_v54 = vrot.slane %v2245_v52, %v2234_v49  ;;  %v1867_v56 = vld [vmem:[%s2681_s1 + $0x164] ss:$16 sps:$4 sm:$0xff]   ;;  %v1871_v59 = vld [vmem:[%s2681_s1 + $0x160] ss:$16 sps:$4 sm:$0xff]   ;;  %v190_v24 = vcombine.high %v2245_v52, %v2245_v52  ;;  %v1940_v52 = vld [vmem:[%s2681_s1 + $0x1e8] ss:$16 sps:$4 sm:$0xff]  }
  0x1b   :  { %970 = vmatpush1.bf16.msra.mxu0 %v1835_v26  ;;  %v1869_v57 = vld [vmem:[%s2681_s1 + $0x364] ss:$16 sps:$4 sm:$0xff]   ;;  %v1872_v61 = vld [vmem:[%s2681_s1 + $0x360] ss:$16 sps:$4 sm:$0xff]   ;;  %v1907_v26 = vld [vmem:[%s2681_s1 + $0xa8] ss:$16 sps:$4 sm:$0xff]  }
  0x1c   :  { %1011 = vmatpush1.bf16.msra.mxu1 %v1836_v27  ;;  %971 = vmatprep.subr.bf16.mxu0 %v1837_v28  ;;  %v205_v58 = vcombine.high %v197_v54, %v197_v54  ;;  %v1873_v62 = vld [vmem:[%s2681_s1 + $0x144] ss:$16 sps:$4 sm:$0xff]   ;;  %v1877_v1 = vld [vmem:[%s2681_s1 + $0x140] ss:$16 sps:$4 sm:$0xff]   ;;  %v2305_v10 = vrot.slane %v197_v54, %v2234_v49  ;;  %v1915_v28 = vld [vmem:[%s2681_s1 + $0x8c] ss:$16 sps:$4 sm:$0xff]  }
  0x1d   :  { %1012 = vmatprep.subr.bf16.mxu1 %v1839_v29  ;;  %v1875_v63 = vld [vmem:[%s2681_s1 + $0x344] ss:$16 sps:$4 sm:$0xff]   ;;  %v1878_v2 = vld [vmem:[%s2681_s1 + $0x340] ss:$16 sps:$4 sm:$0xff]   ;;  %v204_v29 = vrot.slane %v190_v24, %v2234_v49  ;;  %v1948_v54 = vld [vmem:[%s2681_s1 + $0x1cc] ss:$16 sps:$4 sm:$0xff]  }
  0x1e   :  { %v226_v60 = vrot.slane %v205_v58, %v2234_v49  ;;  %v1879_v3 = vld [vmem:[%s2681_s1 + $0x124] ss:$16 sps:$4 sm:$0xff]   ;;  %v1883_v5 = vld [vmem:[%s2681_s1 + $0x120] ss:$16 sps:$4 sm:$0xff]   ;;  %v2318_v14 = vcombine.high %v2305_v10, %v2305_v10  ;;  %v1954_v58 = vld [vmem:[%s2681_s1 + $0x1ac] ss:$16 sps:$4 sm:$0xff]  }
  0x1f   :  { %972 = vmatpush1.bf16.msra.mxu0 %v1841_v30  ;;  %v1881_v4 = vld [vmem:[%s2681_s1 + $0x324] ss:$16 sps:$4 sm:$0xff]   ;;  %v1884_v6 = vld [vmem:[%s2681_s1 + $0x320] ss:$16 sps:$4 sm:$0xff]  }
  0x20   :  { %1013 = vmatpush1.bf16.msra.mxu1 %v1842_v31  ;;  %973 = vmatprep.subr.bf16.mxu0 %v1843_v32  ;;  %v2274_v0 = vcombine.high %v226_v60, %v226_v60  ;;  %v1885_v7 = vld [vmem:[%s2681_s1 + $0x104] ss:$16 sps:$4 sm:$0xff]   ;;  %v1889_v9 = vld [vmem:[%s2681_s1 + $0x100] ss:$16 sps:$4 sm:$0xff]   ;;  %v1913_v31 = vld [vmem:[%s2681_s1 + $0x88] ss:$16 sps:$4 sm:$0xff]  }
  0x21   :  { %1014 = vmatprep.subr.bf16.mxu1 %v1845_v33  ;;  %989 = vmatprep.mubr.bf16.mxu0 %v226_v60  ;;  %v1887_v8 = vld [vmem:[%s2681_s1 + $0x304] ss:$16 sps:$4 sm:$0xff]   ;;  %v1890_v11 = vld [vmem:[%s2681_s1 + $0x300] ss:$16 sps:$4 sm:$0xff]   ;;  %v1918_v32 = vld [vmem:[%s2681_s1 + $0x6c] ss:$16 sps:$4 sm:$0xff]  }
  0x22   :  { %1030 = vmatprep.mubr.bf16.mxu1 %v2274_v0  ;;  %v1894_v12 = vld [vmem:[%s2681_s1 + $0x464] ss:$16 sps:$4 sm:$0xff]   ;;  %v1892_v15 = vld [vmem:[%s2681_s1 + $0x460] ss:$16 sps:$4 sm:$0xff]   ;;  %v1921_v33 = vld [vmem:[%s2681_s1 + $0x2ec] ss:$16 sps:$4 sm:$0xff]  }
  0x23   :  { %974 = vmatpush2.bf16.msra.mxu0 %v1847_v34  ;;  %v1900_v17 = vld [vmem:[%s2681_s1 + $0x444] ss:$16 sps:$4 sm:$0xff]   ;;  %v1898_v19 = vld [vmem:[%s2681_s1 + $0x440] ss:$16 sps:$4 sm:$0xff]   ;;  %v2375_v34 = vrot.slane %v204_v29, %v2234_v49  ;;  %v1937_v49 = vld [vmem:[%s2681_s1 + $0x288] ss:$16 sps:$4 sm:$0xff]  }
  0x24   :  { %1015 = vmatpush2.bf16.msra.mxu1 %v1848_v35  ;;  %975 = vmatprep.subr.bf16.mxu0 %v1849_v39  ;;  %v1906_v21 = vld [vmem:[%s2681_s1 + $0x424] ss:$16 sps:$4 sm:$0xff]   ;;  %v1904_v25 = vld [vmem:[%s2681_s1 + $0x420] ss:$16 sps:$4 sm:$0xff]   ;;  %v1916_v35 = vld [vmem:[%s2681_s1 + $0x68] ss:$16 sps:$4 sm:$0xff]  }
  0x25   :  { %1016 = vmatprep.subr.bf16.mxu1 %v1851_v40  ;;  %v1912_v27 = vld [vmem:[%s2681_s1 + $0x404] ss:$16 sps:$4 sm:$0xff]   ;;  %v1910_v30 = vld [vmem:[%s2681_s1 + $0x400] ss:$16 sps:$4 sm:$0xff]   ;;  %v1922_v39 = vld [vmem:[%s2681_s1 + $0x48] ss:$16 sps:$4 sm:$0xff]  }
  0x26   :  { %v1925_v40 = vld [vmem:[%s2681_s1 + $0x2c8] ss:$16 sps:$4 sm:$0xff]  }
  0x27   :  { %976 = vmatpush2.bf16.msra.mxu0 %v1853_v41  ;;  %v1930_v41 = vld [vmem:[%s2681_s1 + $0x2c] ss:$16 sps:$4 sm:$0xff]  }
  0x28   :  { %1017 = vmatpush2.bf16.msra.mxu1 %v1854_v44  ;;  %977 = vmatprep.subr.bf16.mxu0 %v1855_v45  ;;  %v1928_v44 = vld [vmem:[%s2681_s1 + $0x28] ss:$16 sps:$4 sm:$0xff]  }
  0x29   :  { %1018 = vmatprep.subr.bf16.mxu1 %v1857_v46  ;;  %v1931_v45 = vld [vmem:[%s2681_s1 + $0x2a8] ss:$16 sps:$4 sm:$0xff]   ;;  %v1936_v46 = vld [vmem:[%s2681_s1 + $0xc] ss:$16 sps:$4 sm:$0xff]  }
  0x2b   :  { %978 = vmatpush2.bf16.msra.mxu0 %v1859_v47  ;;  %v1939_v47 = vld [vmem:[%s2681_s1 + $0x28c] ss:$16 sps:$4 sm:$0xff]  }
  0x2c   :  { %1019 = vmatpush2.bf16.msra.mxu1 %v1860_v48  ;;  %979 = vmatprep.subr.bf16.mxu0 %v1861_v50  ;;  %v1934_v48 = vld [vmem:[%s2681_s1 + $0x8] ss:$16 sps:$4 sm:$0xff]   ;;  %v1942_v50 = vld [vmem:[%s2681_s1 + $0x1ec] ss:$16 sps:$4 sm:$0xff]  }
  0x2d   :  { %1020 = vmatprep.subr.bf16.mxu1 %v1863_v51  ;;  %v1945_v51 = vld [vmem:[%s2681_s1 + $0x26c] ss:$16 sps:$4 sm:$0xff]  }
  0x2f   :  { %980 = vmatpush2.bf16.msra.mxu0 %v1865_v53  ;;  %v1943_v53 = vld [vmem:[%s2681_s1 + $0x268] ss:$16 sps:$4 sm:$0xff]  }
  0x30   :  { %1021 = vmatpush2.bf16.msra.mxu1 %v1866_v55  ;;  %981 = vmatprep.subr.bf16.mxu0 %v1867_v56  ;;  %v1951_v55 = vld [vmem:[%s2681_s1 + $0x24c] ss:$16 sps:$4 sm:$0xff]   ;;  %v1946_v56 = vld [vmem:[%s2681_s1 + $0x1c8] ss:$16 sps:$4 sm:$0xff]  }
  0x31   :  { %1022 = vmatprep.subr.bf16.mxu1 %v1869_v57  ;;  %v1949_v57 = vld [vmem:[%s2681_s1 + $0x248] ss:$16 sps:$4 sm:$0xff]  }
  0x33   :  { %982 = vmatpush2.bf16.msra.mxu0 %v1871_v59  ;;  %v1957_v59 = vld [vmem:[%s2681_s1 + $0x22c] ss:$16 sps:$4 sm:$0xff]  }
  0x34   :  { %1023 = vmatpush2.bf16.msra.mxu1 %v1872_v61  ;;  %983 = vmatprep.subr.bf16.mxu0 %v1873_v62  ;;  %v1955_v61 = vld [vmem:[%s2681_s1 + $0x228] ss:$16 sps:$4 sm:$0xff]   ;;  %v1960_v62 = vld [vmem:[%s2681_s1 + $0x18c] ss:$16 sps:$4 sm:$0xff]  }
  0x35   :  { %1024 = vmatprep.subr.bf16.mxu1 %v1875_v63  ;;  %v1963_v63 = vld [vmem:[%s2681_s1 + $0x20c] ss:$16 sps:$4 sm:$0xff]  }
  0x37   :  { %984 = vmatpush2.bf16.msra.mxu0 %v1877_v1  ;;  %v1961_v1 = vld [vmem:[%s2681_s1 + $0x208] ss:$16 sps:$4 sm:$0xff]  }
  0x38   :  { %1025 = vmatpush2.bf16.msra.mxu1 %v1878_v2  ;;  %985 = vmatprep.subr.bf16.mxu0 %v1879_v3  ;;  %v1966_v2 = vld [vmem:[%s2681_s1 + $0x16c] ss:$16 sps:$4 sm:$0xff]  }
  0x39   :  { %1026 = vmatprep.subr.bf16.mxu1 %v1881_v4  ;;  %v1969_v3 = vld [vmem:[%s2681_s1 + $0x3ec] ss:$16 sps:$4 sm:$0xff]   ;;  %v1964_v4 = vld [vmem:[%s2681_s1 + $0x168] ss:$16 sps:$4 sm:$0xff]  }
  0x3b   :  { %986 = vmatpush2.bf16.msra.mxu0 %v1883_v5  ;;  %v1967_v5 = vld [vmem:[%s2681_s1 + $0x3e8] ss:$16 sps:$4 sm:$0xff]  }
  0x3c   :  { %1027 = vmatpush2.bf16.msra.mxu1 %v1884_v6  ;;  %987 = vmatprep.subr.bf16.mxu0 %v1885_v7  ;;  %v1972_v6 = vld [vmem:[%s2681_s1 + $0x14c] ss:$16 sps:$4 sm:$0xff]  }
  0x3d   :  { %1028 = vmatprep.subr.bf16.mxu1 %v1887_v8  ;;  %v1975_v7 = vld [vmem:[%s2681_s1 + $0x3cc] ss:$16 sps:$4 sm:$0xff]   ;;  %v1970_v8 = vld [vmem:[%s2681_s1 + $0x148] ss:$16 sps:$4 sm:$0xff]  }
  0x3f   :  { %988 = vmatpush2.bf16.msra.mxu0 %v1889_v9  ;;  %v1973_v9 = vld [vmem:[%s2681_s1 + $0x3c8] ss:$16 sps:$4 sm:$0xff]  }
  0x40   :  { %1029 = vmatpush2.bf16.msra.mxu1 %v1890_v11  ;;  %1047 = vmatprep.subr.bf16.mxu0 %v1894_v12  ;;  %v1978_v11 = vld [vmem:[%s2681_s1 + $0x12c] ss:$16 sps:$4 sm:$0xff]  }
  0x41   :  { %1080 = vmatprep.subr.bf16.mxu1 %v1897_v13  ;;  %v1981_v12 = vld [vmem:[%s2681_s1 + $0x3ac] ss:$16 sps:$4 sm:$0xff]  }
  0x42   :  { %990 = vmatmul.mubr.bf16.vlgmr.msra.gmra.mxu0 %v2305_v10 }
  0x43   :  { %1031 = vmatmul.mubr.bf16.vlgmr.msra.gmra.mxu1 %v2318_v14  ;;  %1048 = vmatpush1.bf16.msra.mxu0 %v1892_v15 }
  0x44   :  { %1081 = vmatpush1.bf16.msra.mxu1 %v1895_v16  ;;  %1049 = vmatprep.subr.bf16.mxu0 %v1900_v17 }
  0x45   :  { %1082 = vmatprep.subr.bf16.mxu1 %v1903_v18  ;;  %1071 = vmatprep.mubr.bf16.mxu0 %v2067_v23 }
  0x46   :  { %1112 = vmatprep.mubr.bf16.mxu1 %v226_v60  ;;  %v1952_v60 = vld [vmem:[%s2681_s1 + $0x1a8] ss:$16 sps:$4 sm:$0xff]  }
  0x47   :  { %1050 = vmatpush1.bf16.msra.mxu0 %v1898_v19 }
  0x48   :  { %1083 = vmatpush1.bf16.msra.mxu1 %v1901_v20  ;;  %1051 = vmatprep.subr.bf16.mxu0 %v1906_v21 }
  0x49   :  { %1084 = vmatprep.subr.bf16.mxu1 %v1909_v22 }
  0x4b   :  { %1052 = vmatpush1.bf16.msra.mxu0 %v1904_v25 }
  0x4c   :  { %1085 = vmatpush1.bf16.msra.mxu1 %v1907_v26  ;;  %1053 = vmatprep.subr.bf16.mxu0 %v1912_v27 }
  0x4d   :  { %1086 = vmatprep.subr.bf16.mxu1 %v1915_v28 }
  0x4f   :  { %1054 = vmatpush1.bf16.msra.mxu0 %v1910_v30 }
  0x50   :  { %1087 = vmatpush1.bf16.msra.mxu1 %v1913_v31  ;;  %1121 = vmatprep.subr.bf16.mxu0 %v1921_v33 }
  0x51   :  { %1088 = vmatprep.subr.bf16.mxu1 %v1918_v32 }
  0x52   :  { %1713 = vmatmul.mubr.msk.bf16.vlgmr.msra.gmra.mxu0 %vm953_vm0, %v2375_v34 }
  0x53   :  { %1122 = vmatpush1.bf16.msra.mxu0 %v1919_v36  ;;  %1153 = vmatprep.mubr.bf16.mxu0 %v2274_v0  ;;  %v1958_v0 = vld [vmem:[%s2681_s1 + $0x188] ss:$16 sps:$4 sm:$0xff]  }
  0x54   :  { %1089 = vmatpush1.bf16.msra.mxu1 %v1916_v35  ;;  %1123 = vmatprep.subr.bf16.mxu0 %v1927_v38 }
  0x55   :  { %1090 = vmatprep.subr.bf16.mxu1 %v1924_v37 }
  0x57   :  { %1124 = vmatpush1.bf16.msra.mxu0 %v1925_v40 }
  0x58   :  { %1091 = vmatpush1.bf16.msra.mxu1 %v1922_v39  ;;  %1125 = vmatprep.subr.bf16.mxu0 %v1933_v43 }
  0x59   :  { %1092 = vmatprep.subr.bf16.mxu1 %v1930_v41 }
  0x5b   :  { %1126 = vmatpush1.bf16.msra.mxu0 %v1931_v45 }
  0x5c   :  { %1093 = vmatpush1.bf16.msra.mxu1 %v1928_v44  ;;  %1127 = vmatprep.subr.bf16.mxu0 %v1939_v47 }
  0x5d   :  { %1094 = vmatprep.subr.bf16.mxu1 %v1936_v46 }
  0x5f   :  { %1128 = vmatpush1.bf16.msra.mxu0 %v1937_v49 }
  0x60   :  { %1095 = vmatpush1.bf16.msra.mxu1 %v1934_v48  ;;  %1129 = vmatprep.subr.bf16.mxu0 %v1945_v51 }
  0x61   :  { %1096 = vmatprep.subr.bf16.mxu1 %v1942_v50 }
  0x63   :  { %1130 = vmatpush1.bf16.msra.mxu0 %v1943_v53 }
  0x64   :  { %1097 = vmatpush2.bf16.msra.mxu1 %v1940_v52  ;;  %1131 = vmatprep.subr.bf16.mxu0 %v1951_v55 }
  0x65   :  { %1098 = vmatprep.subr.bf16.mxu1 %v1948_v54 }
  0x67   :  { %1132 = vmatpush1.bf16.msra.mxu0 %v1949_v57 }
  0x68   :  { %1099 = vmatpush2.bf16.msra.mxu1 %v1946_v56  ;;  %1133 = vmatprep.subr.bf16.mxu0 %v1957_v59 }
  0x69   :  { %1100 = vmatprep.subr.bf16.mxu1 %v1954_v58 }
  0x6b   :  { %1134 = vmatpush1.bf16.msra.mxu0 %v1955_v61 }
  0x6c   :  { %1101 = vmatpush2.bf16.msra.mxu1 %v1952_v60  ;;  %1135 = vmatprep.subr.bf16.mxu0 %v1963_v63 }
  0x6d   :  { %1102 = vmatprep.subr.bf16.mxu1 %v1960_v62 }
  0x6f   :  { %1136 = vmatpush1.bf16.msra.mxu0 %v1961_v1 }
  0x70   :  { %1103 = vmatpush2.bf16.msra.mxu1 %v1958_v0  ;;  %1137 = vmatprep.subr.bf16.mxu0 %v1969_v3 }
  0x71   :  { %1104 = vmatprep.subr.bf16.mxu1 %v1966_v2 }
  0x73   :  { %1138 = vmatpush2.bf16.msra.mxu0 %v1967_v5 }
  0x74   :  { %1105 = vmatpush2.bf16.msra.mxu1 %v1964_v4  ;;  %1139 = vmatprep.subr.bf16.mxu0 %v1975_v7 }
  0x75   :  { %1106 = vmatprep.subr.bf16.mxu1 %v1972_v6 }
  0x76   :  { %10 = vsyncpa [#allocation3], 0  ;;  %v1976_v13 = vld [vmem:[%s2681_s1 + $0x128] ss:$16 sps:$4 sm:$0xff]   ;;  %v1984_v16 = vld [vmem:[%s2681_s1 + $0x10c] ss:$16 sps:$4 sm:$0xff]  }
  0x77   :  { %1140 = vmatpush2.bf16.msra.mxu0 %v1973_v9  ;;  %v1979_v15 = vld [vmem:[%s2681_s1 + $0x3a8] ss:$16 sps:$4 sm:$0xff]   ;;  %v1987_v17 = vld [vmem:[%s2681_s1 + $0x38c] ss:$16 sps:$4 sm:$0xff]   ;;  %v2014_v38 = vld [vmem:[%s2683_s3 + $0x70] sm:$0xff]   ;;  %v171_v7 = vsub.s32 0, %v2216_v42 }
  0x78   :  { %1107 = vmatpush2.bf16.msra.mxu1 %v1970_v8  ;;  %1141 = vmatprep.subr.bf16.mxu0 %v1981_v12  ;;  %v1982_v18 = vld [vmem:[%s2681_s1 + $0x108] ss:$16 sps:$4 sm:$0xff]   ;;  %v1990_v20 = vld [vmem:[%s2681_s1 + $0x36c] ss:$16 sps:$4 sm:$0xff]   ;;  %v2015_v39 = vld [vmem:[%s2683_s3 + $0x30] sm:$0xff]   ;;  %v175_v12 = vsub.s32 1, %v2216_v42 }
  0x79   :  { %1108 = vmatprep.subr.bf16.mxu1 %v1978_v11  ;;  %v1985_v19 = vld [vmem:[%s2681_s1 + $0x388] ss:$16 sps:$4 sm:$0xff]   ;;  %v1993_v21 = vld [vmem:[%s2681_s1 + $0x46c] ss:$16 sps:$4 sm:$0xff]   ;;  %v2022_v47 = vld [vmem:[%s2683_s3 + $0x50] sm:$0xff]   ;;  %s2068_s11 = smov [#allocation2]  }
  0x7a   :  { %v1988_v22 = vld [vmem:[%s2681_s1 + $0x368] ss:$16 sps:$4 sm:$0xff]   ;;  %v1996_v25 = vld [vmem:[%s2681_s1 + $0x34c] ss:$16 sps:$4 sm:$0xff]   ;;  %v2023_v48 = vld [vmem:[%s2683_s3 + $0x10] sm:$0xff]   ;;  %s1561_s12 = sshll.u32 %s2068_s11, 4  ;;  %s1562_s12 = int_to_ptr.vmem [resolvable:$true] %s1561_s12 }
  0x7b   :  { %1142 = vmatpush2.bf16.msra.mxu0 %v1979_v15  ;;  %v1991_v24 = vld [vmem:[%s2681_s1 + $0x468] ss:$16 sps:$4 sm:$0xff]   ;;  %v1999_v26 = vld [vmem:[%s2681_s1 + $0x44c] ss:$16 sps:$4 sm:$0xff]   ;;  %v2026_v51 = vld [vmem:[%s2683_s3 + $0x40] sm:$0xff]   ;;  %s2044_s13 = scalar_lea.vmem %s1562_s12, 32  ;;  %p2049_p1 = scmp.lt.s32.totalorder %s1562_s12, %s1562_s12 }
  0x7c   :  { %1109 = vmatpush2.bf16.msra.mxu1 %v1976_v13  ;;  %1143 = vmatprep.subr.bf16.mxu0 %v1987_v17  ;;  %v1994_v27 = vld [vmem:[%s2681_s1 + $0x348] ss:$16 sps:$4 sm:$0xff]   ;;  %v2002_v29 = vld [vmem:[%s2681_s1 + $0x32c] ss:$16 sps:$4 sm:$0xff]   ;;  %v2027_v52 = vld [vmem:[%s2683_s3] sm:$0xff]   ;;  %p2045_p0 = scmp.ne.s32.totalorder %s1562_s12, %s2044_s13  ;;  %p2050_p2 = scmp.lt.s32.totalorder %s2044_s13, %s2044_s13 }
  0x7d   :  { %1110 = vmatprep.subr.bf16.mxu1 %v1984_v16  ;;  %v1997_v28 = vld [vmem:[%s2681_s1 + $0x448] ss:$16 sps:$4 sm:$0xff]   ;;  %v2008_v32 = vld [vmem:[%s2681_s1 + $0x30c] ss:$16 sps:$4 sm:$0xff]   ;;  %v2030_v53 = vld [vmem:[%s2683_s3 + $0xf0] sm:$0xff]  }
  0x7e   :  { %v2000_v30 = vld [vmem:[%s2681_s1 + $0x328] ss:$16 sps:$4 sm:$0xff]   ;;  %v2031_v54 = vld [vmem:[%s2683_s3 + $0xb0] sm:$0xff]   ;;  %v2034_v57 = vld [vmem:[%s2683_s3 + $0xe0] sm:$0xff]   ;;  %p2051_p3 = por %p2050_p2, %p2049_p1 }
  0x7f   :  { %1144 = vmatpush2.bf16.msra.mxu0 %v1985_v19  ;;  %v2003_v31 = vld [vmem:[%s2681_s1 + $0x428] ss:$16 sps:$4 sm:$0xff]   ;;  %v2035_v58 = vld [vmem:[%s2683_s3 + $0xa0] sm:$0xff]   ;;  %v2038_v61 = vld [vmem:[%s2683_s3 + $0xd0] sm:$0xff]  }
  0x80   :  { %1111 = vmatpush2.bf16.msra.mxu1 %v1982_v18  ;;  %1145 = vmatprep.subr.bf16.mxu0 %v1990_v20  ;;  %v2006_v33 = vld [vmem:[%s2681_s1 + $0x308] ss:$16 sps:$4 sm:$0xff]   ;;  %v2039_v62 = vld [vmem:[%s2683_s3 + $0x90] sm:$0xff]   ;;  %v2042_v1 = vld [vmem:[%s2683_s3 + $0xc0] sm:$0xff]   ;;  %p2052_p4 = pnand %p2051_p3, %p2045_p0 }
  0x81   :  { %1170 = vmatprep.subr.bf16.mxu1 %v1993_v21  ;;  %v2009_v35 = vld [vmem:[%s2681_s1 + $0x408] ss:$16 sps:$4 sm:$0xff]   ;;  %v2043_v2 = vld [vmem:[%s2683_s3 + $0x80] sm:$0xff]  }
  0x82   :  { %v2012_v36 = vld [vmem:[%s2683_s3 + $0x78] sm:$0xff]   ;;  %v2016_v40 = vld [vmem:[%s2683_s3 + $0x68] sm:$0xff]   ;;  %v167_v8 = vld [vmem:[%s2682_s2] sm:$0xf] }
  0x83   :  { %1113 = vmatmul.mubr.bf16.vlgmr.msra.gmra.mxu1 %v2305_v10  ;;  %1146 = vmatpush2.bf16.msra.mxu0 %v1988_v22  ;;  %v2005_v10 = vld [vmem:[%s2681_s1 + $0x42c] ss:$16 sps:$4 sm:$0xff]   ;;  %v172_v16 = vrot.slane %v167_v8, %v171_v7  ;;  %v176_v17 = vrot.slane %v167_v8, %v175_v12 }
  0x84   :  { %1171 = vmatpush1.bf16.msra.mxu1 %v1991_v24  ;;  %1147 = vmatprep.subr.bf16.mxu0 %v1996_v25  ;;  %v2013_v37 = vld [vmem:[%s2683_s3 + $0x38] sm:$0xff]   ;;  %v2017_v41 = vld [vmem:[%s2683_s3 + $0x28] sm:$0xff]  }
  0x85   :  { %1172 = vmatprep.subr.bf16.mxu1 %v1999_v26  ;;  %1194 = vmatprep.mubr.bf16.mxu1 %v2067_v23  ;;  %v2011_v23 = vld [vmem:[%s2681_s1 + $0x40c] ss:$16 sps:$4 sm:$0xff]  }
  0x86   :  { %v2020_v43 = vld [vmem:[%s2683_s3 + $0x58] sm:$0xff]   ;;  %v2024_v49 = vld [vmem:[%s2683_s3 + $0x48] sm:$0xff]  }
  0x87   :  { %1148 = vmatpush2.bf16.msra.mxu0 %v1994_v27  ;;  %v2028_v44 = vld [vmem:[%s2683_s3 + $0xf8] sm:$0xff]   ;;  %v2025_v50 = vld [vmem:[%s2683_s3 + $0x8] sm:$0xff]  }
  0x88   :  { %1173 = vmatpush1.bf16.msra.mxu1 %v1997_v28  ;;  %1149 = vmatprep.subr.bf16.mxu0 %v2002_v29  ;;  %v2029_v45 = vld [vmem:[%s2683_s3 + $0xb8] sm:$0xff]   ;;  %v2032_v55 = vld [vmem:[%s2683_s3 + $0xe8] sm:$0xff]  }
  0x89   :  { %1174 = vmatprep.subr.bf16.mxu1 %v2005_v10  ;;  %v2021_v46 = vld [vmem:[%s2683_s3 + $0x18] sm:$0xff]   ;;  %v2033_v56 = vld [vmem:[%s2683_s3 + $0xa8] sm:$0xff]  }
  0x8a   :  { %v2036_v59 = vld [vmem:[%s2683_s3 + $0xd8] sm:$0xff]   ;;  %v2040_v63 = vld [vmem:[%s2683_s3 + $0xc8] sm:$0xff]  }
  0x8b   :  { %1150 = vmatpush2.bf16.msra.mxu0 %v2000_v30  ;;  %v2037_v60 = vld [vmem:[%s2683_s3 + $0x98] sm:$0xff]   ;;  %v2041_v0 = vld [vmem:[%s2683_s3 + $0x88] sm:$0xff]  }
  0x8c   :  { %1175 = vmatpush1.bf16.msra.mxu1 %v2003_v31  ;;  %1151 = vmatprep.subr.bf16.mxu0 %v2008_v32 }
  0x8d   :  { %1176 = vmatprep.subr.bf16.mxu1 %v2011_v23 }
  0x8f   :  { %1152 = vmatpush2.bf16.msra.mxu0 %v2006_v33 }
  0x90   :  { %1177 = vmatpush1.bf16.msra.mxu1 %v2009_v35  ;;  %1748 = vmatprep.subr.bf16.mxu0 %v2012_v36  ;;  %v179_v36 = vsub.s32 2, %v2216_v42 }
  0x91   :  { %1770 = vmatprep.subr.bf16.mxu1 %v2028_v44 }
  0x92   :  { %1154 = vmatmul.mubr.bf16.vlgmr.msra.gmra.mxu0 %v2318_v14  ;;  %v2018_v14 = vld [vmem:[%s2683_s3 + $0x60] sm:$0xff]  }
  0x93   :  { %1714 = vmatmul.mubr.msk.bf16.vlgmr.msra.gmra.mxu1 %vm953_vm0, %v2375_v34  ;;  %1749 = vmatpush3.bf16.msra.mxu0 %v2013_v37  ;;  %v2019_v34 = vld [vmem:[%s2683_s3 + $0x20] sm:$0xff]   ;;  %v183_v37 = vsub.s32 3, %v2216_v42 }
  0x94   :  { %1750 = vmatprep.subr.bf16.mxu0 %v2014_v38  ;;  %1771 = vmatpush3.bf16.msra.mxu1 %v2029_v45  ;;  %v180_v38 = vrot.slane %v167_v8, %v179_v36 }
  0x95   :  { %1772 = vmatprep.subr.bf16.mxu1 %v2030_v53 }
  0x97   :  { %1751 = vmatpush3.bf16.msra.mxu0 %v2015_v39  ;;  %v184_v39 = vrot.slane %v167_v8, %v183_v37 }
  0x98   :  { %1752 = vmatprep.subr.bf16.mxu0 %v2016_v40  ;;  %1773 = vmatpush3.bf16.msra.mxu1 %v2031_v54 }
  0x99   :  { %1774 = vmatprep.subr.bf16.mxu1 %v2032_v55 }
  0x9b   :  { %1753 = vmatpush3.bf16.msra.mxu0 %v2017_v41 }
  0x9c   :  { %1754 = vmatprep.subr.bf16.mxu0 %v2018_v14  ;;  %1775 = vmatpush3.bf16.msra.mxu1 %v2033_v56 }
  0x9d   :  { %1776 = vmatprep.subr.bf16.mxu1 %v2034_v57 }
  0x9f   :  { %1755 = vmatpush3.bf16.msra.mxu0 %v2019_v34 }
  0xa0   :  { %1756 = vmatprep.subr.bf16.mxu0 %v2020_v43  ;;  %1777 = vmatpush3.bf16.msra.mxu1 %v2035_v58 }
  0xa1   :  { %1778 = vmatprep.subr.bf16.mxu1 %v2036_v59 }
  0xa3   :  { %1757 = vmatpush3.bf16.msra.mxu0 %v2021_v46 }
  0xa4   :  { %1758 = vmatprep.subr.bf16.mxu0 %v2022_v47  ;;  %1779 = vmatpush3.bf16.msra.mxu1 %v2037_v60 }
  0xa5   :  { %1780 = vmatprep.subr.bf16.mxu1 %v2038_v61  ;;  %v1715_v61 = vld [vmem:[%s2684_s4] ss:$0 sm:$0xff] }
  0xa7   :  { %1759 = vmatpush3.bf16.msra.mxu0 %v2023_v48 }
  0xa8   :  { %1760 = vmatprep.subr.bf16.mxu0 %v2024_v49  ;;  %1781 = vmatpush3.bf16.msra.mxu1 %v2039_v62 }
  0xa9   :  { %1782 = vmatprep.subr.bf16.mxu1 %v2040_v63 }
  0xab   :  { %1761 = vmatpush3.bf16.msra.mxu0 %v2025_v50 }
  0xac   :  { %1762 = vmatprep.subr.bf16.mxu0 %v2026_v51  ;;  %1783 = vmatpush3.bf16.msra.mxu1 %v2041_v0 }
  0xad   :  { %1784 = vmatprep.subr.bf16.mxu1 %v2042_v1 }
  0xaf   :  { %1763 = vmatpush3.bf16.msra.mxu0 %v2027_v52 }
  0xb0   :  { %1785 = vmatpush3.bf16.msra.mxu1 %v2043_v2 }
 0x102   :  { %v991_v3 = vpop.f32.mrf.mxu0 }
 0x103   :  { %v1032_v4 = vpop.f32.mrf.mxu1  ;;  %v992_v18 = vadd.f32 %v991_v3, %v172_v16 }
 0x104   :  { %v993_v5 = vpop.f32.mrf.mxu0 }
 0x105   :  { %v1034_v6 = vpop.f32.mrf.mxu1  ;;  %v994_v19 = vadd.f32 %v993_v5, %v176_v17  ;;  %v1033_v20 = vadd.f32 %v1032_v4, %v992_v18 }
 0x106   :  { %v995_v9 = vpop.f32.mrf.mxu0 }
 0x107   :  { %v1036_v11 = vpop.f32.mrf.mxu1  ;;  %v1035_v22 = vadd.f32 %v1034_v6, %v994_v19 }
 0x108   :  { %v996_v13 = vpop.f32.mrf.mxu0 }
 0x109   :  { %v1037_v15 = vpop.f32.mrf.mxu1 }
 0x112   :  { %v1073_v21 = vpop.f32.mrf.mxu0 }
 0x113   :  { %v1074_v24 = vadd.f32 %v1073_v21, %v1033_v20 }
 0x114   :  { %v1075_v25 = vpop.f32.mrf.mxu0 }
 0x115   :  { %v1076_v26 = vadd.f32 %v1075_v25, %v1035_v22  ;;  %v1203_v27 = vmax.f32 %v1074_v24, 0.0 }
 0x116   :  { %v1077_v28 = vpop.f32.mrf.mxu0 }
 0x117   :  { %v1204_v29 = vmax.f32 %v1076_v26, 0.0  ;;  %v1207_v31 = vpack.c.bf16 %v1203_v27, %v1203_v27 }
 0x118   :  { %v1078_v10 = vpop.f32.mrf.mxu0 }
 0x119   :  { %v1208_v30 = vpack.c.bf16 %v1204_v29, %v1204_v29 }
 0x11b   :  { %1506 = vmatprep.mubr.bf16.mxu0 %v1208_v30 }
 0x11c   :  { %1507 = vmatmul.mubr.bf16.vlgmr.msra.gmra.mxu0 %v1207_v31 }
 0x143   :  { %v1114_v32 = vpop.f32.mrf.mxu1 }
 0x144   :  { %v1115_v40 = vadd.f32 %v1114_v32, %v180_v38 }
 0x145   :  { %v1116_v23 = vpop.f32.mrf.mxu1 }
 0x146   :  { %v1117_v34 = vadd.f32 %v1116_v23, %v184_v39 }
 0x147   :  { %v1118_v33 = vpop.f32.mrf.mxu1 }
 0x149   :  { %v1119_v35 = vpop.f32.mrf.mxu1 }
 0x152   :  { %v1155_v41 = vpop.f32.mrf.mxu0 }
 0x153   :  { %v1196_v14 = vpop.f32.mrf.mxu1  ;;  %v1156_v43 = vadd.f32 %v1155_v41, %v1115_v40 }
 0x154   :  { %v1157_v44 = vpop.f32.mrf.mxu0 }
 0x155   :  { %v1198_v45 = vpop.f32.mrf.mxu1  ;;  %v1197_v46 = vadd.f32 %v1196_v14, %v1156_v43  ;;  %v1158_v47 = vadd.f32 %v1157_v44, %v1117_v34 }
 0x156   :  { %v1159_v48 = vpop.f32.mrf.mxu0 }
 0x157   :  { %v1200_v49 = vpop.f32.mrf.mxu1  ;;  %v1199_v50 = vadd.f32 %v1198_v45, %v1158_v47  ;;  %v1205_v51 = vmax.f32 %v1197_v46, 0.0 }
 0x158   :  { %v1160_v52 = vpop.f32.mrf.mxu0 }
 0x159   :  { %v1201_v53 = vpop.f32.mrf.mxu1  ;;  %v1206_v54 = vmax.f32 %v1199_v50, 0.0  ;;  %v1209_v42 = vpack.c.bf16 %v1205_v51, %v1205_v51 }
 0x15b   :  { %v1210_v55 = vpack.c.bf16 %v1206_v54, %v1206_v54 }
 0x15d   :  { %1546 = vmatprep.mubr.bf16.mxu1 %v1210_v55 }
 0x15e   :  { %1547 = vmatmul.mubr.bf16.vlgmr.msra.gmra.mxu1 %v1209_v42 }
 0x1dc   :  { %v1764_v56 = vpop.f32.mrf.mxu0 }
 0x1de   :  { %v1765_v57 = vpop.f32.mrf.mxu0 }
 0x1df   :  { %v1766_v58 = vadd.f32 %v1765_v57, %v1764_v56 }
 0x1e0   :  { %v1767_v59 = vpop.f32.mrf.mxu0 }
 0x1e1   :  { %v1509_v0 = vadd.f32 %v1766_v58, %v1715_v61 }
 0x1e2   :  { %v1768_v60 = vpop.f32.mrf.mxu0 }
 0x21e   :  { %v1786_v62 = vpop.f32.mrf.mxu1 }
 0x220   :  { %v1787_v63 = vpop.f32.mrf.mxu1 }
 0x221   :  { %v1788_v1 = vadd.f32 %v1787_v63, %v1786_v62 }
 0x222   :  { %v1789_v2 = vpop.f32.mrf.mxu1 }
 0x223   :  { %v1549_v3 = vadd.f32 %v1788_v1, %v1509_v0 }
 0x224   :  { %v1790_v4 = vpop.f32.mrf.mxu1 }
 0x225   :  { %1554 = vst [vmem:[#allocation2] sm:$0x3] %v1549_v3 }
 0x226   :  { %2055 = shalt.err (!%p2052_p4)
}
 0x227   :  { %1564 = dma.vmem_to_hbm [thread:$0]  %s1562_s12, 32, %s2685_s5, [#allocation3]  }
 0x228   :  { %2064 = dma.done.wait [#allocation3], 32  }
 0x229   :  { %2065 = vsyncadd [#allocation3], 4294967264 }
 0x22a   :  { %1568 = vsyncpa [#allocation3], 1 }

</bundles_post_ra>
